<compile_context>
chip_gen: v6e
topology: v6e:2x2x1
jax: 0.10.0
libtpu: 0.0.40
codegen_flags: <defaults>
</compile_context>

<pallas_src>
import jax
import jax.numpy as jnp
from jax import lax
from jax.experimental import pallas as pl
from jax.experimental.pallas import tpu as pltpu


def _make_kernel(m_valid: int, eps: float):
    inv_m = 1.0 / float(m_valid)

    def kernel(w_ref, x_ref, g_ref, b_ref, o_ref):
        # 1x1 conv hot path: (Cout_tile, Cin) @ (Cin, Mp) on the MXU.
        y = jnp.dot(w_ref[...], x_ref[...], preferred_element_type=jnp.float32)

        # One-pass batch statistics over the spatial (lane) axis.
        # Padded columns of x are zero => the matching columns of y are exactly
        # zero, so sum(y) / sum(y*y) already count only valid data; divide by
        # the true M. No mask / iota / select needed.
        s1 = jnp.sum(y, axis=1, keepdims=True)
        s2 = jnp.sum(y * y, axis=1, keepdims=True)
        mean = s1 * inv_m
        var = jnp.maximum(s2 * inv_m - mean * mean, 0.0)
        inv_std = lax.rsqrt(var + eps)

        # Per-channel affine epilogue: precompute (tc_out, 1) scale/shift, then
        # touch the full tile exactly once after the matmul.
        scale = inv_std * g_ref[...]
        shift = b_ref[...] - mean * scale
        o_ref[...] = y * scale + shift

    return kernel


def _pick_grid_config():
    """(n_tiles, dimension_semantics) chosen per TPU generation."""
    try:
        kind = jax.devices()[0].device_kind.lower()
    except Exception:  # defensive: fall back to the single-core setup
        kind = ""
    if "v7" in kind:
        # Two TensorCores per chip: shard the two 408-channel tiles across them.
        core_parallel = getattr(pltpu, "CORE_PARALLEL", "parallel")
        return 2, (core_parallel,)
    # Single-TC chips (v5e / v6e): keep 2 tiles so tile-0's ~418 KB writeback
    # overlaps tile-1's compute ("parallel" measures == "arbitrary" on one core).
    return 2, ("arbitrary",)


def _conv1x1_bn_impl(x_nchw, w_oi, gamma, beta, eps=1e-5):
    """x_nchw: (N, Cin, H, W) f32; w_oi: (Cout, Cin) f32; gamma/beta: (Cout,)."""
    N, Cin, H, W = x_nchw.shape
    Cout = w_oi.shape[0]
    M = N * H * W
    Mp = ((M + 127) // 128) * 128            # lane-dense spatial axis

    # Channels-major 2D view; for N == 1 this is a pure reshape (no copy).
    if N == 1:
        x2d = x_nchw.reshape(Cin, M)
    else:
        x2d = jnp.transpose(x_nchw, (1, 0, 2, 3)).reshape(Cin, M)
    x2d = jnp.pad(x2d, ((0, 0), (0, Mp - M)))

    g2d = gamma.reshape(Cout, 1)
    b2d = beta.reshape(Cout, 1)

    n_tiles, dim_sem = _pick_grid_config()
    tc_out = Cout // n_tiles                 # 408 = 51 * 8, sublane aligned
    assert tc_out * n_tiles == Cout and tc_out % 8 == 0

    out = pl.pallas_call(
        _make_kernel(M, eps),
        out_shape=jax.ShapeDtypeStruct((Cout, Mp), jnp.float32),
        grid_spec=pltpu.PrefetchScalarGridSpec(
            num_scalar_prefetch=0,
            grid=(n_tiles,),
            in_specs=[
                pl.BlockSpec((tc_out, Cin), lambda i: (i, 0)),   # weight tile
                # Constant (0, 0) block index: Pallas does not re-fetch the
                # ~139 KB activation block on subsequent grid steps.
                pl.BlockSpec((Cin, Mp), lambda i: (0, 0)),       # activations
                pl.BlockSpec((tc_out, 1), lambda i: (i, 0)),     # gamma tile
                pl.BlockSpec((tc_out, 1), lambda i: (i, 0)),     # beta tile
            ],
            out_specs=pl.BlockSpec((tc_out, Mp), lambda i: (i, 0)),
        ),
        compiler_params=pltpu.CompilerParams(dimension_semantics=dim_sem),
    )(w_oi, x2d, g2d, b2d)

    # (Cout, Mp) -> (N, Cout, H, W); for N == 1 this is reshape-only.
    y = out[:, :M]
    if N == 1:
        return y.reshape(1, Cout, H, W)
    return jnp.transpose(y.reshape(Cout, N, H, W), (1, 0, 2, 3))


# Jit the wrapper so the pad / slice / reshape around the custom call fuse into
# one XLA computation (eps is static: it is baked into the kernel body, so a
# changed eps forces a recompile by design).
conv1x1_bn = jax.jit(_conv1x1_bn_impl, static_argnames=("eps",))


def _reference(x_nchw, w_oi, gamma, beta, eps=1e-5):
    # Pure-JAX reference: conv via lax, training-mode (biased) batch norm.
    w4 = w_oi.reshape(w_oi.shape[0], w_oi.shape[1], 1, 1)
    y = jax.lax.conv_general_dilated(
        x_nchw, w4, window_strides=(1, 1), padding="VALID",
        dimension_numbers=("NCHW", "OIHW", "NCHW"))
    mean = jnp.mean(y, axis=(0, 2, 3), keepdims=True)
    var = jnp.mean((y - mean) ** 2, axis=(0, 2, 3), keepdims=True)
    return (y - mean) * jax.lax.rsqrt(var + eps) * gamma.reshape(1, -1, 1, 1) \
        + beta.reshape(1, -1, 1, 1)


if __name__ == "__main__":
    # Shapes implied by the module: Cin=136, Cout=816, input (1, 136, 14, 14).
    N, Cin, H, W = 1, 136, 14, 14
    Cout = 816

    key = jax.random.PRNGKey(0)
    kx, kw, kg, kb = jax.random.split(key, 4)
    x = jax.random.normal(kx, (N, Cin, H, W), dtype=jnp.float32)
    w = jax.random.normal(kw, (Cout, Cin), dtype=jnp.float32) * 0.05
    gamma = 1.0 + 0.1 * jax.random.normal(kg, (Cout,), dtype=jnp.float32)
    beta = 0.1 * jax.random.normal(kb, (Cout,), dtype=jnp.float32)

    # TODO(synk): running_mean/running_var momentum update (stateful side
    # effect of BatchNorm2d) is not modeled; forward output does not depend on it.

    out = conv1x1_bn(x, w, gamma, beta)
    out = jax.block_until_ready(out)

    ref = _reference(x, w, gamma, beta)
    assert out.shape == (N, Cout, H, W)
    # Slightly relaxed vs 2e-4: kernel uses one-pass (E[y^2] - mean^2) stats,
    # reference uses two-pass; both f32, M=196, so the difference is tiny.
    assert jnp.allclose(out, ref, atol=5e-4, rtol=5e-4)

    print("KERNEL_OK")
</pallas_src>

<mosaic_0001>
module attributes {stable_mosaic.version = 11 : i64} {
  func.func @kernel(%arg0: i32, %arg1: memref<408x136xf32, #tpu.memory_space<vmem>>, %arg2: memref<136x256xf32, #tpu.memory_space<vmem>>, %arg3: memref<408x1xf32, #tpu.memory_space<vmem>>, %arg4: memref<408x1xf32, #tpu.memory_space<vmem>>, %arg5: memref<408x256xf32, #tpu.memory_space<vmem>>) attributes {dimension_semantics = [#tpu.dimension_semantics<arbitrary>], iteration_bounds = array<i64: 2>, scalar_prefetch = 0 : i64, scratch_operands = 0 : i64, tpu.core_type = #tpu.core_type<tc>, window_params = [{transform_indices = @transform_0, window_bounds = array<i64: 408, 136>}, {pipeline_mode = #tpu.pipeline_mode<synchronous>, transform_indices = @transform_1, window_bounds = array<i64: 136, 256>}, {transform_indices = @transform_2, window_bounds = array<i64: 408, 1>}, {transform_indices = @transform_3, window_bounds = array<i64: 408, 1>}, {transform_indices = @transform_4, window_bounds = array<i64: 408, 256>}]} {
    %c0 = arith.constant 0 : index
    %c0_0 = arith.constant 0 : index
    %0 = vector.load %arg1[%c0, %c0_0] : memref<408x136xf32, #tpu.memory_space<vmem>>, vector<408x136xf32>
    %c0_1 = arith.constant 0 : index
    %c0_2 = arith.constant 0 : index
    %1 = vector.load %arg2[%c0_1, %c0_2] : memref<136x256xf32, #tpu.memory_space<vmem>>, vector<136x256xf32>
    %cst = arith.constant dense<0.000000e+00> : vector<408x256xf32>
    %2 = tpu.matmul %0, %1, %cst {dimension_numbers = #tpu.dot_dimension_numbers<[1], [0], [0], [1], [0, 0, 1, 1], [], []>} : vector<408x136xf32>, vector<136x256xf32>, vector<408x256xf32> -> vector<408x256xf32>
    %cst_3 = arith.constant dense<0.000000e+00> : vector<408xf32>
    %3 = vector.multi_reduction <add>, %2, %cst_3 [1] : vector<408x256xf32> to vector<408xf32>
    %4 = vector.shape_cast %3 : vector<408xf32> to vector<408x1xf32>
    %5 = arith.mulf %2, %2 : vector<408x256xf32>
    %cst_4 = arith.constant dense<0.000000e+00> : vector<408xf32>
    %6 = vector.multi_reduction <add>, %5, %cst_4 [1] : vector<408x256xf32> to vector<408xf32>
    %7 = vector.shape_cast %6 : vector<408xf32> to vector<408x1xf32>
    %cst_5 = arith.constant 0.00510204071 : f32
    %8 = vector.broadcast %cst_5 : f32 to vector<408x1xf32>
    %9 = arith.mulf %4, %8 : vector<408x1xf32>
    %cst_6 = arith.constant 0.00510204071 : f32
    %10 = vector.broadcast %cst_6 : f32 to vector<408x1xf32>
    %11 = arith.mulf %7, %10 : vector<408x1xf32>
    %12 = arith.mulf %9, %9 : vector<408x1xf32>
    %13 = arith.subf %11, %12 : vector<408x1xf32>
    %cst_7 = arith.constant 0.000000e+00 : f32
    %14 = vector.broadcast %cst_7 : f32 to vector<408x1xf32>
    %15 = arith.maximumf %13, %14 : vector<408x1xf32>
    %cst_8 = arith.constant 9.99999974E-6 : f32
    %16 = vector.broadcast %cst_8 : f32 to vector<408x1xf32>
    %17 = arith.addf %15, %16 : vector<408x1xf32>
    %18 = math.rsqrt %17 : vector<408x1xf32>
    %c0_9 = arith.constant 0 : index
    %c0_10 = arith.constant 0 : index
    %19 = vector.load %arg3[%c0_9, %c0_10] : memref<408x1xf32, #tpu.memory_space<vmem>>, vector<408x1xf32>
    %20 = arith.mulf %18, %19 : vector<408x1xf32>
    %c0_11 = arith.constant 0 : index
    %c0_12 = arith.constant 0 : index
    %21 = vector.load %arg4[%c0_11, %c0_12] : memref<408x1xf32, #tpu.memory_space<vmem>>, vector<408x1xf32>
    %22 = arith.mulf %9, %20 : vector<408x1xf32>
    %23 = arith.subf %21, %22 : vector<408x1xf32>
    %24 = vector.broadcast %20 : vector<408x1xf32> to vector<408x256xf32>
    %25 = arith.mulf %2, %24 : vector<408x256xf32>
    %26 = vector.broadcast %23 : vector<408x1xf32> to vector<408x256xf32>
    %27 = arith.addf %25, %26 : vector<408x256xf32>
    %c0_13 = arith.constant 0 : index
    %c0_14 = arith.constant 0 : index
    %28 = vector.load %arg5[%c0_13, %c0_14] : memref<408x256xf32, #tpu.memory_space<vmem>>, vector<408x256xf32>
    tpu.vector_store %arg5[%c0_13, %c0_14], %27 {strides = array<i32>} : memref<408x256xf32, #tpu.memory_space<vmem>>, vector<408x256xf32>,
    return
  }
  func.func @transform_0(%arg0: i32) -> (i32, i32) {
    %c0_i32 = arith.constant 0 : i32
    %c0_i32_0 = arith.constant 0 : i32
    return %arg0, %c0_i32 : i32, i32
  }
  func.func @transform_1(%arg0: i32) -> (i32, i32) {
    %c0_i32 = arith.constant 0 : i32
    %c0_i32_0 = arith.constant 0 : i32
    %c0_i32_1 = arith.constant 0 : i32
    return %c0_i32, %c0_i32_0 : i32, i32
  }
  func.func @transform_2(%arg0: i32) -> (i32, i32) {
    %c0_i32 = arith.constant 0 : i32
    %c0_i32_0 = arith.constant 0 : i32
    return %arg0, %c0_i32 : i32, i32
  }
  func.func @transform_3(%arg0: i32) -> (i32, i32) {
    %c0_i32 = arith.constant 0 : i32
    %c0_i32_0 = arith.constant 0 : i32
    return %arg0, %c0_i32 : i32, i32
  }
  func.func @transform_4(%arg0: i32) -> (i32, i32) {
    %c0_i32 = arith.constant 0 : i32
    %c0_i32_0 = arith.constant 0 : i32
    return %arg0, %c0_i32 : i32, i32
  }
}

</mosaic_0001>

<bundles_post_ra>
// kernel: _conv1x1_bn_impl.1
= control target key start
LH: loop header
LB: loop body
LE: loop exit
PB: predicated region body
PF: predicated region fallthrough
CT: control target
= control target key end

     0   :  { %s3076_s15 = smov 0   ;;  %s4976_s0 = inlined_call_operand.vmem [shape: f32[816,136], index: 0, kind: input, shape index: {}]   ;;  %s4977_s1 = inlined_call_operand.vmem [shape: f32[136,256], index: 1, kind: input, shape index: {}]   ;;  %s4978_s2 = inlined_call_operand.vmem [shape: f32[816,1], index: 2, kind: input, shape index: {}]   ;;  %s4979_s3 = inlined_call_operand.vmem [shape: f32[816,1], index: 3, kind: input, shape index: {}]   ;;  %s4980_s4 = inlined_call_operand.vmem [shape: f32[816,256], index: 4, kind: output, shape index: {}]  }
   0x1 LB: > { %s2829_s16 = sadd.s32 4294967295, %s3048_s15   ;;  %p2833_p0 = scmp.ge.s32.totalorder %s3048_s15, 1  ;;  %s3048_s15 = sphi %s3076_s15, %s14_s15  }
   0x2   : > { %p186_p1 = scmp.lt.s32.totalorder %s3048_s15, 3 }
   0x4   : > { %p187_p2 = pnand %p2833_p0, %p186_p1 }
   0x6   : > { %190 = sbr.rel (%p187_p2) target bundleno = 802 (0x322), region = 36 }
   0xb   : > { %v383_v0 = vld [vmem:[%s4977_s1 + $0xf8] sm:$0xff]  ;;  %v382_v1 = vld [vmem:[%s4977_s1 + $0xf0] sm:$0xff]  ;;  %v381_v2 = vld [vmem:[%s4977_s1 + $0xe8] sm:$0xff]  ;;  %s224_s23 = smul.u32 51, %s2829_s16  ;;  %vm386_vm0 = vcmask 64512  }
   0xc   : > { %540 = vmatprep.subr.mxu0 %v383_v0  ;;  %2895 = vmatprep.subr.mxu1 %v383_v0  ;;  %v380_v3 = vld [vmem:[%s4977_s1 + $0xe0] sm:$0xff]  ;;  %v379_v4 = vld [vmem:[%s4977_s1 + $0xd8] sm:$0xff]  ;;  %v378_v5 = vld [vmem:[%s4977_s1 + $0xd0] sm:$0xff] }
   0xd   : > { %541 = vmatpush1.msra.mxu0 %v382_v1  ;;  %2912 = vmatpush1.msra.mxu1 %v382_v1  ;;  %v377_v6 = vld [vmem:[%s4977_s1 + $0xc8] sm:$0xff]  ;;  %v376_v7 = vld [vmem:[%s4977_s1 + $0xc0] sm:$0xff]  ;;  %v375_v8 = vld [vmem:[%s4977_s1 + $0xb8] sm:$0xff]  ;;  %p225_p3 = scmp.lt.s32.totalorder %s224_s23, 101 }
   0xe   : > { %542 = vmatprep.subr.mxu0 %v381_v2  ;;  %2896 = vmatprep.subr.mxu1 %v381_v2  ;;  %v374_v9 = vld [vmem:[%s4977_s1 + $0xb0] sm:$0xff]  ;;  %v373_v10 = vld [vmem:[%s4977_s1 + $0xa8] sm:$0xff]  ;;  %v372_v11 = vld [vmem:[%s4977_s1 + $0xa0] sm:$0xff] }
   0xf   : > { %543 = vmatpush1.msra.mxu0 %v380_v3  ;;  %2913 = vmatpush1.msra.mxu1 %v380_v3  ;;  %v371_v12 = vld [vmem:[%s4977_s1 + $0x98] sm:$0xff]  ;;  %v370_v13 = vld [vmem:[%s4977_s1 + $0x90] sm:$0xff]  ;;  %v369_v14 = vld [vmem:[%s4977_s1 + $0x88] sm:$0xff]  ;;  %s5270_s23 = smov (!%p225_p3, %s224_s23), 101 }
  0x10   : > { %544 = vmatprep.subr.mxu0 %v379_v4  ;;  %2897 = vmatprep.subr.mxu1 %v379_v4  ;;  %v368_v15 = vld [vmem:[%s4977_s1 + $0x80] sm:$0xff]  ;;  %v367_v16 = vld [vmem:[%s4977_s1 + $0x78] sm:$0xff]  ;;  %v366_v17 = vld [vmem:[%s4977_s1 + $0x70] sm:$0xff]  ;;  %s2893_s24 = sshll.u32 %s5270_s23, 4  ;;  %s2836_s17 = sshll.u32 %s5270_s23, 3 }
  0x11   : > { %545 = vmatpush1.msra.mxu0 %v378_v5  ;;  %2914 = vmatpush1.msra.mxu1 %v378_v5  ;;  %v365_v18 = vld [vmem:[%s4977_s1 + $0x68] sm:$0xff]  ;;  %v364_v19 = vld [vmem:[%s4977_s1 + $0x60] sm:$0xff]  ;;  %v363_v20 = vld [vmem:[%s4977_s1 + $0x58] sm:$0xff]  ;;  %s3184_s6 = scalar_lea.vmem %s4976_s0, %s2893_s24  ;;  %s4003_s20 = scalar_lea.vmem %s4978_s2, %s2836_s17 }
  0x12   : > { %546 = vmatprep.subr.mxu0 %v377_v6  ;;  %2898 = vmatprep.subr.mxu1 %v377_v6  ;;  %v362_v21 = vld [vmem:[%s4977_s1 + $0x50] sm:$0xff]  ;;  %v361_v22 = vld [vmem:[%s4977_s1 + $0x48] sm:$0xff]  ;;  %v360_v23 = vld [vmem:[%s4977_s1 + $0x40] sm:$0xff]  ;;  %s4033_s25 = scalar_lea.vmem %s4979_s3, %s2836_s17  ;;  %s4570_s28 = scalar_lea.vmem %s4980_s4, %s2893_s24 }
  0x13   : > { %547 = vmatpush1.msra.mxu0 %v376_v7  ;;  %2915 = vmatpush1.msra.mxu1 %v376_v7  ;;  %v359_v24 = vld [vmem:[%s4977_s1 + $0x38] sm:$0xff]  ;;  %v358_v25 = vld [vmem:[%s4977_s1 + $0x30] sm:$0xff]  ;;  %v357_v26 = vld [vmem:[%s4977_s1 + $0x28] sm:$0xff] }
  0x14   : > { %548 = vmatprep.subr.mxu0 %v375_v8  ;;  %2899 = vmatprep.subr.mxu1 %v375_v8  ;;  %v356_v27 = vld [vmem:[%s4977_s1 + $0x20] sm:$0xff]  ;;  %v355_v28 = vld [vmem:[%s4977_s1 + $0x18] sm:$0xff]  ;;  %v354_v29 = vld [vmem:[%s4977_s1 + $0x10] sm:$0xff] }
  0x15   : > { %549 = vmatpush1.msra.mxu0 %v374_v9  ;;  %2916 = vmatpush1.msra.mxu1 %v374_v9  ;;  %v353_v30 = vld [vmem:[%s4977_s1 + $0x8] sm:$0xff]  ;;  %v352_v31 = vld [vmem:[%s4977_s1] sm:$0xff]  ;;  %v253_v37 = vld [vmem:[%s3184_s6 + $0x18] sm:$0xff] }
  0x16   : > { %550 = vmatprep.subr.mxu0 %v373_v10  ;;  %2900 = vmatprep.subr.mxu1 %v373_v10  ;;  %v385_v32 = vld [vmem:[%s4977_s1 + $0x108] sm:$0xff]  ;;  %v384_v34 = vld [vmem:[%s4977_s1 + $0x100] sm:$0xff]  ;;  %v305_v39 = vld [vmem:[%s3184_s6 + $0x1b8] sm:$0xff] }
  0x17   : > { %551 = vmatpush1.msra.mxu0 %v372_v11  ;;  %2917 = vmatpush1.msra.mxu1 %v372_v11  ;;  %v251_v33 = vld [vmem:[%s3184_s6 + $0x8] sm:$0xff]  ;;  %v250_v35 = vld [vmem:[%s3184_s6] sm:$0xff]  ;;  %v252_v40 = vld [vmem:[%s3184_s6 + $0x10] sm:$0xff] }
  0x18   : > { %552 = vmatprep.subr.mxu0 %v371_v12  ;;  %2901 = vmatprep.subr.mxu1 %v371_v12  ;;  %v303_v36 = vld [vmem:[%s3184_s6 + $0x1a8] sm:$0xff]  ;;  %v302_v38 = vld [vmem:[%s3184_s6 + $0x1a0] sm:$0xff]  ;;  %v304_v42 = vld [vmem:[%s3184_s6 + $0x1b0] sm:$0xff] }
  0x19   : > { %553 = vmatpush1.msra.mxu0 %v370_v13  ;;  %2918 = vmatpush1.msra.mxu1 %v370_v13  ;;  %v255_v41 = vld [vmem:[%s3184_s6 + $0x28] sm:$0xff]  ;;  %v254_v44 = vld [vmem:[%s3184_s6 + $0x20] sm:$0xff]  ;;  %v257_v45 = vld [vmem:[%s3184_s6 + $0x38] sm:$0xff] }
  0x1a   : > { %554 = vmatprep.subr.mxu0 %v369_v14  ;;  %2902 = vmatprep.subr.mxu1 %v369_v14  ;;  %v307_v43 = vld [vmem:[%s3184_s6 + $0x1c8] sm:$0xff]  ;;  %v306_v46 = vld [vmem:[%s3184_s6 + $0x1c0] sm:$0xff]  ;;  %v309_v47 = vld [vmem:[%s3184_s6 + $0x1d8] sm:$0xff] }
  0x1b   : > { %555 = vmatpush1.msra.mxu0 %v368_v15  ;;  %2919 = vmatpush1.msra.mxu1 %v368_v15  ;;  %v256_v48 = vld [vmem:[%s3184_s6 + $0x30] sm:$0xff]  ;;  %v259_v49 = vld [vmem:[%s3184_s6 + $0x48] sm:$0xff]  ;;  %v258_v52 = vld [vmem:[%s3184_s6 + $0x40] sm:$0xff] }
  0x1c   : > { %556 = vmatprep.subr.mxu0 %v367_v16  ;;  %2903 = vmatprep.subr.mxu1 %v367_v16  ;;  %v308_v50 = vld [vmem:[%s3184_s6 + $0x1d0] sm:$0xff]  ;;  %v311_v51 = vld [vmem:[%s3184_s6 + $0x1e8] sm:$0xff]  ;;  %v261_v53 = vld [vmem:[%s3184_s6 + $0x58] sm:$0xff] }
  0x1d   : > { %557 = vmatpush1.msra.mxu0 %v366_v17  ;;  %2920 = vmatpush1.msra.mxu1 %v366_v17  ;;  %v310_v54 = vld [vmem:[%s3184_s6 + $0x1e0] sm:$0xff]  ;;  %v313_v55 = vld [vmem:[%s3184_s6 + $0x1f8] sm:$0xff]  ;;  %v260_v56 = vld [vmem:[%s3184_s6 + $0x50] sm:$0xff] }
  0x1e   : > { %558 = vmatprep.subr.mxu0 %v365_v18  ;;  %2904 = vmatprep.subr.mxu1 %v365_v18  ;;  %v263_v57 = vld [vmem:[%s3184_s6 + $0x68] sm:$0xff]  ;;  %v312_v58 = vld [vmem:[%s3184_s6 + $0x1f0] sm:$0xff]  ;;  %v262_v60 = vld [vmem:[%s3184_s6 + $0x60] sm:$0xff] }
  0x1f   : > { %559 = vmatpush1.msra.mxu0 %v364_v19  ;;  %2921 = vmatpush1.msra.mxu1 %v364_v19  ;;  %v315_v59 = vld [vmem:[%s3184_s6 + $0x208] sm:$0xff]  ;;  %v265_v61 = vld [vmem:[%s3184_s6 + $0x78] sm:$0xff]  ;;  %v314_v62 = vld [vmem:[%s3184_s6 + $0x200] sm:$0xff] }
  0x20   : > { %560 = vmatprep.subr.mxu0 %v363_v20  ;;  %2905 = vmatprep.subr.mxu1 %v363_v20  ;;  %v317_v63 = vld [vmem:[%s3184_s6 + $0x218] sm:$0xff]  ;;  %v264_v0 = vld [vmem:[%s3184_s6 + $0x70] sm:$0xff]  ;;  %v267_v1 = vld [vmem:[%s3184_s6 + $0x88] sm:$0xff] }
  0x21   : > { %561 = vmatpush1.msra.mxu0 %v362_v21  ;;  %2922 = vmatpush1.msra.mxu1 %v362_v21  ;;  %v316_v2 = vld [vmem:[%s3184_s6 + $0x210] sm:$0xff]  ;;  %v319_v3 = vld [vmem:[%s3184_s6 + $0x228] sm:$0xff]  ;;  %v266_v4 = vld [vmem:[%s3184_s6 + $0x80] sm:$0xff] }
  0x22   : > { %562 = vmatprep.subr.mxu0 %v361_v22  ;;  %2906 = vmatprep.subr.mxu1 %v361_v22  ;;  %v269_v5 = vld [vmem:[%s3184_s6 + $0x98] sm:$0xff]  ;;  %v318_v6 = vld [vmem:[%s3184_s6 + $0x220] sm:$0xff]  ;;  %v268_v8 = vld [vmem:[%s3184_s6 + $0x90] sm:$0xff] }
  0x23   : > { %563 = vmatpush1.msra.mxu0 %v360_v23  ;;  %2923 = vmatpush1.msra.mxu1 %v360_v23  ;;  %v321_v7 = vld [vmem:[%s3184_s6 + $0x238] sm:$0xff]  ;;  %v271_v9 = vld [vmem:[%s3184_s6 + $0xa8] sm:$0xff]  ;;  %v320_v10 = vld [vmem:[%s3184_s6 + $0x230] sm:$0xff] }
  0x24   : > { %564 = vmatprep.subr.mxu0 %v359_v24  ;;  %2907 = vmatprep.subr.mxu1 %v359_v24  ;;  %v323_v11 = vld [vmem:[%s3184_s6 + $0x248] sm:$0xff]  ;;  %v270_v12 = vld [vmem:[%s3184_s6 + $0xa0] sm:$0xff]  ;;  %v273_v13 = vld [vmem:[%s3184_s6 + $0xb8] sm:$0xff] }
  0x25   : > { %565 = vmatpush1.msra.mxu0 %v358_v25  ;;  %2924 = vmatpush1.msra.mxu1 %v358_v25  ;;  %v322_v14 = vld [vmem:[%s3184_s6 + $0x240] sm:$0xff]  ;;  %v325_v15 = vld [vmem:[%s3184_s6 + $0x258] sm:$0xff]  ;;  %v272_v16 = vld [vmem:[%s3184_s6 + $0xb0] sm:$0xff] }
  0x26   : > { %566 = vmatprep.subr.mxu0 %v357_v26  ;;  %2908 = vmatprep.subr.mxu1 %v357_v26  ;;  %v275_v17 = vld [vmem:[%s3184_s6 + $0xc8] sm:$0xff]  ;;  %v324_v18 = vld [vmem:[%s3184_s6 + $0x250] sm:$0xff]  ;;  %v274_v20 = vld [vmem:[%s3184_s6 + $0xc0] sm:$0xff] }
  0x27   : > { %567 = vmatpush1.msra.mxu0 %v356_v27  ;;  %2925 = vmatpush1.msra.mxu1 %v356_v27  ;;  %v327_v19 = vld [vmem:[%s3184_s6 + $0x268] sm:$0xff]  ;;  %v277_v21 = vld [vmem:[%s3184_s6 + $0xd8] sm:$0xff]  ;;  %v326_v22 = vld [vmem:[%s3184_s6 + $0x260] sm:$0xff] }
  0x28   : > { %568 = vmatprep.subr.mxu0 %v355_v28  ;;  %2909 = vmatprep.subr.mxu1 %v355_v28  ;;  %v329_v23 = vld [vmem:[%s3184_s6 + $0x278] sm:$0xff]  ;;  %v276_v24 = vld [vmem:[%s3184_s6 + $0xd0] sm:$0xff]  ;;  %v279_v25 = vld [vmem:[%s3184_s6 + $0xe8] sm:$0xff] }
  0x29   : > { %569 = vmatpush1.msra.mxu0 %v354_v29  ;;  %2926 = vmatpush1.msra.mxu1 %v354_v29  ;;  %v328_v26 = vld [vmem:[%s3184_s6 + $0x270] sm:$0xff]  ;;  %v331_v27 = vld [vmem:[%s3184_s6 + $0x288] sm:$0xff]  ;;  %v278_v28 = vld [vmem:[%s3184_s6 + $0xe0] sm:$0xff] }
  0x2a   : > { %570 = vmatprep.subr.mxu0 %v353_v30  ;;  %2910 = vmatprep.subr.mxu1 %v353_v30  ;;  %v281_v29 = vld [vmem:[%s3184_s6 + $0xf8] sm:$0xff]  ;;  %v330_v30 = vld [vmem:[%s3184_s6 + $0x280] sm:$0xff] }
  0x2b   : > { %571 = vmatpush1.msra.mxu0 %v352_v31  ;;  %2927 = vmatpush1.msra.mxu1 %v352_v31  ;;  %v333_v31 = vld [vmem:[%s3184_s6 + $0x298] sm:$0xff] }
  0x2c   : > { %602 = vmatprep.subr.mxu0 %v385_v32  ;;  %2840 = vmatprep.mubr.msk.f32.mxu0 %vm386_vm0, %v251_v33  ;;  %v283_v33 = vld [vmem:[%s3184_s6 + $0x108] sm:$0xff] }
  0x2d   : > { %603 = vmatpush2.msra.mxu0 %v384_v34  ;;  %2911 = vmatprep.subr.mxu1 %v385_v32  ;;  %v280_v32 = vld [vmem:[%s3184_s6 + $0xf0] sm:$0xff] }
  0x2e   : > { %605 = vmatmul.mubr.f32.vlgmr.msra.gmra.mxu0 %v250_v35  ;;  %2928 = vmatpush2.msra.mxu1 %v384_v34  ;;  %v332_v34 = vld [vmem:[%s3184_s6 + $0x290] sm:$0xff]  ;;  %v335_v35 = vld [vmem:[%s3184_s6 + $0x2a8] sm:$0xff] }
  0x2f   : > { %2866 = vmatprep.mubr.msk.f32.mxu1 %vm386_vm0, %v303_v36  ;;  %2841 = vmatprep.mubr.msk.f32.mxu0 %vm386_vm0, %v253_v37  ;;  %v282_v36 = vld [vmem:[%s3184_s6 + $0x100] sm:$0xff]  ;;  %v285_v37 = vld [vmem:[%s3184_s6 + $0x118] sm:$0xff] }
  0x30   : > { %761 = vmatmul.mubr.f32.vlgmr.msra.gmra.mxu1 %v302_v38  ;;  %v334_v38 = vld [vmem:[%s3184_s6 + $0x2a0] sm:$0xff] }
  0x31   : > { %2867 = vmatprep.mubr.msk.f32.mxu1 %vm386_vm0, %v305_v39  ;;  %v337_v39 = vld [vmem:[%s3184_s6 + $0x2b8] sm:$0xff] }
  0x32   : > { %611 = vmatmul.mubr.f32.gmra.mxu0 %v252_v40  ;;  %v284_v40 = vld [vmem:[%s3184_s6 + $0x110] sm:$0xff] }
  0x33   : > { %2842 = vmatprep.mubr.msk.f32.mxu0 %vm386_vm0, %v255_v41  ;;  %v287_v41 = vld [vmem:[%s3184_s6 + $0x128] sm:$0xff] }
  0x34   : > { %767 = vmatmul.mubr.f32.gmra.mxu1 %v304_v42  ;;  %v336_v42 = vld [vmem:[%s3184_s6 + $0x2b0] sm:$0xff] }
  0x35   : > { %2868 = vmatprep.mubr.msk.f32.mxu1 %vm386_vm0, %v307_v43  ;;  %v339_v43 = vld [vmem:[%s3184_s6 + $0x2c8] sm:$0xff] }
  0x36   : > { %617 = vmatmul.mubr.f32.gmra.mxu0 %v254_v44  ;;  %v286_v44 = vld [vmem:[%s3184_s6 + $0x120] sm:$0xff] }
  0x37   : > { %2843 = vmatprep.mubr.msk.f32.mxu0 %vm386_vm0, %v257_v45  ;;  %v289_v45 = vld [vmem:[%s3184_s6 + $0x138] sm:$0xff] }
  0x38   : > { %773 = vmatmul.mubr.f32.gmra.mxu1 %v306_v46  ;;  %v338_v46 = vld [vmem:[%s3184_s6 + $0x2c0] sm:$0xff] }
  0x39   : > { %2869 = vmatprep.mubr.msk.f32.mxu1 %vm386_vm0, %v309_v47  ;;  %v341_v47 = vld [vmem:[%s3184_s6 + $0x2d8] sm:$0xff] }
  0x3a   : > { %623 = vmatmul.mubr.f32.gmra.mxu0 %v256_v48  ;;  %v288_v48 = vld [vmem:[%s3184_s6 + $0x130] sm:$0xff] }
  0x3b   : > { %2844 = vmatprep.mubr.msk.f32.mxu0 %vm386_vm0, %v259_v49  ;;  %v291_v49 = vld [vmem:[%s3184_s6 + $0x148] sm:$0xff] }
  0x3c   : > { %779 = vmatmul.mubr.f32.gmra.mxu1 %v308_v50  ;;  %v340_v50 = vld [vmem:[%s3184_s6 + $0x2d0] sm:$0xff] }
  0x3d   : > { %2870 = vmatprep.mubr.msk.f32.mxu1 %vm386_vm0, %v311_v51  ;;  %v343_v51 = vld [vmem:[%s3184_s6 + $0x2e8] sm:$0xff] }
  0x3e   : > { %629 = vmatmul.mubr.f32.gmra.mxu0 %v258_v52  ;;  %v290_v52 = vld [vmem:[%s3184_s6 + $0x140] sm:$0xff] }
  0x3f   : > { %2845 = vmatprep.mubr.msk.f32.mxu0 %vm386_vm0, %v261_v53  ;;  %v293_v53 = vld [vmem:[%s3184_s6 + $0x158] sm:$0xff] }
  0x40   : > { %785 = vmatmul.mubr.f32.gmra.mxu1 %v310_v54  ;;  %v342_v54 = vld [vmem:[%s3184_s6 + $0x2e0] sm:$0xff] }
  0x41   : > { %2871 = vmatprep.mubr.msk.f32.mxu1 %vm386_vm0, %v313_v55  ;;  %v345_v55 = vld [vmem:[%s3184_s6 + $0x2f8] sm:$0xff] }
  0x42   : > { %635 = vmatmul.mubr.f32.gmra.mxu0 %v260_v56  ;;  %v292_v56 = vld [vmem:[%s3184_s6 + $0x150] sm:$0xff] }
  0x43   : > { %2846 = vmatprep.mubr.msk.f32.mxu0 %vm386_vm0, %v263_v57  ;;  %v295_v57 = vld [vmem:[%s3184_s6 + $0x168] sm:$0xff] }
  0x44   : > { %791 = vmatmul.mubr.f32.gmra.mxu1 %v312_v58  ;;  %v344_v58 = vld [vmem:[%s3184_s6 + $0x2f0] sm:$0xff] }
  0x45   : > { %2872 = vmatprep.mubr.msk.f32.mxu1 %vm386_vm0, %v315_v59  ;;  %v347_v59 = vld [vmem:[%s3184_s6 + $0x308] sm:$0xff] }
  0x46   : > { %641 = vmatmul.mubr.f32.gmra.mxu0 %v262_v60  ;;  %v294_v60 = vld [vmem:[%s3184_s6 + $0x160] sm:$0xff] }
  0x47   : > { %2847 = vmatprep.mubr.msk.f32.mxu0 %vm386_vm0, %v265_v61  ;;  %v297_v61 = vld [vmem:[%s3184_s6 + $0x178] sm:$0xff] }
  0x48   : > { %797 = vmatmul.mubr.f32.gmra.mxu1 %v314_v62  ;;  %v346_v62 = vld [vmem:[%s3184_s6 + $0x300] sm:$0xff] }
  0x49   : > { %2873 = vmatprep.mubr.msk.f32.mxu1 %vm386_vm0, %v317_v63  ;;  %v349_v63 = vld [vmem:[%s3184_s6 + $0x318] sm:$0xff] }
  0x4a   : > { %647 = vmatmul.mubr.f32.gmra.mxu0 %v264_v0  ;;  %v296_v0 = vld [vmem:[%s3184_s6 + $0x170] sm:$0xff] }
  0x4b   : > { %2848 = vmatprep.mubr.msk.f32.mxu0 %vm386_vm0, %v267_v1  ;;  %v299_v1 = vld [vmem:[%s3184_s6 + $0x188] sm:$0xff] }
  0x4c   : > { %803 = vmatmul.mubr.f32.gmra.mxu1 %v316_v2  ;;  %v348_v2 = vld [vmem:[%s3184_s6 + $0x310] sm:$0xff] }
  0x4d   : > { %2874 = vmatprep.mubr.msk.f32.mxu1 %vm386_vm0, %v319_v3  ;;  %v351_v3 = vld [vmem:[%s3184_s6 + $0x328] sm:$0xff] }
  0x4e   : > { %653 = vmatmul.mubr.f32.gmra.mxu0 %v266_v4  ;;  %v298_v4 = vld [vmem:[%s3184_s6 + $0x180] sm:$0xff] }
  0x4f   : > { %2849 = vmatprep.mubr.msk.f32.mxu0 %vm386_vm0, %v269_v5  ;;  %v301_v5 = vld [vmem:[%s3184_s6 + $0x198] sm:$0xff] }
  0x50   : > { %809 = vmatmul.mubr.f32.gmra.mxu1 %v318_v6  ;;  %v350_v6 = vld [vmem:[%s3184_s6 + $0x320] sm:$0xff] }
  0x51   : > { %2875 = vmatprep.mubr.msk.f32.mxu1 %vm386_vm0, %v321_v7  ;;  %v300_v7 = vld [vmem:[%s3184_s6 + $0x190] sm:$0xff] }
  0x52   : > { %659 = vmatmul.mubr.f32.gmra.mxu0 %v268_v8 }
  0x53   : > { %2850 = vmatprep.mubr.msk.f32.mxu0 %vm386_vm0, %v271_v9 }
  0x54   : > { %815 = vmatmul.mubr.f32.gmra.mxu1 %v320_v10 }
  0x55   : > { %2876 = vmatprep.mubr.msk.f32.mxu1 %vm386_vm0, %v323_v11 }
  0x56   : > { %665 = vmatmul.mubr.f32.gmra.mxu0 %v270_v12 }
  0x57   : > { %2851 = vmatprep.mubr.msk.f32.mxu0 %vm386_vm0, %v273_v13 }
  0x58   : > { %821 = vmatmul.mubr.f32.gmra.mxu1 %v322_v14 }
  0x59   : > { %2877 = vmatprep.mubr.msk.f32.mxu1 %vm386_vm0, %v325_v15 }
  0x5a   : > { %671 = vmatmul.mubr.f32.gmra.mxu0 %v272_v16 }
  0x5b   : > { %2852 = vmatprep.mubr.msk.f32.mxu0 %vm386_vm0, %v275_v17 }
  0x5c   : > { %827 = vmatmul.mubr.f32.gmra.mxu1 %v324_v18 }
  0x5d   : > { %2878 = vmatprep.mubr.msk.f32.mxu1 %vm386_vm0, %v327_v19 }
  0x5e   : > { %677 = vmatmul.mubr.f32.gmra.mxu0 %v274_v20 }
  0x5f   : > { %2853 = vmatprep.mubr.msk.f32.mxu0 %vm386_vm0, %v277_v21 }
  0x60   : > { %833 = vmatmul.mubr.f32.gmra.mxu1 %v326_v22 }
  0x61   : > { %2879 = vmatprep.mubr.msk.f32.mxu1 %vm386_vm0, %v329_v23 }
  0x62   : > { %683 = vmatmul.mubr.f32.gmra.mxu0 %v276_v24 }
  0x63   : > { %2854 = vmatprep.mubr.msk.f32.mxu0 %vm386_vm0, %v279_v25 }
  0x64   : > { %839 = vmatmul.mubr.f32.gmra.mxu1 %v328_v26 }
  0x65   : > { %2880 = vmatprep.mubr.msk.f32.mxu1 %vm386_vm0, %v331_v27 }
  0x66   : > { %689 = vmatmul.mubr.f32.gmra.mxu0 %v278_v28 }
  0x67   : > { %2855 = vmatprep.mubr.msk.f32.mxu0 %vm386_vm0, %v281_v29 }
  0x68   : > { %845 = vmatmul.mubr.f32.gmra.mxu1 %v330_v30 }
  0x69   : > { %2881 = vmatprep.mubr.msk.f32.mxu1 %vm386_vm0, %v333_v31 }
  0x6a   : > { %695 = vmatmul.mubr.f32.gmra.mxu0 %v280_v32 }
  0x6b   : > { %2856 = vmatprep.mubr.msk.f32.mxu0 %vm386_vm0, %v283_v33 }
  0x6c   : > { %851 = vmatmul.mubr.f32.gmra.mxu1 %v332_v34 }
  0x6d   : > { %2882 = vmatprep.mubr.msk.f32.mxu1 %vm386_vm0, %v335_v35 }
  0x6e   : > { %701 = vmatmul.mubr.f32.gmra.mxu0 %v282_v36 }
  0x6f   : > { %2857 = vmatprep.mubr.msk.f32.mxu0 %vm386_vm0, %v285_v37 }
  0x70   : > { %857 = vmatmul.mubr.f32.gmra.mxu1 %v334_v38 }
  0x71   : > { %2883 = vmatprep.mubr.msk.f32.mxu1 %vm386_vm0, %v337_v39 }
  0x72   : > { %707 = vmatmul.mubr.f32.gmra.mxu0 %v284_v40 }
  0x73   : > { %2858 = vmatprep.mubr.msk.f32.mxu0 %vm386_vm0, %v287_v41 }
  0x74   : > { %863 = vmatmul.mubr.f32.gmra.mxu1 %v336_v42 }
  0x75   : > { %2884 = vmatprep.mubr.msk.f32.mxu1 %vm386_vm0, %v339_v43 }
  0x76   : > { %713 = vmatmul.mubr.f32.gmra.mxu0 %v286_v44 }
  0x77   : > { %2859 = vmatprep.mubr.msk.f32.mxu0 %vm386_vm0, %v289_v45 }
  0x78   : > { %869 = vmatmul.mubr.f32.gmra.mxu1 %v338_v46 }
  0x79   : > { %2885 = vmatprep.mubr.msk.f32.mxu1 %vm386_vm0, %v341_v47 }
  0x7a   : > { %719 = vmatmul.mubr.f32.gmra.mxu0 %v288_v48 }
  0x7b   : > { %2860 = vmatprep.mubr.msk.f32.mxu0 %vm386_vm0, %v291_v49 }
  0x7c   : > { %875 = vmatmul.mubr.f32.gmra.mxu1 %v340_v50 }
  0x7d   : > { %2886 = vmatprep.mubr.msk.f32.mxu1 %vm386_vm0, %v343_v51 }
  0x7e   : > { %725 = vmatmul.mubr.f32.gmra.mxu0 %v290_v52 }
  0x7f   : > { %2861 = vmatprep.mubr.msk.f32.mxu0 %vm386_vm0, %v293_v53 }
  0x80   : > { %881 = vmatmul.mubr.f32.gmra.mxu1 %v342_v54 }
  0x81   : > { %2887 = vmatprep.mubr.msk.f32.mxu1 %vm386_vm0, %v345_v55 }
  0x82   : > { %731 = vmatmul.mubr.f32.gmra.mxu0 %v292_v56 }
  0x83   : > { %2862 = vmatprep.mubr.msk.f32.mxu0 %vm386_vm0, %v295_v57 }
  0x84   : > { %887 = vmatmul.mubr.f32.gmra.mxu1 %v344_v58 }
  0x85   : > { %2888 = vmatprep.mubr.msk.f32.mxu1 %vm386_vm0, %v347_v59 }
  0x86   : > { %737 = vmatmul.mubr.f32.gmra.mxu0 %v294_v60 }
  0x87   : > { %2863 = vmatprep.mubr.msk.f32.mxu0 %vm386_vm0, %v297_v61 }
  0x88   : > { %893 = vmatmul.mubr.f32.gmra.mxu1 %v346_v62 }
  0x89   : > { %2889 = vmatprep.mubr.msk.f32.mxu1 %vm386_vm0, %v349_v63 }
  0x8a   : > { %743 = vmatmul.mubr.f32.gmra.mxu0 %v296_v0 }
  0x8b   : > { %2864 = vmatprep.mubr.msk.f32.mxu0 %vm386_vm0, %v299_v1 }
  0x8c   : > { %899 = vmatmul.mubr.f32.gmra.mxu1 %v348_v2 }
  0x8d   : > { %2890 = vmatprep.mubr.msk.f32.mxu1 %vm386_vm0, %v351_v3 }
  0x8e   : > { %749 = vmatmul.mubr.f32.gmra.mxu0 %v298_v4 }
  0x8f   : > { %2865 = vmatprep.mubr.msk.f32.mxu0 %vm386_vm0, %v301_v5 }
  0x90   : > { %905 = vmatmul.mubr.f32.gmra.mxu1 %v350_v6 }
  0x92   : > { %755 = vmatmul.mubr.f32.gmra.mxu0 %v300_v7 }
  0xee   : > { %v3351_v8 = vpop.f32.mrf.mxu0 }
  0xef   : > { %v1064_v12 = vmul.f32 %v3351_v8, %v3351_v8 }
  0xf0   : > { %v3353_v9 = vpop.f32.mrf.mxu0  ;;  %v3355_v10 = vpop.f32.mrf.mxu1 }
  0xf1   : > { %v911_v11 = vadd.f32 %v3353_v9, %v3351_v8  ;;  %v1065_v13 = vmul.f32 %v3353_v9, %v3353_v9  ;;  %v1116_v17 = vmul.f32 %v3355_v10, %v3355_v10 }
  0xf2   : > { %v3363_v14 = vpop.f32.mrf.mxu1  ;;  %v3365_v15 = vpop.f32.mrf.mxu0 }
  0xf3   : > { %912 = vadd.xlane.f32.xlu0 %v911_v11  ;;  %v1166_v16 = vadd.f32 %v1065_v13, %v1064_v12  ;;  %v1117_v18 = vmul.f32 %v3363_v14, %v3363_v14  ;;  %v989_v21 = vadd.f32 %v3363_v14, %v3355_v10  ;;  %v1066_v26 = vmul.f32 %v3365_v15, %v3365_v15 }
  0xf4   : > { %v3371_v19 = vpop.f32.mrf.mxu1  ;;  %v3373_v20 = vpop.f32.mrf.mxu0 }
  0xf5   : > { %1167 = vadd.xlane.f32.xlu1 %v1166_v16  ;;  %v1244_v23 = vadd.f32 %v1117_v18, %v1116_v17  ;;  %v914_v24 = vadd.f32 %v3373_v20, %v3365_v15  ;;  %v1067_v27 = vmul.f32 %v3373_v20, %v3373_v20  ;;  %v1118_v33 = vmul.f32 %v3371_v19, %v3371_v19 }
  0xf6   : > { %v3377_v22 = vpop.f32.mrf.mxu0  ;;  %v3381_v25 = vpop.f32.mrf.mxu1 }
  0xf7   : > { %5077 = vst [vmem:[#allocation2_spill] sm:$0xff] %v3377_v22  ;;  %990 = vadd.xlane.f32.xlu0 %v989_v21  ;;  %5078 = vst [vmem:[#allocation3_spill] sm:$0xff] %v3381_v25  ;;  %v992_v30 = vadd.f32 %v3381_v25, %v3371_v19  ;;  %v1169_v32 = vadd.f32 %v1067_v27, %v1066_v26  ;;  %v1119_v34 = vmul.f32 %v3381_v25, %v3381_v25  ;;  %v1705_v25 = vld [vmem:[%s4003_s20 + $0xe8] sm:$0xff] }
  0xf8   : > { %v3387_v28 = vpop.f32.mrf.mxu0  ;;  %v3389_v29 = vpop.f32.mrf.mxu1  ;;  %v1068_v37 = vmul.f32 %v3377_v22, %v3377_v22 }
  0xf9   : > { %1245 = vadd.xlane.f32.xlu1 %v1244_v23  ;;  %5079 = vst [vmem:[#allocation4_spill] sm:$0xff] %v3387_v28  ;;  %5080 = vst [vmem:[#allocation5_spill] sm:$0xff] %v3389_v29  ;;  %v917_v36 = vadd.f32 %v3387_v28, %v3377_v22  ;;  %v1069_v38 = vmul.f32 %v3387_v28, %v3387_v28  ;;  %v1247_v41 = vadd.f32 %v1119_v34, %v1118_v33 }
  0xfa   : > { %v3393_v31 = vpop.f32.mrf.mxu0  ;;  %v3399_v35 = vpop.f32.mrf.mxu1  ;;  %v1120_v42 = vmul.f32 %v3389_v29, %v3389_v29 }
  0xfb   : > { %915 = vadd.xlane.f32.xlu0 %v914_v24  ;;  %5081 = vst [vmem:[#allocation6_spill] sm:$0xff] %v3393_v31  ;;  %5082 = vst [vmem:[#allocation7_spill] sm:$0xff] %v3399_v35  ;;  %v1172_v43 = vadd.f32 %v1069_v38, %v1068_v37  ;;  %v1121_v44 = vmul.f32 %v3399_v35, %v3399_v35  ;;  %v1070_v45 = vmul.f32 %v3393_v31, %v3393_v31 }
  0xfc   : > { %v3407_v39 = vpop.f32.mrf.mxu0  ;;  %v3409_v40 = vpop.f32.mrf.mxu1  ;;  %v995_v48 = vadd.f32 %v3399_v35, %v3389_v29  ;;  %v1703_v35 = vld [vmem:[%s4003_s20 + $0xd8] sm:$0xff] }
  0xfd   : > { %993 = vadd.xlane.f32.xlu1 %v992_v30  ;;  %5083 = vst [vmem:[#allocation8_spill] sm:$0xff] %v3407_v39  ;;  %5084 = vst [vmem:[#allocation9_spill] sm:$0xff] %v3409_v40  ;;  %v1071_v46 = vmul.f32 %v3407_v39, %v3407_v39  ;;  %v1250_v50 = vadd.f32 %v1121_v44, %v1120_v42  ;;  %v1122_v52 = vmul.f32 %v3409_v40, %v3409_v40 }
  0xfe   : > { %v3419_v47 = vpop.f32.mrf.mxu1  ;;  %v3423_v49 = vpop.f32.mrf.mxu0  ;;  %v920_v56 = vadd.f32 %v3407_v39, %v3393_v31 }
  0xff   : > { %1170 = vadd.xlane.f32.xlu0 %v1169_v32  ;;  %5085 = vst [vmem:[#allocation10_spill] sm:$0xff] %v3419_v47  ;;  %5086 = vst [vmem:[#allocation11_spill] sm:$0xff] %v3423_v49  ;;  %v1175_v51 = vadd.f32 %v1071_v46, %v1070_v45  ;;  %v1123_v53 = vmul.f32 %v3419_v47, %v3419_v47  ;;  %v998_v60 = vadd.f32 %v3419_v47, %v3409_v40 }
 0x100   : > { %v3429_v54 = vpop.f32.mrf.mxu0  ;;  %v3431_v55 = vpop.f32.mrf.mxu1  ;;  %v1072_v61 = vmul.f32 %v3423_v49, %v3423_v49 }
 0x101   : > { %918 = vadd.xlane.f32.xlu1 %v917_v36  ;;  %5087 = vst [vmem:[#allocation12_spill] sm:$0xff] %v3429_v54  ;;  %5088 = vst [vmem:[#allocation13_spill] sm:$0xff] %v3431_v55  ;;  %v1253_v57 = vadd.f32 %v1123_v53, %v1122_v52  ;;  %v1073_v62 = vmul.f32 %v3429_v54, %v3429_v54  ;;  %v923_v1 = vadd.f32 %v3429_v54, %v3423_v49 }
 0x102   : > { %v3435_v58 = vpop.f32.mrf.mxu0  ;;  %v3437_v59 = vpop.f32.mrf.mxu1  ;;  %v1124_v2 = vmul.f32 %v3431_v55, %v3431_v55 }
 0x103   : > { %1248 = vadd.xlane.f32.xlu0 %v1247_v41  ;;  %5089 = vst [vmem:[#allocation14_spill] sm:$0xff] %v3435_v58  ;;  %5090 = vst [vmem:[#allocation15_spill] sm:$0xff] %v3437_v59  ;;  %v1178_v3 = vadd.f32 %v1073_v62, %v1072_v61  ;;  %v1125_v4 = vmul.f32 %v3437_v59, %v3437_v59  ;;  %v1074_v5 = vmul.f32 %v3435_v58, %v3435_v58 }
 0x104   : > { %v3445_v63 = vpop.f32.mrf.mxu0  ;;  %v3447_v0 = vpop.f32.mrf.mxu1  ;;  %v1001_v11 = vadd.f32 %v3437_v59, %v3431_v55 }
 0x105   : > { %1173 = vadd.xlane.f32.xlu1 %v1172_v43  ;;  %5091 = vst [vmem:[#allocation16_spill] sm:$0xff] %v3445_v63  ;;  %5092 = vst [vmem:[#allocation17_spill] sm:$0xff] %v3447_v0  ;;  %v1075_v6 = vmul.f32 %v3445_v63, %v3445_v63  ;;  %v1256_v13 = vadd.f32 %v1125_v4, %v1124_v2  ;;  %v1126_v17 = vmul.f32 %v3447_v0, %v3447_v0 }
 0x106   : > { %v3459_v7 = vpop.f32.mrf.mxu1  ;;  %v3463_v12 = vpop.f32.mrf.mxu0  ;;  %v926_v24 = vadd.f32 %v3445_v63, %v3435_v58 }
 0x107   : > { %996 = vadd.xlane.f32.xlu0 %v995_v48  ;;  %5093 = vst [vmem:[#allocation18_spill] sm:$0xff] %v3459_v7  ;;  %5094 = vst [vmem:[#allocation19_spill] sm:$0xff] %v3463_v12  ;;  %v1181_v16 = vadd.f32 %v1075_v6, %v1074_v5  ;;  %v1127_v18 = vmul.f32 %v3459_v7, %v3459_v7  ;;  %v1004_v32 = vadd.f32 %v3459_v7, %v3447_v0 }
 0x108   : > { %v3469_v21 = vpop.f32.mrf.mxu0  ;;  %v3471_v23 = vpop.f32.mrf.mxu1  ;;  %v1076_v33 = vmul.f32 %v3463_v12, %v3463_v12 }
 0x109   : > { %1251 = vadd.xlane.f32.xlu1 %v1250_v50  ;;  %5095 = vst [vmem:[#allocation20_spill] sm:$0xff] %v3469_v21  ;;  %5096 = vst [vmem:[#allocation21_spill] sm:$0xff] %v3471_v23  ;;  %v1259_v26 = vadd.f32 %v1127_v18, %v1126_v17  ;;  %v1077_v34 = vmul.f32 %v3469_v21, %v3469_v21  ;;  %v929_v38 = vadd.f32 %v3469_v21, %v3463_v12 }
 0x10a   : > { %v3475_v27 = vpop.f32.mrf.mxu0  ;;  %v3477_v30 = vpop.f32.mrf.mxu1  ;;  %v1128_v41 = vmul.f32 %v3471_v23, %v3471_v23 }
 0x10b   : > { %1176 = vadd.xlane.f32.xlu0 %v1175_v51  ;;  %5097 = vst [vmem:[#allocation22_spill] sm:$0xff] %v3475_v27  ;;  %5098 = vst [vmem:[#allocation23_spill] sm:$0xff] %v3477_v30  ;;  %v1184_v42 = vadd.f32 %v1077_v34, %v1076_v33  ;;  %v1129_v43 = vmul.f32 %v3477_v30, %v3477_v30  ;;  %v1078_v44 = vmul.f32 %v3475_v27, %v3475_v27 }
 0x10c   : > { %v3485_v36 = vpop.f32.mrf.mxu0  ;;  %v3487_v37 = vpop.f32.mrf.mxu1  ;;  %v1007_v48 = vadd.f32 %v3477_v30, %v3471_v23 }
 0x10d   : > { %921 = vadd.xlane.f32.xlu1 %v920_v56  ;;  %5099 = vst [vmem:[#allocation24_spill] sm:$0xff] %v3485_v36  ;;  %5100 = vst [vmem:[#allocation25_spill] sm:$0xff] %v3487_v37  ;;  %v1079_v45 = vmul.f32 %v3485_v36, %v3485_v36  ;;  %v1262_v51 = vadd.f32 %v1129_v43, %v1128_v41  ;;  %v1130_v53 = vmul.f32 %v3487_v37, %v3487_v37 }
 0x10e   : > { %v3499_v46 = vpop.f32.mrf.mxu1  ;;  %v3503_v50 = vpop.f32.mrf.mxu0  ;;  %v932_v61 = vadd.f32 %v3485_v36, %v3475_v27 }
 0x10f   : > { %1254 = vadd.xlane.f32.xlu0 %v1253_v57  ;;  %5101 = vst [vmem:[#allocation26_spill] sm:$0xff] %v3499_v46  ;;  %5102 = vst [vmem:[#allocation27_spill] sm:$0xff] %v3503_v50  ;;  %v1187_v52 = vadd.f32 %v1079_v45, %v1078_v44  ;;  %v1131_v56 = vmul.f32 %v3499_v46, %v3499_v46  ;;  %v1080_v4 = vmul.f32 %v3503_v50, %v3503_v50 }
 0x110   : > { %v3509_v57 = vpop.f32.mrf.mxu0 }
 0x111   : > { %999 = vadd.xlane.f32.xlu1 %v998_v60  ;;  %5103 = vst [vmem:[#allocation28_spill] sm:$0xff] %v3509_v57  ;;  %v3511_v60 = vpop.f32.mrf.mxu1  ;;  %v1265_v62 = vadd.f32 %v1131_v56, %v1130_v53  ;;  %v1081_v5 = vmul.f32 %v3509_v57, %v3509_v57 }
 0x112   : > { %5104 = vst [vmem:[#allocation29_spill] sm:$0xff] %v3511_v60 }
 0x113   : > { %924 = vadd.xlane.f32.xlu0 %v923_v1  ;;  %v3515_v1 = vpop.f32.mrf.mxu0  ;;  %v3517_v2 = vpop.f32.mrf.mxu1  ;;  %v1190_v17 = vadd.f32 %v1081_v5, %v1080_v4 }
 0x114   : > { %5105 = vst [vmem:[#allocation30_spill] sm:$0xff] %v3515_v1  ;;  %5106 = vst [vmem:[#allocation31_spill] sm:$0xff] %v3517_v2  ;;  %v1133_v18 = vmul.f32 %v3517_v2, %v3517_v2  ;;  %v1013_v33 = vadd.f32 %v3517_v2, %v3511_v60 }
 0x115   : > { %1179 = vadd.xlane.f32.xlu1 %v1178_v3  ;;  %v1010_v3 = vadd.f32 %v3499_v46, %v3487_v37  ;;  %v3525_v6 = vpop.f32.mrf.mxu0 }
 0x116   : > { %5107 = vst [vmem:[#allocation32_spill] sm:$0xff] %v3525_v6 }
 0x117   : > { %1002 = vadd.xlane.f32.xlu0 %v1001_v11  ;;  %v3527_v11 = vpop.f32.mrf.mxu1  ;;  %v3543_v34 = vpop.f32.mrf.mxu0 }
 0x118   : > { %5108 = vst [vmem:[#allocation33_spill] sm:$0xff] %v3527_v11  ;;  %5110 = vst [vmem:[#allocation35_spill] sm:$0xff] %v3543_v34 }
 0x119   : > { %1257 = vadd.xlane.f32.xlu1 %v1256_v13  ;;  %v935_v13 = vadd.f32 %v3509_v57, %v3503_v50  ;;  %v3549_v44 = vpop.f32.mrf.mxu0 }
 0x11a   : > { %5111 = vst [vmem:[#allocation36_spill] sm:$0xff] %v3549_v44  ;;  %v941_v5 = vadd.f32 %v3549_v44, %v3543_v34 }
 0x11b   : > { %1182 = vadd.xlane.f32.xlu0 %v1181_v16  ;;  %v1132_v16 = vmul.f32 %v3511_v60, %v3511_v60 }
 0x11d   : > { %927 = vadd.xlane.f32.xlu1 %v926_v24  ;;  %v1082_v24 = vmul.f32 %v3515_v1, %v3515_v1 }
 0x11f   : > { %1260 = vadd.xlane.f32.xlu0 %v1259_v26  ;;  %v1083_v26 = vmul.f32 %v3525_v6, %v3525_v6 }
 0x121   : > { %1005 = vadd.xlane.f32.xlu1 %v1004_v32  ;;  %v3539_v32 = vpop.f32.mrf.mxu1  ;;  %v1193_v41 = vadd.f32 %v1083_v26, %v1082_v24 }
 0x122   : > { %5109 = vst [vmem:[#allocation34_spill] sm:$0xff] %v3539_v32  ;;  %v1135_v43 = vmul.f32 %v3539_v32, %v3539_v32  ;;  %v1016_v56 = vadd.f32 %v3539_v32, %v3527_v11 }
 0x123   : > { %930 = vadd.xlane.f32.xlu0 %v929_v38  ;;  %v1268_v38 = vadd.f32 %v1133_v18, %v1132_v16  ;;  %v3551_v45 = vpop.f32.mrf.mxu1 }
 0x124   : > { %5112 = vst [vmem:[#allocation37_spill] sm:$0xff] %v3551_v45 }
 0x125   : > { %1185 = vadd.xlane.f32.xlu1 %v1184_v42  ;;  %v1134_v42 = vmul.f32 %v3527_v11, %v3527_v11  ;;  %v3557_v53 = vpop.f32.mrf.mxu1 }
 0x126   : > { %5114 = vst [vmem:[#allocation39_spill] sm:$0xff] %v3557_v53 }
 0x127   : > { %1008 = vadd.xlane.f32.xlu0 %v1007_v48  ;;  %v938_v48 = vadd.f32 %v3525_v6, %v3515_v1  ;;  %v3567_v4 = vpop.f32.mrf.mxu1 }
 0x128   : > { %5116 = vst [vmem:[#allocation41_spill] sm:$0xff] %v3567_v4 }
 0x129   : > { %1263 = vadd.xlane.f32.xlu1 %v1262_v51  ;;  %v1271_v51 = vadd.f32 %v1135_v43, %v1134_v42  ;;  %v3579_v26 = vpop.f32.mrf.mxu1  ;;  %v1138_v43 = vmul.f32 %v3567_v4, %v3567_v4 }
 0x12a   : > { %5117 = vst [vmem:[#allocation42_spill] sm:$0xff] %v3579_v26 }
 0x12b   : > { %1188 = vadd.xlane.f32.xlu0 %v1187_v52  ;;  %v3555_v52 = vpop.f32.mrf.mxu0 }
 0x12c   : > { %5113 = vst [vmem:[#allocation38_spill] sm:$0xff] %v3555_v52  ;;  %v1086_v18 = vmul.f32 %v3555_v52, %v3555_v52 }
 0x12d   : > { %933 = vadd.xlane.f32.xlu1 %v932_v61  ;;  %v1084_v61 = vmul.f32 %v3543_v34, %v3543_v34 }
 0x12f   : > { %1266 = vadd.xlane.f32.xlu0 %v1265_v62  ;;  %v1085_v62 = vmul.f32 %v3549_v44, %v3549_v44 }
 0x131   : > { %1011 = vadd.xlane.f32.xlu1 %v1010_v3  ;;  %v3565_v3 = vpop.f32.mrf.mxu0  ;;  %v1196_v16 = vadd.f32 %v1085_v62, %v1084_v61 }
 0x132   : > { %5115 = vst [vmem:[#allocation40_spill] sm:$0xff] %v3565_v3  ;;  %v1087_v24 = vmul.f32 %v3565_v3, %v3565_v3  ;;  %v944_v61 = vadd.f32 %v3565_v3, %v3555_v52 }
 0x133   : > { %936 = vadd.xlane.f32.xlu0 %v935_v13  ;;  %v1136_v13 = vmul.f32 %v3551_v45, %v3551_v45 }
 0x134   : > { %v1199_v42 = vadd.f32 %v1087_v24, %v1086_v18 }
 0x135   : > { %1191 = vadd.xlane.f32.xlu1 %v1190_v17  ;;  %v1137_v17 = vmul.f32 %v3557_v53, %v3557_v53 }
 0x137   : > { %1014 = vadd.xlane.f32.xlu0 %v1013_v33  ;;  %v1019_v33 = vadd.f32 %v3557_v53, %v3551_v45 }
 0x139   : > { %1269 = vadd.xlane.f32.xlu1 %v1268_v38  ;;  %v3583_v38 = vpop.f32.mrf.mxu0 }
 0x13a   : > { %5118 = vst [vmem:[#allocation43_spill] sm:$0xff] %v3583_v38 }
 0x13b   : > { %1194 = vadd.xlane.f32.xlu0 %v1193_v41  ;;  %v1274_v41 = vadd.f32 %v1137_v17, %v1136_v13  ;;  %v1088_v17 = vmul.f32 %v3583_v38, %v3583_v38 }
 0x13d   : > { %939 = vadd.xlane.f32.xlu1 %v938_v48  ;;  %v1139_v48 = vmul.f32 %v3579_v26, %v3579_v26 }
 0x13f   : > { %1272 = vadd.xlane.f32.xlu0 %v1271_v51  ;;  %v3589_v51 = vpop.f32.mrf.mxu0  ;;  %v1277_v62 = vadd.f32 %v1139_v48, %v1138_v43 }
 0x140   : > { %5119 = vst [vmem:[#allocation44_spill] sm:$0xff] %v3589_v51  ;;  %v1089_v18 = vmul.f32 %v3589_v51, %v3589_v51 }
 0x141   : > { %1017 = vadd.xlane.f32.xlu1 %v1016_v56  ;;  %v3591_v56 = vpop.f32.mrf.mxu1 }
 0x142   : > { %5120 = vst [vmem:[#allocation45_spill] sm:$0xff] %v3591_v56  ;;  %v1140_v43 = vmul.f32 %v3591_v56, %v3591_v56  ;;  %v1202_v48 = vadd.f32 %v1089_v18, %v1088_v17 }
 0x143   : > { %942 = vadd.xlane.f32.xlu0 %v941_v5  ;;  %v3595_v5 = vpop.f32.mrf.mxu0  ;;  %v3597_v13 = vpop.f32.mrf.mxu1 }
 0x144   : > { %5121 = vst [vmem:[#allocation46_spill] sm:$0xff] %v3595_v5  ;;  %5122 = vst [vmem:[#allocation47_spill] sm:$0xff] %v3597_v13 }
 0x145   : > { %1197 = vadd.xlane.f32.xlu1 %v1196_v16  ;;  %v1022_v16 = vadd.f32 %v3579_v26, %v3567_v4  ;;  %v3605_v24 = vpop.f32.mrf.mxu0 }
 0x146   : > { %5123 = vst [vmem:[#allocation48_spill] sm:$0xff] %v3605_v24  ;;  %v1091_v26 = vmul.f32 %v3605_v24, %v3605_v24 }
 0x147   : > { %1020 = vadd.xlane.f32.xlu0 %v1019_v33  ;;  %v3607_v33 = vpop.f32.mrf.mxu1 }
 0x148   : > { %5124 = vst [vmem:[#allocation49_spill] sm:$0xff] %v3607_v33  ;;  %v1142_v18 = vmul.f32 %v3607_v33, %v3607_v33 }
 0x149   : > { %1275 = vadd.xlane.f32.xlu1 %v1274_v41  ;;  %v3050_v41 = vmov 0   ;;  %v3619_v4 = vpop.f32.mrf.mxu1 }
 0x14a   : > { %2939 = vset.pattern.permute.xlu1 %v3050_v41  ;;  %2938 = vset.pattern.permute.xlu0 %v3050_v41  ;;  %5125 = vst [vmem:[#allocation50_spill] sm:$0xff] %v3619_v4  ;;  %v3623_v41 = vpop.f32.mrf.mxu0  ;;  %v1143_v3 = vmul.f32 %v3619_v4, %v3619_v4 }
 0x14b   : > { %1200 = vadd.xlane.f32.xlu0 %v1199_v42  ;;  %v947_v42 = vadd.f32 %v3589_v51, %v3583_v38  ;;  %5126 = vst [vmem:[#allocation51_spill] sm:$0xff] %v3623_v41  ;;  %v3631_v51 = vpop.f32.mrf.mxu1 }
 0x14c   : > { %v3629_v52 = vpop.f32.mrf.mxu0  ;;  %5128 = vst [vmem:[#allocation53_spill] sm:$0xff] %v3631_v51 }
 0x14d   : > { %945 = vadd.xlane.f32.xlu1 %v944_v61  ;;  %v1141_v61 = vmul.f32 %v3597_v13, %v3597_v13  ;;  %5127 = vst [vmem:[#allocation52_spill] sm:$0xff] %v3629_v52 }
 0x14f   : > { %1278 = vadd.xlane.f32.xlu0 %v1277_v62  ;;  %v1090_v62 = vmul.f32 %v3595_v5, %v3595_v5 }
 0x151   : > { %1023 = vadd.xlane.f32.xlu1 %v1022_v16  ;;  %v1025_v16 = vadd.f32 %v3597_v13, %v3591_v56  ;;  %v1205_v17 = vadd.f32 %v1091_v26, %v1090_v62  ;;  %v1283_v13 = vadd.f32 %v1143_v3, %v1142_v18  ;;  %v3635_v56 = vpop.f32.mrf.mxu0  ;;  %v3637_v26 = vpop.f32.mrf.mxu1  ;;  %v1093_v62 = vmul.f32 %v3629_v52, %v3629_v52 }
 0x152   : > { %5129 = vst [vmem:[#allocation54_spill] sm:$0xff] %v3635_v56  ;;  %5130 = vst [vmem:[#allocation55_spill] sm:$0xff] %v3637_v26  ;;  %v953_v3 = vadd.f32 %v3629_v52, %v3623_v41  ;;  %v1145_v18 = vmul.f32 %v3637_v26, %v3637_v26 }
 0x153   : > { %948 = vadd.xlane.f32.xlu0 %v947_v42  ;;  %v1280_v42 = vadd.f32 %v1141_v61, %v1140_v43  ;;  %v1028_v43 = vadd.f32 %v3619_v4, %v3607_v33  ;;  %v1092_v61 = vmul.f32 %v3623_v41, %v3623_v41 }
 0x155   : > { %1203 = vadd.xlane.f32.xlu1 %v1202_v48  ;;  %v950_v48 = vadd.f32 %v3605_v24, %v3595_v5 }
 0x157   : > { %1026 = vadd.xlane.f32.xlu0 %v1025_v16  ;;  %v3645_v16 = vpop.f32.mrf.mxu0 }
 0x158   : > { %5131 = vst [vmem:[#allocation56_spill] sm:$0xff] %v3645_v16  ;;  %v1095_v4 = vmul.f32 %v3645_v16, %v3645_v16 }
 0x159   : > { %1281 = vadd.xlane.f32.xlu1 %v1280_v42  ;;  %v3647_v42 = vpop.f32.mrf.mxu1  ;;  %v3663_v24 = vpop.f32.mrf.mxu0 }
 0x15a   : > { %5132 = vst [vmem:[#allocation57_spill] sm:$0xff] %v3647_v42  ;;  %5134 = vst [vmem:[#allocation59_spill] sm:$0xff] %v3663_v24 }
 0x15b   : > { %1206 = vadd.xlane.f32.xlu0 %v1205_v17  ;;  %v1208_v17 = vadd.f32 %v1093_v62, %v1092_v61  ;;  %v3659_v33 = vpop.f32.mrf.mxu1  ;;  %v1146_v62 = vmul.f32 %v3647_v42, %v3647_v42  ;;  %v3669_v52 = vpop.f32.mrf.mxu0 }
 0x15c   : > { %5133 = vst [vmem:[#allocation58_spill] sm:$0xff] %v3659_v33  ;;  %v1147_v5 = vmul.f32 %v3659_v33, %v3659_v33  ;;  %5135 = vst [vmem:[#allocation60_spill] sm:$0xff] %v3669_v52 }
 0x15d   : > { %951 = vadd.xlane.f32.xlu1 %v950_v48  ;;  %v1094_v48 = vmul.f32 %v3635_v56, %v3635_v56  ;;  %v3671_v41 = vpop.f32.mrf.mxu1 }
 0x15e   : > { %5136 = vst [vmem:[#allocation61_spill] sm:$0xff] %v3671_v41 }
 0x15f   : > { %1284 = vadd.xlane.f32.xlu0 %v1283_v13  ;;  %v1144_v13 = vmul.f32 %v3631_v51, %v3631_v51  ;;  %v1211_v61 = vadd.f32 %v1095_v4, %v1094_v48  ;;  %v3677_v4 = vpop.f32.mrf.mxu1  ;;  %v1097_v48 = vmul.f32 %v3669_v52, %v3669_v52 }
 0x160   : > { %5138 = vst [vmem:[#allocation63_spill] sm:$0xff] %v3677_v4 }
 0x161   : > { %1029 = vadd.xlane.f32.xlu1 %v1028_v43  ;;  %v1031_v43 = vadd.f32 %v3637_v26, %v3631_v51  ;;  %v1289_v26 = vadd.f32 %v1147_v5, %v1146_v62  ;;  %v3675_v51 = vpop.f32.mrf.mxu0  ;;  %v959_v5 = vadd.f32 %v3669_v52, %v3663_v24  ;;  %v1149_v62 = vmul.f32 %v3677_v4, %v3677_v4 }
 0x162   : > { %5137 = vst [vmem:[#allocation62_spill] sm:$0xff] %v3675_v51 }
 0x163   : > { %954 = vadd.xlane.f32.xlu0 %v953_v3  ;;  %v1286_v3 = vadd.f32 %v1145_v18, %v1144_v13  ;;  %v1034_v13 = vadd.f32 %v3659_v33, %v3647_v42  ;;  %v1096_v18 = vmul.f32 %v3663_v24, %v3663_v24 }
 0x165   : > { %1209 = vadd.xlane.f32.xlu1 %v1208_v17  ;;  %v956_v17 = vadd.f32 %v3645_v16, %v3635_v56 }
 0x167   : > { %1032 = vadd.xlane.f32.xlu0 %v1031_v43  ;;  %v3685_v43 = vpop.f32.mrf.mxu0 }
 0x168   : > { %5139 = vst [vmem:[#allocation64_spill] sm:$0xff] %v3685_v43  ;;  %v1099_v33 = vmul.f32 %v3685_v43, %v3685_v43 }
 0x169   : > { %1287 = vadd.xlane.f32.xlu1 %v1286_v3  ;;  %v3687_v3 = vpop.f32.mrf.mxu1  ;;  %v3703_v16 = vpop.f32.mrf.mxu0 }
 0x16a   : > { %5140 = vst [vmem:[#allocation65_spill] sm:$0xff] %v3687_v3  ;;  %5142 = vst [vmem:[#allocation67_spill] sm:$0xff] %v3703_v16 }
 0x16b   : > { %1212 = vadd.xlane.f32.xlu0 %v1211_v61  ;;  %v1214_v61 = vadd.f32 %v1097_v48, %v1096_v18  ;;  %v3699_v42 = vpop.f32.mrf.mxu1  ;;  %v1150_v48 = vmul.f32 %v3687_v3, %v3687_v3  ;;  %v3709_v52 = vpop.f32.mrf.mxu0 }
 0x16c   : > { %5141 = vst [vmem:[#allocation66_spill] sm:$0xff] %v3699_v42  ;;  %v1151_v56 = vmul.f32 %v3699_v42, %v3699_v42  ;;  %5143 = vst [vmem:[#allocation68_spill] sm:$0xff] %v3709_v52 }
 0x16d   : > { %957 = vadd.xlane.f32.xlu1 %v956_v17  ;;  %v1098_v17 = vmul.f32 %v3675_v51, %v3675_v51  ;;  %v3711_v24 = vpop.f32.mrf.mxu1 }
 0x16e   : > { %5144 = vst [vmem:[#allocation69_spill] sm:$0xff] %v3711_v24 }
 0x16f   : > { %1290 = vadd.xlane.f32.xlu0 %v1289_v26  ;;  %v1148_v26 = vmul.f32 %v3671_v41, %v3671_v41  ;;  %v1217_v18 = vadd.f32 %v1099_v33, %v1098_v17  ;;  %v1040_v17 = vadd.f32 %v3699_v42, %v3687_v3  ;;  %v1152_v42 = vmul.f32 %v3711_v24, %v3711_v24 }
 0x171   : > { %1035 = vadd.xlane.f32.xlu1 %v1034_v13  ;;  %v1037_v13 = vadd.f32 %v3677_v4, %v3671_v41  ;;  %v1295_v4 = vadd.f32 %v1151_v56, %v1150_v48  ;;  %v3715_v41 = vpop.f32.mrf.mxu0 }
 0x172   : > { %5145 = vst [vmem:[#allocation70_spill] sm:$0xff] %v3715_v41 }
 0x173   : > { %960 = vadd.xlane.f32.xlu0 %v959_v5  ;;  %v1292_v5 = vadd.f32 %v1149_v62, %v1148_v26  ;;  %v3721_v62 = vpop.f32.mrf.mxu1  ;;  %v3729_v56 = vpop.f32.mrf.mxu0 }
 0x174   : > { %5146 = vst [vmem:[#allocation71_spill] sm:$0xff] %v3721_v62  ;;  %5147 = vst [vmem:[#allocation72_spill] sm:$0xff] %v3729_v56  ;;  %v1103_v38 = vmul.f32 %v3729_v56, %v3729_v56 }
 0x175   : > { %1215 = vadd.xlane.f32.xlu1 %v1214_v61  ;;  %v962_v61 = vadd.f32 %v3685_v43, %v3675_v51  ;;  %v3733_v48 = vpop.f32.mrf.mxu1  ;;  %v1153_v43 = vmul.f32 %v3721_v62, %v3721_v62  ;;  %v1102_v51 = vmul.f32 %v3715_v41, %v3715_v41 }
 0x176   : > { %5148 = vst [vmem:[#allocation73_spill] sm:$0xff] %v3733_v48  ;;  %v1154_v11 = vmul.f32 %v3733_v48, %v3733_v48 }
 0x177   : > { %1038 = vadd.xlane.f32.xlu0 %v1037_v13  ;;  %v1100_v13 = vmul.f32 %v3703_v16, %v3703_v16  ;;  %v3749_v32 = vpop.f32.mrf.mxu1 }
 0x178   : > { %5149 = vst [vmem:[#allocation74_spill] sm:$0xff] %v3749_v32  ;;  %v1155_v6 = vmul.f32 %v3749_v32, %v3749_v32 }
 0x179   : > { %1293 = vadd.xlane.f32.xlu1 %v1292_v5  ;;  %v1101_v5 = vmul.f32 %v3709_v52, %v3709_v52 }
 0x17b   : > { %1218 = vadd.xlane.f32.xlu0 %v1217_v18  ;;  %v1220_v3 = vadd.f32 %v1101_v5, %v1100_v13  ;;  %v1298_v5 = vadd.f32 %v1153_v43, %v1152_v42 }
 0x17c   : > { %v3717_v26 = vpop.xlane.xlu0 %912 }
 0x17d   : > { %963 = vadd.xlane.f32.xlu1 %v962_v61  ;;  %v965_v61 = vadd.f32 %v3709_v52, %v3703_v16  ;;  %v1043_v52 = vadd.f32 %v3721_v62, %v3711_v24  ;;  %v3753_v16 = vpop.f32.mrf.mxu0  ;;  %v3767_v62 = vpop.f32.mrf.mxu1 }
 0x17e   : > { %v3719_v33 = vpop.xlane.xlu1 %1167  ;;  %5150 = vst [vmem:[#allocation75_spill] sm:$0xff] %v3753_v16  ;;  %5152 = vst [vmem:[#allocation77_spill] sm:$0xff] %v3767_v62 }
 0x17f   : > { %1296 = vadd.xlane.f32.xlu0 %v1295_v4  ;;  %v3777_v24 = vpop.f32.mrf.mxu1 }
 0x180   : > { %v3731_v18 = vpop.xlane.xlu0 %990  ;;  %5154 = vst [vmem:[#allocation79_spill] sm:$0xff] %v3777_v24  ;;  %v1157_v45 = vmul.f32 %v3777_v24, %v3777_v24 }
 0x181   : > { %1041 = vadd.xlane.f32.xlu1 %v1040_v17 }
 0x182   : > { %v3737_v4 = vpop.xlane.xlu1 %1245 }
 0x183   : > { %966 = vadd.xlane.f32.xlu0 %v965_v61  ;;  %v1223_v61 = vadd.f32 %v1103_v38, %v1102_v51  ;;  %v1301_v38 = vadd.f32 %v1155_v6, %v1154_v11 }
 0x184   : > { %v3747_v17 = vpop.xlane.xlu0 %915 }
 0x185   : > { %1221 = vadd.xlane.f32.xlu1 %v1220_v3  ;;  %v3763_v3 = vpop.f32.mrf.mxu0  ;;  %v3897_v23 = vmul.f32 0.0051020407, %v3747_v17 }
 0x186   : > { %v3755_v13 = vpop.xlane.xlu1 %993  ;;  %5151 = vst [vmem:[#allocation76_spill] sm:$0xff] %v3763_v3 }
 0x187   : > { %1044 = vadd.xlane.f32.xlu0 %v1043_v52  ;;  %v968_v52 = vadd.f32 %v3729_v56, %v3715_v41  ;;  %v3771_v51 = vpop.f32.mrf.mxu0  ;;  %v1105_v56 = vmul.f32 %v3763_v3, %v3763_v3  ;;  %v3789_v41 = vpop.f32.mrf.mxu1  ;;  %v3918_v47 = vmul.f32 0.0051020407, %v3755_v13 }
 0x188   : > { %v3761_v1 = vpop.xlane.xlu0 %1170  ;;  %5153 = vst [vmem:[#allocation78_spill] sm:$0xff] %v3771_v51  ;;  %5156 = vst [vmem:[#allocation81_spill] sm:$0xff] %v3789_v41  ;;  %v1106_v44 = vmul.f32 %v3771_v51, %v3771_v51  ;;  %v1158_v37 = vmul.f32 %v3789_v41, %v3789_v41 }
 0x189   : > { %1299 = vadd.xlane.f32.xlu1 %v1298_v5  ;;  %v1046_v5 = vadd.f32 %v3749_v32, %v3733_v48  ;;  %v3785_v6 = vpop.f32.mrf.mxu0  ;;  %v1156_v32 = vmul.f32 %v3767_v62, %v3767_v62  ;;  %v3805_v46 = vpop.f32.mrf.mxu1  ;;  %v1448_v31 = vmul.f32 %v3918_v47, %v3918_v47 }
 0x18a   : > { %v3765_v53 = vpop.xlane.xlu1 %918  ;;  %5155 = vst [vmem:[#allocation80_spill] sm:$0xff] %v3785_v6  ;;  %v1107_v34 = vmul.f32 %v3785_v6, %v3785_v6  ;;  %5157 = vst [vmem:[#allocation82_spill] sm:$0xff] %v3805_v46  ;;  %v1159_v36 = vmul.f32 %v3805_v46, %v3805_v46 }
 0x18b   : > { %1224 = vadd.xlane.f32.xlu0 %v1223_v61  ;;  %v1104_v61 = vmul.f32 %v3753_v16, %v3753_v16 }
 0x18c   : > { %v3773_v42 = vpop.xlane.xlu0 %1248 }
 0x18d   : > { %969 = vadd.xlane.f32.xlu1 %v968_v52  ;;  %v971_v52 = vadd.f32 %v3763_v3, %v3753_v16  ;;  %v1226_v48 = vadd.f32 %v1105_v56, %v1104_v61  ;;  %v1049_v3 = vadd.f32 %v3777_v24, %v3767_v62  ;;  %v3809_v16 = vpop.f32.mrf.mxu0  ;;  %v1304_v61 = vadd.f32 %v1157_v45, %v1156_v32  ;;  %v3823_v24 = vpop.f32.mrf.mxu1 }
 0x18e   : > { %v3775_v43 = vpop.xlane.xlu1 %1173  ;;  %5158 = vst [vmem:[#allocation83_spill] sm:$0xff] %v3809_v16  ;;  %5160 = vst [vmem:[#allocation85_spill] sm:$0xff] %v3823_v24  ;;  %v974_v32 = vadd.f32 %v3785_v6, %v3771_v51  ;;  %v1397_v59 = vmul.f32 0.0051020407, %v3773_v42 }
 0x18f   : > { %1302 = vadd.xlane.f32.xlu0 %v1301_v38  ;;  %v3833_v62 = vpop.f32.mrf.mxu1  ;;  %v1372_v55 = vmul.f32 0.0051020407, %v3775_v43 }
 0x190   : > { %v3787_v11 = vpop.xlane.xlu0 %996  ;;  %5162 = vst [vmem:[#allocation87_spill] sm:$0xff] %v3833_v62 }
 0x191   : > { %1047 = vadd.xlane.f32.xlu1 %v1046_v5  ;;  %v3845_v51 = vpop.f32.mrf.mxu1 }
 0x192   : > { %v3793_v38 = vpop.xlane.xlu1 %1251  ;;  %5164 = vst [vmem:[#allocation89_spill] sm:$0xff] %v3845_v51  ;;  %v1162_v63 = vmul.f32 %v3845_v51, %v3845_v51 }
 0x193   : > { %972 = vadd.xlane.f32.xlu0 %v971_v52  ;;  %v1229_v52 = vadd.f32 %v1107_v34, %v1106_v44  ;;  %v1307_v34 = vadd.f32 %v1159_v36, %v1158_v37  ;;  %v3861_v7 = vpop.f32.mrf.mxu1  ;;  %v1398_v54 = vmul.f32 0.0051020407, %v3793_v38 }
 0x194   : > { %v3803_v5 = vpop.xlane.xlu0 %1176  ;;  %5165 = vst [vmem:[#allocation90_spill] sm:$0xff] %v3861_v7  ;;  %v1163_v58 = vmul.f32 %v3861_v7, %v3861_v7  ;;  %v1058_v17 = vadd.f32 %v3861_v7, %v3845_v51 }
 0x195   : > { %1227 = vadd.xlane.f32.xlu1 %v1226_v48  ;;  %v3819_v48 = vpop.f32.mrf.mxu0 }
 0x196   : > { %v3811_v56 = vpop.xlane.xlu1 %921  ;;  %5159 = vst [vmem:[#allocation84_spill] sm:$0xff] %v3819_v48  ;;  %v1109_v6 = vmul.f32 %v3819_v48, %v3819_v48 }
 0x197   : > { %1050 = vadd.xlane.f32.xlu0 %v1049_v3  ;;  %v3827_v44 = vpop.f32.mrf.mxu0 }
 0x198   : > { %v3817_v27 = vpop.xlane.xlu0 %1254  ;;  %5161 = vst [vmem:[#allocation86_spill] sm:$0xff] %v3827_v44  ;;  %v1110_v57 = vmul.f32 %v3827_v44, %v3827_v44 }
 0x199   : > { %1305 = vadd.xlane.f32.xlu1 %v1304_v61  ;;  %v1052_v61 = vadd.f32 %v3805_v46, %v3789_v41  ;;  %v3841_v36 = vpop.f32.mrf.mxu0  ;;  %v1160_v46 = vmul.f32 %v3823_v24, %v3823_v24  ;;  %v1161_v41 = vmul.f32 %v3833_v62, %v3833_v62 }
 0x19a   : > { %v3821_v2 = vpop.xlane.xlu1 %999  ;;  %5163 = vst [vmem:[#allocation88_spill] sm:$0xff] %v3841_v36  ;;  %v1111_v50 = vmul.f32 %v3841_v36, %v3841_v36 }
 0x19b   : > { %1230 = vadd.xlane.f32.xlu0 %v1229_v52  ;;  %v1108_v52 = vmul.f32 %v3809_v16, %v3809_v16 }
 0x19c   : > { %v3829_v45 = vpop.xlane.xlu0 %924 }
 0x19d   : > { %975 = vadd.xlane.f32.xlu1 %v974_v32  ;;  %v977_v32 = vadd.f32 %v3819_v48, %v3809_v16  ;;  %v1232_v60 = vadd.f32 %v1109_v6, %v1108_v52  ;;  %v1055_v48 = vadd.f32 %v3833_v62, %v3823_v24  ;;  %v3865_v16 = vpop.f32.mrf.mxu0  ;;  %v3870_v6 = vmul.f32 0.0051020407, %v3731_v18 }
 0x19e   : > { %v3831_v3 = vpop.xlane.xlu1 %1179  ;;  %5166 = vst [vmem:[#allocation91_spill] sm:$0xff] %v3865_v16  ;;  %v1235_v52 = vadd.f32 %v1111_v50, %v1110_v57  ;;  %v3887_v50 = vmul.f32 0.0051020407, %v3717_v26  ;;  %v1396_v18 = vmul.f32 0.0051020407, %v3737_v4  ;;  %v1112_v26 = vmul.f32 %v3865_v16, %v3865_v16 }
 0x19f   : > { %1308 = vadd.xlane.f32.xlu0 %v1307_v34  ;;  %v3878_v62 = vpop.f32.mrf.mxu0  ;;  %v1447_v57 = vmul.f32 %v3870_v6, %v3870_v6 }
 0x1a0   : > { %v3843_v37 = vpop.xlane.xlu0 %1002  ;;  %5167 = vst [vmem:[#allocation92_spill] sm:$0xff] %v3878_v62  ;;  %v1113_v4 = vmul.f32 %v3878_v62, %v3878_v62 }
 0x1a1   : > { %1053 = vadd.xlane.f32.xlu1 %v1052_v61  ;;  %v3894_v30 = vpop.f32.mrf.mxu0 }
 0x1a2   : > { %v3849_v34 = vpop.xlane.xlu1 %1257  ;;  %5169 = vst [vmem:[#allocation94_spill] sm:$0xff] %v3894_v30  ;;  %v1114_v13 = vmul.f32 %v3894_v30, %v3894_v30  ;;  %v1238_v7 = vadd.f32 %v1113_v4, %v1112_v26 }
 0x1a3   : > { %978 = vadd.xlane.f32.xlu0 %v977_v32  ;;  %v1310_v32 = vadd.f32 %v1161_v41, %v1160_v46  ;;  %v980_v46 = vadd.f32 %v3841_v36, %v3827_v44  ;;  %v3884_v41 = vpop.f32.mrf.mxu1  ;;  %v3915_v12 = vpop.f32.mrf.mxu0 }
 0x1a4   : > { %v3859_v61 = vpop.xlane.xlu0 %1182  ;;  %5168 = vst [vmem:[#allocation93_spill] sm:$0xff] %v3884_v41  ;;  %5171 = vst [vmem:[#allocation96_spill] sm:$0xff] %v3915_v12  ;;  %v1164_v40 = vmul.f32 %v3884_v41, %v3884_v41 }
 0x1a5   : > { %1233 = vadd.xlane.f32.xlu1 %v1232_v60  ;;  %v3901_v44 = vpop.f32.mrf.mxu1 }
 0x1a6   : > { %v3867_v0 = vpop.xlane.xlu1 %927  ;;  %5170 = vst [vmem:[#allocation95_spill] sm:$0xff] %v3901_v44  ;;  %v1061_v26 = vadd.f32 %v3901_v44, %v3884_v41 }
 0x1a7   : > { %1056 = vadd.xlane.f32.xlu0 %v1055_v48  ;;  %v1313_v48 = vadd.f32 %v1163_v58, %v1162_v63  ;;  %v1421_v58 = vmul.f32 %v3887_v50, %v3887_v50  ;;  %v1370_v63 = vmul.f32 0.0051020407, %v3719_v33  ;;  %v1165_v33 = vmul.f32 %v3901_v44, %v3901_v44 }
 0x1a8   : > { %v3876_v60 = vpop.xlane.xlu0 %1260 }
 0x1a9   : > { %1311 = vadd.xlane.f32.xlu1 %v1310_v32  ;;  %v1472_v51 = vsub.f32 %v1370_v63, %v1421_v58  ;;  %v1316_v4 = vadd.f32 %v1165_v33, %v1164_v40 }
 0x1aa   : > { %v3880_v24 = vpop.xlane.xlu1 %1005 }
 0x1ab   : > { %1236 = vadd.xlane.f32.xlu0 %v1235_v52  ;;  %v1498_v52 = vsub.f32 %v1396_v18, %v1447_v57  ;;  %v983_v57 = vadd.f32 %v3878_v62, %v3865_v16  ;;  %v3929_v18 = vmul.f32 0.0051020407, %v3765_v53  ;;  %v1115_v62 = vmul.f32 %v3915_v12, %v3915_v12 }
 0x1ac   : > { %v3892_v32 = vpop.xlane.xlu0 %930  ;;  %v3940_v53 = vmul.f32 0.0051020407, %v3787_v11  ;;  %v1523_v63 = vmax.f32 %v1472_v51, 0.0  ;;  %v3960_v51 = vmul.f32 0.0051020407, %v3821_v2 }
 0x1ad   : > { %981 = vadd.xlane.f32.xlu1 %v980_v46  ;;  %v1371_v46 = vmul.f32 0.0051020407, %v3761_v1  ;;  %v1422_v1 = vmul.f32 %v3897_v23, %v3897_v23  ;;  %v1423_v42 = vmul.f32 %v3929_v18, %v3929_v18  ;;  %v1241_v11 = vadd.f32 %v1115_v62, %v1114_v13 }
 0x1ae   : > { %v3899_v36 = vpop.xlane.xlu1 %1185  ;;  %v1574_v40 = vadd.f32 1e-05, %v1523_v63  ;;  %v1450_v2 = vmul.f32 %v3960_v51, %v3960_v51  ;;  %v3977_v63 = vmul.f32 0.0051020407, %v3829_v45  ;;  %v1373_v45 = vmul.f32 0.0051020407, %v3803_v5 }
 0x1af   : > { %1314 = vadd.xlane.f32.xlu0 %v1313_v48  ;;  %v1473_v16 = vsub.f32 %v1371_v46, %v1422_v1  ;;  %v1449_v1 = vmul.f32 %v3940_v53, %v3940_v53 }
 0x1b0   : > { %v3913_v21 = vpop.xlane.xlu0 %1008 }
 0x1b1   : > { %1059 = vadd.xlane.f32.xlu1 %v1058_v17  ;;  %v1549_v17 = vmax.f32 %v1498_v52, 0.0  ;;  %v1499_v52 = vsub.f32 %v1397_v59, %v1448_v31  ;;  %v1524_v46 = vmax.f32 %v1473_v16, 0.0  ;;  %v986_v31 = vadd.f32 %v3915_v12, %v3894_v30  ;;  %v1677_v12 = vld [vmem:[%s4003_s20 + $0x8] sm:$0xff] }
 0x1b2   : > { %v3931_v48 = vpop.xlane.xlu1 %1263  ;;  %v1500_v16 = vsub.f32 %v1398_v54, %v1449_v1  ;;  %v1399_v54 = vmul.f32 0.0051020407, %v3817_v27  ;;  %v1374_v27 = vmul.f32 0.0051020407, %v3831_v3  ;;  %v3991_v1 = vmul.f32 0.0051020407, %v3843_v37 }
 0x1b3   : > { %984 = vadd.xlane.f32.xlu0 %v983_v57  ;;  %v1600_v43 = vadd.f32 1e-05, %v1549_v17  ;;  %v1474_v57 = vsub.f32 %v1372_v55, %v1423_v42  ;;  %v1550_v33 = vmax.f32 %v1499_v52, 0.0  ;;  %v1575_v55 = vadd.f32 1e-05, %v1524_v46 }
 0x1b4   : > { %v3942_v39 = vpop.xlane.xlu0 %1188  ;;  %v3971_v42 = vmul.f32 0.0051020407, %v3811_v56  ;;  %v1501_v52 = vsub.f32 %v1399_v54, %v1450_v2  ;;  %v1425_v56 = vmul.f32 %v3977_v63, %v3977_v63 }
 0x1b5   : > { %1239 = vadd.xlane.f32.xlu1 %v1238_v7  ;;  %2940 = vrsqrt.f32 %v1600_v43  ;;  %v1525_v59 = vmax.f32 %v1474_v57, 0.0  ;;  %v1601_v13 = vadd.f32 1e-05, %v1550_v33 }
 0x1b6   : > { %v3950_v58 = vpop.xlane.xlu1 %933  ;;  %2942 = vrsqrt.f32 %v1574_v40  ;;  %v1424_v46 = vmul.f32 %v3971_v42, %v3971_v42  ;;  %v1552_v33 = vmax.f32 %v1501_v52, 0.0 }
 0x1b7   : > { %1062 = vadd.xlane.f32.xlu0 %v1061_v26  ;;  %2944 = vrsqrt.f32 %v1575_v55  ;;  %v1576_v17 = vadd.f32 1e-05, %v1525_v59  ;;  %v1551_v26 = vmax.f32 %v1500_v16, 0.0  ;;  %v1476_v55 = vsub.f32 %v1374_v27, %v1425_v56  ;;  %v1702_v59 = vld [vmem:[%s4003_s20 + $0xd0] sm:$0xff] }
 0x1b8   : > { %v3955_v44 = vpop.xlane.xlu0 %1266  ;;  %2946 = vrsqrt.f32 %v1601_v13  ;;  %v1475_v3 = vsub.f32 %v1373_v45, %v1424_v46  ;;  %v1400_v16 = vmul.f32 0.0051020407, %v3849_v34  ;;  %v1603_v2 = vadd.f32 1e-05, %v1552_v33  ;;  %v1676_v46 = vld [vmem:[%s4003_s20] sm:$0xff] }
 0x1b9   : > { %1317 = vadd.xlane.f32.xlu1 %v1316_v4  ;;  %2948 = vrsqrt.f32 %v1576_v17  ;;  %v1527_v27 = vmax.f32 %v1476_v55, 0.0  ;;  %v1401_v45 = vmul.f32 0.0051020407, %v3876_v60  ;;  %v4020_v34 = vmul.f32 0.0051020407, %v3892_v32 }
 0x1ba   : > { %v3957_v7 = vpop.xlane.xlu1 %1011  ;;  %v1526_v54 = vmax.f32 %v1475_v3, 0.0 }
 0x1bb   : > { %1242 = vadd.xlane.f32.xlu0 %v1241_v11  ;;  %v1602_v11 = vadd.f32 1e-05, %v1551_v26  ;;  %v1578_v60 = vadd.f32 1e-05, %v1527_v27  ;;  %v1427_v32 = vmul.f32 %v4020_v34, %v4020_v34 }
 0x1bc   : > { %v3964_v62 = vpop.xlane.xlu0 %936 }
 0x1bd   : > { %987 = vadd.xlane.f32.xlu1 %v986_v31  ;;  %v3996_v31 = vmul.f32 0.0051020407, %v3880_v24  ;;  %2950 = vrsqrt.f32 %v1602_v11  ;;  %v1451_v24 = vmul.f32 %v3991_v1, %v3991_v1 }
 0x1be   : > { %v3966_v38 = vpop.xlane.xlu1 %1191  ;;  %2952 = vrsqrt.f32 %v1603_v2 }
 0x1bf   : > { %v1452_v17 = vmul.f32 %v3996_v31, %v3996_v31  ;;  %v1502_v33 = vsub.f32 %v1400_v16, %v1451_v24  ;;  %v1376_v24 = vmul.f32 0.0051020407, %v3899_v36  ;;  %v1678_v16 = vld [vmem:[%s4003_s20 + $0x10] sm:$0xff]  ;;  %v4049_v36 = vmul.f32 0.0051020407, %v3867_v0 }
 0x1c0   : > { %v3973_v4 = vpop.xlane.xlu0 %1014 }
 0x1c1   : > { %v1503_v3 = vsub.f32 %v1401_v45, %v1452_v17  ;;  %v1553_v2 = vmax.f32 %v1502_v33, 0.0  ;;  %v1478_v28 = vsub.f32 %v1376_v24, %v1427_v32  ;;  %v1804_v24 = vld [vmem:[%s4033_s25 + $0xd0] sm:$0xff] }
 0x1c2   : > { %v3979_v43 = vpop.xlane.xlu1 %1269  ;;  %v2941_v37 = vpop.eup %2940 }
 0x1c3   : > { %v2943_v26 = vpop.eup %2942  ;;  %v1753_v11 = vmul.f32 %v2941_v37, %v1702_v59  ;;  %v1577_v59 = vadd.f32 1e-05, %v1526_v54  ;;  %v4045_v54 = vmul.f32 0.0051020407, %v3957_v7  ;;  %v1604_v22 = vadd.f32 1e-05, %v1553_v2 }
 0x1c4   : > { %v3983_v57 = vpop.xlane.xlu0 %1194  ;;  %v2945_v56 = vpop.eup %2944  ;;  %v1727_v41 = vmul.f32 %v2943_v26, %v1676_v46  ;;  %v1554_v26 = vmax.f32 %v1503_v3, 0.0  ;;  %v1704_v3 = vld [vmem:[%s4003_s20 + $0xe0] sm:$0xff]  ;;  %v1403_v2 = vmul.f32 0.0051020407, %v3955_v44 }
 0x1c5   : > { %v2947_v37 = vpop.eup %2946  ;;  %v1728_v55 = vmul.f32 %v2945_v56, %v1677_v12  ;;  %v4040_v12 = vmul.f32 0.0051020407, %v3913_v21  ;;  %2954 = vrsqrt.f32 %v1577_v59  ;;  %v1778_v21 = vld [vmem:[%s4033_s25] sm:$0xff]  ;;  %v1426_v59 = vmul.f32 %v4049_v36, %v4049_v36 }
 0x1c6   : > { %v3993_v40 = vpop.xlane.xlu1 %939  ;;  %v2949_v29 = vpop.eup %2948  ;;  %v1754_v46 = vmul.f32 %v2947_v37, %v1703_v35  ;;  %v1829_v56 = vmul.f32 %v1727_v41, %v3887_v50  ;;  %2956 = vrsqrt.f32 %v1578_v60  ;;  %v1605_v0 = vadd.f32 1e-05, %v1554_v26  ;;  %v1779_v26 = vld [vmem:[%s4033_s25 + $0x8] sm:$0xff] }
 0x1c7   : > { %v1729_v45 = vmul.f32 %v2949_v29, %v1678_v16  ;;  %v1453_v35 = vmul.f32 %v4040_v12, %v4040_v12  ;;  %v1454_v29 = vmul.f32 %v4045_v54, %v4045_v54  ;;  %v1855_v37 = vmul.f32 %v1753_v11, %v3870_v6 }
 0x1c8   : > { %v4005_v5 = vpop.xlane.xlu0 %1272  ;;  %v1880_v7 = vsub.f32 %v1778_v21, %v1829_v56  ;;  %v1529_v16 = vmax.f32 %v1478_v28, 0.0  ;;  %2958 = vrsqrt.f32 %v1604_v22  ;;  %v1375_v56 = vmul.f32 0.0051020407, %v3859_v61  ;;  %v1805_v61 = vld [vmem:[%s4033_s25 + $0xd8] sm:$0xff] }
 0x1c9   : > { %2960 = vrsqrt.f32 %v1605_v0  ;;  %v1505_v21 = vsub.f32 %v1403_v2, %v1454_v29  ;;  %v4081_v0 = vmul.f32 0.0051020407, %v3964_v62 }
 0x1ca   : > { %v4011_v13 = vpop.xlane.xlu1 %1017  ;;  %v2951_v33 = vpop.eup %2950  ;;  %v1580_v22 = vadd.f32 1e-05, %v1529_v16  ;;  %v1680_v16 = vld [vmem:[%s4003_s20 + $0x20] sm:$0xff] }
 0x1cb   : > { %v1755_v32 = vmul.f32 %v2951_v33, %v1704_v3  ;;  %v1906_v33 = vsub.f32 %v1804_v24, %v1855_v37  ;;  %v2953_v3 = vpop.eup %2952 }
 0x1cc   : > { %v4015_v52 = vpop.xlane.xlu0 %942  ;;  %v4086_v37 = vmul.f32 %v2953_v3, %v1705_v25  ;;  %2962 = vrsqrt.f32 %v1580_v22  ;;  %v1429_v25 = vmul.f32 %v4081_v0, %v4081_v0  ;;  %v4107_v3 = vmul.f32 0.0051020407, %v4011_v13 }
 0x1cd   : > { %v1404_v13 = vmul.f32 0.0051020407, %v3979_v43  ;;  %v1706_v43 = vld [vmem:[%s4003_s20 + $0xf0] sm:$0xff] }
 0x1ce   : > { %v4023_v30 = vpop.xlane.xlu1 %1197  ;;  %2063 = vperm.xlu1 %2939, %v1753_v11  }
 0x1d0   : > { %v4025_v49 = vpop.xlane.xlu0 %1020 }
 0x1d1   : > { %1933 = vperm.xlu0 %2938, %v1727_v41   ;;  %v1402_v41 = vmul.f32 0.0051020407, %v3931_v48  ;;  %v1830_v48 = vmul.f32 %v1728_v55, %v3897_v23  ;;  %v1477_v23 = vsub.f32 %v1375_v56, %v1426_v59  ;;  %v1556_v59 = vmax.f32 %v1505_v21, 0.0 }
 0x1d2   : > { %v4042_v17 = vpop.xlane.xlu1 %1275  ;;  %1938 = vperm.xlu1 %2939, %v1728_v55   ;;  %v1856_v55 = vmul.f32 %v1754_v46, %v3918_v47  ;;  %v4089_v47 = vmul.f32 0.0051020407, %v3993_v40  ;;  %v1378_v40 = vmul.f32 0.0051020407, %v3966_v38  ;;  %v4100_v56 = vmul.f32 0.0051020407, %v3973_v4 }
 0x1d3   : > { %v1504_v6 = vsub.f32 %v1402_v41, %v1453_v35  ;;  %v1881_v44 = vsub.f32 %v1779_v26, %v1830_v48  ;;  %v1831_v35 = vmul.f32 %v1729_v45, %v3929_v18  ;;  %v2955_v18 = vpop.eup %2954  ;;  %v1607_v21 = vadd.f32 1e-05, %v1556_v59  ;;  %v1806_v38 = vld [vmem:[%s4033_s25 + $0xe0] sm:$0xff] }
 0x1d4   : > { %v4051_v27 = vpop.xlane.xlu0 %1200  ;;  %v1907_v48 = vsub.f32 %v1805_v61, %v1856_v55  ;;  %v2957_v2 = vpop.eup %2956  ;;  %v1379_v4 = vmul.f32 0.0051020407, %v3983_v57  ;;  %v1456_v57 = vmul.f32 %v4107_v3, %v4107_v3 }
 0x1d5   : > { %2068 = vperm.xlu0 %2938, %v1754_v46   ;;  %v1555_v41 = vmax.f32 %v1504_v6, 0.0  ;;  %v1528_v46 = vmax.f32 %v1477_v23, 0.0  ;;  %v1857_v23 = vmul.f32 %v1755_v32, %v3940_v53  ;;  %v1731_v61 = vmul.f32 %v2957_v2, %v1680_v16  ;;  %v2959_v53 = vpop.eup %2958 }
 0x1d6   : > { %v4058_v50 = vpop.xlane.xlu1 %945  ;;  %1943 = vperm.xlu1 %2939, %v1729_v45   ;;  %v1679_v45 = vld [vmem:[%s4003_s20 + $0x18] sm:$0xff] }
 0x1d7   : > { %v1606_v26 = vadd.f32 1e-05, %v1555_v41  ;;  %v1579_v55 = vadd.f32 1e-05, %v1528_v46  ;;  %v1455_v41 = vmul.f32 %v4100_v56, %v4100_v56  ;;  %v1908_v59 = vsub.f32 %v1806_v38, %v1857_v23  ;;  %v2961_v46 = vpop.eup %2960  ;;  %v1782_v38 = vld [vmem:[%s4033_s25 + $0x20] sm:$0xff] }
 0x1d8   : > { %v4065_v60 = vpop.xlane.xlu0 %1278 }
 0x1d9   : > { %2290 = vperm.xlu0 %2938, %v1880_v7   ;;  %v1780_v7 = vld [vmem:[%s4033_s25 + $0x10] sm:$0xff]  ;;  %2964 = vrsqrt.f32 %v1606_v26  ;;  %v1506_v2 = vsub.f32 %v1404_v13, %v1455_v41  ;;  %v2963_v41 = vpop.eup %2962 }
 0x1da   : > { %v4072_v11 = vpop.xlane.xlu1 %1023  ;;  %2073 = vperm.xlu1 %2939, %v1755_v32   ;;  %v1882_v62 = vsub.f32 %v1780_v7, %v1831_v35  ;;  %v1480_v35 = vsub.f32 %v1378_v40, %v1429_v25  ;;  %2966 = vrsqrt.f32 %v1607_v21  ;;  %v1833_v25 = vmul.f32 %v1731_v61, %v3977_v63 }
 0x1db   : > { %2968 = vrsqrt.f32 %v1579_v55  ;;  %v1377_v63 = vmul.f32 0.0051020407, %v3942_v39  ;;  %v1557_v13 = vmax.f32 %v1506_v2, 0.0  ;;  %v1380_v2 = vmul.f32 0.0051020407, %v4023_v30  ;;  %v1708_v30 = vld [vmem:[%s4003_s20 + $0x100] sm:$0xff] }
 0x1dc   : > { %v4075_v28 = vpop.xlane.xlu0 %948  ;;  %v1531_v16 = vmax.f32 %v1480_v35, 0.0  ;;  %v1858_v35 = vmul.f32 %v4086_v37, %v3960_v51 }
 0x1dd   : > { %2420 = vperm.xlu0 %2938, %v1906_v33   ;;  %v1430_v33 = vmul.f32 %v4089_v47, %v4089_v47 }
 0x1de   : > { %v4083_v29 = vpop.xlane.xlu1 %1203  ;;  %2295 = vperm.xlu1 %2939, %v1881_v44   ;;  %v1730_v44 = vmul.f32 %v2955_v18, %v1679_v45  ;;  %v4123_v18 = vmul.f32 0.0051020407, %v3950_v58 }
 0x1df   : > { %v1481_v32 = vsub.f32 %v1379_v4, %v1430_v33  ;;  %v1757_v33 = vmul.f32 %v2959_v53, %v1706_v43  ;;  %v1781_v4 = vld [vmem:[%s4033_s25 + $0x18] sm:$0xff]  ;;  %v4150_v53 = vmul.f32 0.0051020407, %v4058_v50 }
 0x1e0   : > { %v4091_v24 = vpop.xlane.xlu0 %1026  ;;  %v1832_v23 = vmul.f32 %v1730_v44, %v3971_v42  ;;  %v1428_v55 = vmul.f32 %v4123_v18, %v4123_v18  ;;  %v1807_v42 = vld [vmem:[%s4033_s25 + $0xe8] sm:$0xff] }
 0x1e1   : > { %2078 = vperm.xlu0 %2938, %v4086_v37   ;;  %v1532_v58 = vmax.f32 %v1481_v32, 0.0  ;;  %v1884_v37 = vsub.f32 %v1782_v38, %v1833_v25  ;;  %v1859_v39 = vmul.f32 %v1757_v33, %v3991_v1  ;;  %v1909_v50 = vsub.f32 %v1807_v42, %v1858_v35  ;;  %v1709_v35 = vld [vmem:[%s4003_s20 + $0x108] sm:$0xff] }
 0x1e2   : > { %v4102_v6 = vpop.xlane.xlu1 %1281  ;;  %2425 = vperm.xlu1 %2939, %v1907_v48   ;;  %v1707_v48 = vld [vmem:[%s4003_s20 + $0xf8] sm:$0xff]  ;;  %v1608_v1 = vadd.f32 1e-05, %v1557_v13  ;;  %v1432_v25 = vmul.f32 %v4150_v53, %v4150_v53  ;;  %v1406_v42 = vmul.f32 0.0051020407, %v4042_v17 }
 0x1e3   : > { %v4132_v40 = vmul.f32 %v2961_v46, %v1707_v48  ;;  %v1479_v46 = vsub.f32 %v1377_v63, %v1428_v55  ;;  %v4157_v48 = vmul.f32 0.0051020407, %v4025_v49 }
 0x1e4   : > { %v4110_v22 = vpop.xlane.xlu0 %1206 }
 0x1e5   : > { %2300 = vperm.xlu0 %2938, %v1882_v62   ;;  %v1405_v62 = vmul.f32 0.0051020407, %v4005_v5  ;;  %v1457_v63 = vmul.f32 %v4157_v48, %v4157_v48 }
 0x1e6   : > { %v4117_v7 = vpop.xlane.xlu1 %951  ;;  %1948 = vperm.xlu1 %2939, %v1730_v44   ;;  %v1582_v44 = vadd.f32 1e-05, %v1531_v16 }
 0x1e7   : > { %v1507_v21 = vsub.f32 %v1405_v62, %v1456_v57  ;;  %v1583_v57 = vadd.f32 1e-05, %v1532_v58  ;;  %v1808_v62 = vld [vmem:[%s4033_s25 + $0xf0] sm:$0xff] }
 0x1e8   : > { %v4125_v45 = vpop.xlane.xlu0 %1284  ;;  %2970 = vrsqrt.f32 %v1582_v44  ;;  %v1910_v55 = vsub.f32 %v1808_v62, %v1859_v39  ;;  %v1381_v44 = vmul.f32 0.0051020407, %v4051_v27  ;;  %v1508_v62 = vsub.f32 %v1406_v42, %v1457_v63 }
 0x1e9   : > { %2430 = vperm.xlu0 %2938, %v1908_v59   ;;  %v1558_v51 = vmax.f32 %v1507_v21, 0.0  ;;  %v1883_v59 = vsub.f32 %v1781_v4, %v1832_v23  ;;  %v2965_v21 = vpop.eup %2964  ;;  %2972 = vrsqrt.f32 %v1583_v57  ;;  %v4170_v23 = vmul.f32 0.0051020407, %v4072_v11  ;;  %v1681_v57 = vld [vmem:[%s4003_s20 + $0x28] sm:$0xff] }
 0x1ea   : > { %v4129_v26 = vpop.xlane.xlu1 %1029  ;;  %1953 = vperm.xlu1 %2939, %v1731_v61   ;;  %v4145_v61 = vmul.f32 0.0051020407, %v4015_v52  ;;  %v1682_v52 = vld [vmem:[%s4003_s20 + $0x30] sm:$0xff]  ;;  %v2967_v38 = vpop.eup %2966  ;;  %v1530_v4 = vmax.f32 %v1479_v46, 0.0  ;;  %2974 = vrsqrt.f32 %v1608_v1  ;;  %v1483_v11 = vsub.f32 %v1381_v44, %v1432_v25 }
 0x1eb   : > { %v1733_v49 = vmul.f32 %v2963_v41, %v1682_v52  ;;  %v2969_v41 = vpop.eup %2968  ;;  %v4184_v52 = vmul.f32 %v2967_v38, %v1709_v35  ;;  %v1458_v17 = vmul.f32 %v4170_v23, %v4170_v23  ;;  %v1759_v27 = vmul.f32 %v2965_v21, %v1708_v30 }
 0x1ec   : > { %v4137_v5 = vpop.xlane.xlu0 %954  ;;  %v1431_v16 = vmul.f32 %v4145_v61, %v4145_v61  ;;  %v1581_v46 = vadd.f32 1e-05, %v1530_v4  ;;  %v1407_v25 = vmul.f32 0.0051020407, %v4065_v60  ;;  %v1559_v30 = vmax.f32 %v1508_v62, 0.0  ;;  %v1810_v4 = vld [vmem:[%s4033_s25 + $0x100] sm:$0xff] }
 0x1ed   : > { %2088 = vperm.xlu0 %2938, %v4132_v40   ;;  %v1835_v39 = vmul.f32 %v1733_v49, %v4020_v34  ;;  %v1534_v34 = vmax.f32 %v1483_v11, 0.0  ;;  %v1861_v21 = vmul.f32 %v1759_v27, %v4040_v12  ;;  %v4200_v60 = vmul.f32 0.0051020407, %v4075_v28  ;;  %v1783_v28 = vld [vmem:[%s4033_s25 + $0x28] sm:$0xff] }
 0x1ee   : > { %v4152_v32 = vpop.xlane.xlu1 %1209  ;;  %2083 = vperm.xlu1 %2939, %v1757_v33   ;;  %v1609_v33 = vadd.f32 1e-05, %v1558_v51  ;;  %v1482_v51 = vsub.f32 %v1380_v2, %v1431_v16  ;;  %v1784_v2 = vld [vmem:[%s4033_s25 + $0x30] sm:$0xff]  ;;  %v4205_v12 = vmul.f32 0.0051020407, %v4117_v7 }
 0x1ef   : > { %v1585_v63 = vadd.f32 1e-05, %v1534_v34  ;;  %v4217_v7 = vmul.f32 0.0051020407, %v4091_v24  ;;  %v1710_v24 = vld [vmem:[%s4003_s20 + $0x110] sm:$0xff] }
 0x1f0   : > { %v4159_v43 = vpop.xlane.xlu0 %1032  ;;  %2976 = vrsqrt.f32 %v1609_v33  ;;  %v1533_v1 = vmax.f32 %v1482_v51, 0.0  ;;  %v1509_v33 = vsub.f32 %v1407_v25, %v1458_v17  ;;  %v1684_v51 = vld [vmem:[%s4003_s20 + $0x40] sm:$0xff]  ;;  %v1685_v17 = vld [vmem:[%s4003_s20 + $0x48] sm:$0xff] }
 0x1f1   : > { %2310 = vperm.xlu0 %2938, %v1884_v37   ;;  %2978 = vrsqrt.f32 %v1581_v46  ;;  %v1610_v46 = vadd.f32 1e-05, %v1559_v30  ;;  %v1860_v30 = vmul.f32 %v4132_v40, %v3996_v31 }
 0x1f2   : > { %v4167_v58 = vpop.xlane.xlu1 %1287  ;;  %2305 = vperm.xlu1 %2939, %v1883_v59   ;;  %v1732_v59 = vmul.f32 %v2969_v41, %v1681_v57  ;;  %v1584_v35 = vadd.f32 1e-05, %v1533_v1  ;;  %v1560_v41 = vmax.f32 %v1509_v33, 0.0  ;;  %v1912_v57 = vsub.f32 %v1810_v4, %v1861_v21  ;;  %v1711_v4 = vld [vmem:[%s4003_s20 + $0x118] sm:$0xff] }
 0x1f3   : > { %v1434_v33 = vmul.f32 %v4205_v12, %v4205_v12 }
 0x1f4   : > { %v4178_v13 = vpop.xlane.xlu0 %1212  ;;  %2980 = vrsqrt.f32 %v1584_v35  ;;  %v1611_v34 = vadd.f32 1e-05, %v1560_v41  ;;  %v1809_v35 = vld [vmem:[%s4033_s25 + $0xf8] sm:$0xff]  ;;  %v1383_v41 = vmul.f32 0.0051020407, %v4110_v22  ;;  %v1786_v22 = vld [vmem:[%s4033_s25 + $0x40] sm:$0xff] }
 0x1f5   : > { %2440 = vperm.xlu0 %2938, %v1910_v55   ;;  %v1886_v55 = vsub.f32 %v1784_v2, %v1835_v39  ;;  %v2971_v44 = vpop.eup %2970  ;;  %v1834_v39 = vmul.f32 %v1732_v59, %v4049_v36  ;;  %v1382_v2 = vmul.f32 0.0051020407, %v4083_v29  ;;  %2982 = vrsqrt.f32 %v1585_v63 }
 0x1f6   : > { %v4181_v37 = vpop.xlane.xlu1 %957  ;;  %2435 = vperm.xlu1 %2939, %v1909_v50   ;;  %v2973_v11 = vpop.eup %2972  ;;  %v4228_v29 = vmul.f32 0.0051020407, %v4129_v26  ;;  %2984 = vrsqrt.f32 %v1610_v46  ;;  %v1408_v26 = vmul.f32 0.0051020407, %v4102_v6  ;;  %v1911_v6 = vsub.f32 %v1809_v35, %v1860_v30 }
 0x1f7   : > { %v2975_v1 = vpop.eup %2974  ;;  %v4223_v25 = vmul.f32 %v2973_v11, %v1685_v17  ;;  %v1885_v21 = vsub.f32 %v1783_v28, %v1834_v39  ;;  %2986 = vrsqrt.f32 %v1611_v34  ;;  %v1485_v11 = vsub.f32 %v1383_v41, %v1434_v33  ;;  %v1683_v28 = vld [vmem:[%s4003_s20 + $0x38] sm:$0xff]  ;;  %v1686_v41 = vld [vmem:[%s4003_s20 + $0x50] sm:$0xff] }
 0x1f8   : > { %v4188_v16 = vpop.xlane.xlu0 %1290  ;;  %v4246_v40 = vmul.f32 %v2975_v1, %v1710_v24  ;;  %v1460_v39 = vmul.f32 %v4228_v29, %v4228_v29 }
 0x1f9   : > { %2098 = vperm.xlu0 %2938, %v4184_v52   ;;  %v1536_v34 = vmax.f32 %v1485_v11, 0.0 }
 0x1fa   : > { %v4193_v50 = vpop.xlane.xlu1 %1035  ;;  %1958 = vperm.xlu1 %2939, %v1732_v59   ;;  %v4221_v59 = vmul.f32 %v2971_v44, %v1684_v51  ;;  %v1459_v44 = vmul.f32 %v4217_v7, %v4217_v7 }
 0x1fc   : > { %v4196_v38 = vpop.xlane.xlu0 %960  ;;  %v1837_v31 = vmul.f32 %v4221_v59, %v4081_v0  ;;  %v1409_v0 = vmul.f32 0.0051020407, %v4125_v45 }
 0x1fd   : > { %2320 = vperm.xlu0 %2938, %v1886_v55   ;;  %v2977_v55 = vpop.eup %2976 }
 0x1fe   : > { %v4202_v42 = vpop.xlane.xlu1 %1215  ;;  %1963 = vperm.xlu1 %2939, %v1733_v49   ;;  %v1433_v49 = vmul.f32 %v4200_v60, %v4200_v60  ;;  %v4248_v51 = vmul.f32 %v2977_v55, %v1711_v4  ;;  %v2979_v46 = vpop.eup %2978  ;;  %v1511_v33 = vsub.f32 %v1409_v0, %v1460_v39  ;;  %v1888_v24 = vsub.f32 %v1786_v22, %v1837_v31  ;;  %v1812_v4 = vld [vmem:[%s4033_s25 + $0x110] sm:$0xff]  ;;  %v1687_v31 = vld [vmem:[%s4003_s20 + $0x58] sm:$0xff] }
 0x1ff   : > { %v1863_v55 = vmul.f32 %v4246_v40, %v4100_v56  ;;  %v1587_v39 = vadd.f32 1e-05, %v1536_v34  ;;  %v1384_v34 = vmul.f32 0.0051020407, %v4152_v32  ;;  %v1713_v32 = vld [vmem:[%s4003_s20 + $0x128] sm:$0xff] }
 0x200   : > { %v4210_v62 = vpop.xlane.xlu0 %1038  ;;  %v1484_v63 = vsub.f32 %v1382_v2, %v1433_v49  ;;  %v1510_v2 = vsub.f32 %v1408_v26, %v1459_v44  ;;  %v4266_v44 = vmul.f32 0.0051020407, %v4137_v5  ;;  %v1562_v56 = vmax.f32 %v1511_v33, 0.0 }
 0x201   : > { %2450 = vperm.xlu0 %2938, %v1912_v57   ;;  %v2981_v45 = vpop.eup %2980  ;;  %v1914_v22 = vsub.f32 %v1812_v4, %v1863_v55 }
 0x202   : > { %v4219_v36 = vpop.xlane.xlu1 %1293  ;;  %2093 = vperm.xlu1 %2939, %v1759_v27   ;;  %v1535_v49 = vmax.f32 %v1484_v63, 0.0  ;;  %v1561_v63 = vmax.f32 %v1510_v2, 0.0  ;;  %v2983_v11 = vpop.eup %2982  ;;  %v4277_v5 = vmul.f32 %v2981_v45, %v1686_v41  ;;  %v1435_v0 = vmul.f32 %v4266_v44, %v4266_v44 }
 0x203   : > { %v4279_v2 = vmul.f32 %v2983_v11, %v1687_v31  ;;  %v1613_v55 = vadd.f32 1e-05, %v1562_v56  ;;  %v1385_v11 = vmul.f32 0.0051020407, %v4178_v13 }
 0x204   : > { %v4234_v27 = vpop.xlane.xlu0 %1218  ;;  %v1586_v35 = vadd.f32 1e-05, %v1535_v49  ;;  %v1612_v49 = vadd.f32 1e-05, %v1561_v63 }
 0x205   : > { %1978 = vperm.xlu0 %2938, %v4223_v25  }
 0x206   : > { %v4242_v57 = vpop.xlane.xlu1 %963  ;;  %2315 = vperm.xlu1 %2939, %v1885_v21   ;;  %v1734_v21 = vmul.f32 %v2979_v46, %v1683_v28  ;;  %v2985_v28 = vpop.eup %2984  ;;  %2988 = vrsqrt.f32 %v1586_v35  ;;  %v4294_v35 = vmul.f32 0.0051020407, %v4193_v50  ;;  %v1486_v50 = vsub.f32 %v1384_v34, %v1435_v0  ;;  %v1788_v0 = vld [vmem:[%s4033_s25 + $0x50] sm:$0xff] }
 0x207   : > { %2990 = vrsqrt.f32 %v1587_v39  ;;  %v2987_v63 = vpop.eup %2986  ;;  %v1411_v34 = vmul.f32 0.0051020407, %v4188_v16  ;;  %v4333_v16 = vmul.f32 0.0051020407, %v4196_v38 }
 0x208   : > { %v4252_v17 = vpop.xlane.xlu0 %1296  ;;  %v1836_v45 = vmul.f32 %v1734_v21, %v4123_v18  ;;  %2992 = vrsqrt.f32 %v1612_v49  ;;  %v4313_v13 = vmul.f32 %v2987_v63, %v1713_v32 }
 0x209   : > { %2108 = vperm.xlu0 %2938, %v4248_v51   ;;  %2994 = vrsqrt.f32 %v1613_v55  ;;  %v1437_v38 = vmul.f32 %v4333_v16, %v4333_v16 }
 0x20a   : > { %v4258_v1 = vpop.xlane.xlu1 %1041  ;;  %2445 = vperm.xlu1 %2939, %v1911_v6   ;;  %v4273_v6 = vmul.f32 0.0051020407, %v4181_v37  ;;  %v4285_v37 = vmul.f32 0.0051020407, %v4159_v43  ;;  %v1785_v43 = vld [vmem:[%s4033_s25 + $0x38] sm:$0xff] }
 0x20c   : > { %v4262_v30 = vpop.xlane.xlu0 %966  ;;  %v1436_v4 = vmul.f32 %v4273_v6, %v4273_v6  ;;  %v1461_v18 = vmul.f32 %v4285_v37, %v4285_v37 }
 0x20d   : > { %2330 = vperm.xlu0 %2938, %v1888_v24   ;;  %v1712_v24 = vld [vmem:[%s4003_s20 + $0x120] sm:$0xff] }
 0x20e   : > { %v4268_v26 = vpop.xlane.xlu1 %1221  ;;  %1968 = vperm.xlu1 %2939, %v1734_v21   ;;  %v4305_v31 = vmul.f32 %v2985_v28, %v1712_v24  ;;  %v1410_v21 = vmul.f32 0.0051020407, %v4167_v58  ;;  %v1487_v56 = vsub.f32 %v1385_v11, %v1436_v4  ;;  %v1862_v28 = vmul.f32 %v4184_v52, %v4045_v54  ;;  %v1811_v58 = vld [vmem:[%s4033_s25 + $0x108] sm:$0xff] }
 0x210   : > { %v4275_v46 = vpop.xlane.xlu0 %1044  ;;  %v1512_v24 = vsub.f32 %v1410_v21, %v1461_v18  ;;  %v1538_v4 = vmax.f32 %v1487_v56, 0.0  ;;  %v1865_v54 = vmul.f32 %v4305_v31, %v4157_v48  ;;  %v1913_v52 = vsub.f32 %v1811_v58, %v1862_v28 }
 0x211   : > { %2460 = vperm.xlu0 %2938, %v1914_v22   ;;  %v1887_v22 = vsub.f32 %v1785_v43, %v1836_v45  ;;  %v1814_v43 = vld [vmem:[%s4033_s25 + $0x120] sm:$0xff]  ;;  %v4336_v21 = vmul.f32 0.0051020407, %v4242_v57 }
 0x212   : > { %v4287_v33 = vpop.xlane.xlu1 %1299  ;;  %1973 = vperm.xlu1 %2939, %v4221_v59   ;;  %v1839_v59 = vmul.f32 %v4277_v5, %v4145_v61  ;;  %v1462_v61 = vmul.f32 %v4294_v35, %v4294_v35  ;;  %v1563_v18 = vmax.f32 %v1512_v24, 0.0  ;;  %v1589_v48 = vadd.f32 1e-05, %v1538_v4 }
 0x213   : > { %v2989_v11 = vpop.eup %2988  ;;  %v4350_v24 = vmul.f32 0.0051020407, %v4210_v62  ;;  %v1438_v4 = vmul.f32 %v4336_v21, %v4336_v21  ;;  %v1838_v62 = vmul.f32 %v4223_v25, %v4089_v47  ;;  %v1412_v47 = vmul.f32 0.0051020407, %v4219_v36  ;;  %v1790_v36 = vld [vmem:[%s4033_s25 + $0x60] sm:$0xff] }
 0x214   : > { %v4298_v41 = vpop.xlane.xlu0 %1224  ;;  %v1513_v63 = vsub.f32 %v1411_v34, %v1462_v61  ;;  %v1890_v45 = vsub.f32 %v1788_v0, %v1839_v59  ;;  %v1688_v59 = vld [vmem:[%s4003_s20 + $0x60] sm:$0xff]  ;;  %v2991_v28 = vpop.eup %2990  ;;  %v1689_v0 = vld [vmem:[%s4003_s20 + $0x68] sm:$0xff]  ;;  %v1386_v34 = vmul.f32 0.0051020407, %v4202_v42 }
 0x215   : > { %1988 = vperm.xlu0 %2938, %v4279_v2   ;;  %v4347_v57 = vmul.f32 %v2989_v11, %v1688_v59  ;;  %v4357_v42 = vmul.f32 %v2991_v28, %v1689_v0  ;;  %v1715_v11 = vld [vmem:[%s4003_s20 + $0x138] sm:$0xff]  ;;  %v1714_v59 = vld [vmem:[%s4003_s20 + $0x130] sm:$0xff] }
 0x216   : > { %v4310_v39 = vpop.xlane.xlu1 %969  ;;  %2103 = vperm.xlu1 %2939, %v4246_v40   ;;  %v1537_v40 = vmax.f32 %v1486_v50, 0.0  ;;  %v1564_v61 = vmax.f32 %v1513_v63, 0.0 }
 0x218   : > { %v4319_v49 = vpop.xlane.xlu0 %1302  ;;  %v1588_v50 = vadd.f32 1e-05, %v1537_v40  ;;  %v1614_v40 = vadd.f32 1e-05, %v1563_v18 }
 0x219   : > { %2118 = vperm.xlu0 %2938, %v4313_v13  }
 0x21a   : > { %v4325_v55 = vpop.xlane.xlu1 %1047  ;;  %2325 = vperm.xlu1 %2939, %v1887_v22   ;;  %v1916_v22 = vsub.f32 %v1814_v43, %v1865_v54  ;;  %2996 = vrsqrt.f32 %v1588_v50  ;;  %v1615_v54 = vadd.f32 1e-05, %v1564_v61  ;;  %v1387_v50 = vmul.f32 0.0051020407, %v4234_v27 }
 0x21b   : > { %2998 = vrsqrt.f32 %v1589_v48  ;;  %v1463_v48 = vmul.f32 %v4350_v24, %v4350_v24 }
 0x21c   : > { %v4329_v32 = vpop.xlane.xlu0 %972  ;;  %3000 = vrsqrt.f32 %v1614_v40  ;;  %v1489_v25 = vsub.f32 %v1387_v50, %v1438_v4  ;;  %v1813_v40 = vld [vmem:[%s4033_s25 + $0x118] sm:$0xff]  ;;  %v4398_v50 = vmul.f32 0.0051020407, %v4262_v30 }
 0x21d   : > { %2340 = vperm.xlu0 %2938, %v1890_v45   ;;  %v2993_v45 = vpop.eup %2992  ;;  %3002 = vrsqrt.f32 %v1615_v54  ;;  %v1514_v54 = vsub.f32 %v1412_v47, %v1463_v48 }
 0x21e   : > { %v4338_v56 = vpop.xlane.xlu1 %1227  ;;  %2455 = vperm.xlu1 %2939, %v1913_v52   ;;  %v4360_v52 = vmul.f32 0.0051020407, %v4258_v1  ;;  %v2995_v43 = vpop.eup %2994  ;;  %v1841_v1 = vmul.f32 %v4347_v57, %v4200_v60  ;;  %v4383_v0 = vmul.f32 %v2993_v45, %v1714_v59 }
 0x21f   : > { %v4379_v61 = vmul.f32 %v2995_v43, %v1715_v11  ;;  %v1540_v43 = vmax.f32 %v1489_v25, 0.0  ;;  %v1565_v48 = vmax.f32 %v1514_v54, 0.0 }
 0x220   : > { %v4342_v58 = vpop.xlane.xlu0 %1050  ;;  %v1464_v28 = vmul.f32 %v4360_v52, %v4360_v52 }
 0x221   : > { %2470 = vperm.xlu0 %2938, %v1916_v22   ;;  %v1787_v22 = vld [vmem:[%s4033_s25 + $0x48] sm:$0xff]  ;;  %v1591_v47 = vadd.f32 1e-05, %v1540_v43  ;;  %v1616_v54 = vadd.f32 1e-05, %v1565_v48 }
 0x222   : > { %v4354_v63 = vpop.xlane.xlu1 %1305  ;;  %1983 = vperm.xlu1 %2939, %v4277_v5   ;;  %v1488_v5 = vsub.f32 %v1386_v34, %v1437_v38  ;;  %v1889_v60 = vsub.f32 %v1787_v22, %v1838_v62  ;;  %v1864_v38 = vmul.f32 %v4248_v51, %v4107_v3  ;;  %v1892_v62 = vsub.f32 %v1790_v36, %v1841_v1  ;;  %v1691_v36 = vld [vmem:[%s4003_s20 + $0x78] sm:$0xff]  ;;  %v1717_v48 = vld [vmem:[%s4003_s20 + $0x148] sm:$0xff] }
 0x223   : > { %v1867_v3 = vmul.f32 %v4383_v0, %v4217_v7  ;;  %v4407_v1 = vmul.f32 0.0051020407, %v4310_v39 }
 0x224   : > { %v4366_v18 = vpop.xlane.xlu0 %1230  ;;  %v1539_v4 = vmax.f32 %v1488_v5, 0.0  ;;  %v1915_v51 = vsub.f32 %v1813_v40, %v1864_v38  ;;  %v4404_v5 = vmul.f32 0.0051020407, %v4275_v46  ;;  %v1439_v40 = vmul.f32 %v4398_v50, %v4398_v50 }
 0x225   : > { %1998 = vperm.xlu0 %2938, %v4357_v42   ;;  %5172 = vst [vmem:[#allocation97_spill] sm:$0xff] %v4407_v1  ;;  %v1388_v46 = vmul.f32 0.0051020407, %v4268_v26  ;;  %v1440_v43 = vmul.f32 %v4407_v1, %v4407_v1 }
 0x226   : > { %v4376_v27 = vpop.xlane.xlu1 %975  ;;  %2113 = vperm.xlu1 %2939, %v4305_v31   ;;  %v1413_v31 = vmul.f32 0.0051020407, %v4252_v17  ;;  %v1816_v17 = vld [vmem:[%s4033_s25 + $0x130] sm:$0xff]  ;;  %v1590_v22 = vadd.f32 1e-05, %v1539_v4  ;;  %v1465_v39 = vmul.f32 %v4404_v5, %v4404_v5 }
 0x227   : > { %v2997_v25 = vpop.eup %2996 }
 0x228   : > { %v4387_v34 = vpop.xlane.xlu0 %1308  ;;  %v1515_v45 = vsub.f32 %v1413_v31, %v1464_v28  ;;  %v1918_v28 = vsub.f32 %v1816_v17, %v1867_v3  ;;  %v2999_v38 = vpop.eup %2998  ;;  %3004 = vrsqrt.f32 %v1590_v22  ;;  %v1414_v31 = vmul.f32 0.0051020407, %v4287_v33 }
 0x229   : > { %2128 = vperm.xlu0 %2938, %v4379_v61   ;;  %3006 = vrsqrt.f32 %v1591_v47  ;;  %v4428_v3 = vmul.f32 %v2999_v38, %v1691_v36  ;;  %v4431_v33 = vmul.f32 0.0051020407, %v4325_v55  ;;  %v1840_v22 = vmul.f32 %v4279_v2, %v4150_v53 }
 0x22a   : > { %v4393_v11 = vpop.xlane.xlu1 %1053  ;;  %2335 = vperm.xlu1 %2939, %v1889_v60   ;;  %v1566_v30 = vmax.f32 %v1515_v45, 0.0  ;;  %v1690_v60 = vld [vmem:[%s4003_s20 + $0x70] sm:$0xff]  ;;  %v1490_v47 = vsub.f32 %v1388_v46, %v1439_v40  ;;  %3008 = vrsqrt.f32 %v1616_v54  ;;  %v1866_v40 = vmul.f32 %v4313_v13, %v4170_v23 }
 0x22b   : > { %v4426_v26 = vmul.f32 %v2997_v25, %v1690_v60  ;;  %v1789_v25 = vld [vmem:[%s4033_s25 + $0x58] sm:$0xff]  ;;  %v1516_v60 = vsub.f32 %v1414_v31, %v1465_v39  ;;  %v1792_v31 = vld [vmem:[%s4033_s25 + $0x70] sm:$0xff] }
 0x22c   : > { %v4400_v59 = vpop.xlane.xlu0 %978  ;;  %v1891_v36 = vsub.f32 %v1789_v25, %v1840_v22  ;;  %v1541_v46 = vmax.f32 %v1490_v47, 0.0  ;;  %v1818_v47 = vld [vmem:[%s4033_s25 + $0x140] sm:$0xff] }
 0x22d   : > { %2350 = vperm.xlu0 %2938, %v1892_v62   ;;  %v3001_v62 = vpop.eup %3000  ;;  %v1843_v53 = vmul.f32 %v4426_v26, %v4266_v44  ;;  %v1567_v54 = vmax.f32 %v1516_v60, 0.0  ;;  %v1415_v44 = vmul.f32 0.0051020407, %v4319_v49  ;;  %v4467_v49 = vmul.f32 0.0051020407, %v4376_v27  ;;  %v1692_v27 = vld [vmem:[%s4003_s20 + $0x80] sm:$0xff] }
 0x22e   : > { %v4409_v7 = vpop.xlane.xlu1 %1233  ;;  %2465 = vperm.xlu1 %2939, %v1915_v51   ;;  %v1617_v51 = vadd.f32 1e-05, %v1566_v30  ;;  %v3003_v17 = vpop.eup %3002 }
 0x22f   : > { %v4447_v2 = vmul.f32 %v3003_v17, %v1717_v48  ;;  %v4462_v17 = vmul.f32 0.0051020407, %v4329_v32  ;;  %v1894_v23 = vsub.f32 %v1792_v31, %v1843_v53  ;;  %v1592_v48 = vadd.f32 1e-05, %v1541_v46  ;;  %v1693_v53 = vld [vmem:[%s4003_s20 + $0x88] sm:$0xff] }
 0x230   : > { %v4416_v4 = vpop.xlane.xlu0 %1056  ;;  %3010 = vrsqrt.f32 %v1617_v51  ;;  %v4479_v46 = vmul.f32 0.0051020407, %v4342_v58  ;;  %v1442_v31 = vmul.f32 %v4467_v49, %v4467_v49 }
 0x231   : > { %2480 = vperm.xlu0 %2938, %v1918_v28   ;;  %v1389_v28 = vmul.f32 0.0051020407, %v4298_v41  ;;  %v1466_v41 = vmul.f32 %v4431_v33, %v4431_v33  ;;  %3012 = vrsqrt.f32 %v1592_v48  ;;  %v1842_v48 = vmul.f32 %v4357_v42, %v4205_v12 }
 0x232   : > { %v4423_v45 = vpop.xlane.xlu1 %1311  ;;  %1993 = vperm.xlu1 %2939, %v4347_v57   ;;  %v1716_v57 = vld [vmem:[%s4003_s20 + $0x140] sm:$0xff] }
 0x233   : > { %v1491_v55 = vsub.f32 %v1389_v28, %v1440_v43  ;;  %v1767_v38 = vmul.f32 %v3001_v62, %v1716_v57  ;;  %v1517_v62 = vsub.f32 %v1415_v44, %v1466_v41  ;;  %v1618_v28 = vadd.f32 1e-05, %v1567_v54  ;;  %v1718_v44 = vld [vmem:[%s4003_s20 + $0x150] sm:$0xff] }
 0x234   : > { %v4437_v1 = vpop.xlane.xlu0 %1236  ;;  %v1441_v41 = vmul.f32 %v4462_v17, %v4462_v17 }
 0x235   : > { %2008 = vperm.xlu0 %2938, %v4428_v3   ;;  %v1542_v43 = vmax.f32 %v1491_v55, 0.0  ;;  %v1869_v13 = vmul.f32 %v1767_v38, %v4285_v37  ;;  %v3005_v57 = vpop.eup %3004  ;;  %v1568_v37 = vmax.f32 %v1517_v62, 0.0  ;;  %3014 = vrsqrt.f32 %v1618_v28 }
 0x236   : > { %v4442_v30 = vpop.xlane.xlu1 %981  ;;  %2123 = vperm.xlu1 %2939, %v4383_v0   ;;  %v1815_v0 = vld [vmem:[%s4033_s25 + $0x128] sm:$0xff]  ;;  %v3007_v32 = vpop.eup %3006 }
 0x237   : > { %v1917_v22 = vsub.f32 %v1815_v0, %v1866_v40  ;;  %v1593_v25 = vadd.f32 1e-05, %v1542_v43  ;;  %v1920_v40 = vsub.f32 %v1818_v47, %v1869_v13  ;;  %v4483_v0 = vmul.f32 %v3007_v32, %v1693_v53  ;;  %v3009_v43 = vpop.eup %3008  ;;  %v1719_v47 = vld [vmem:[%s4003_s20 + $0x158] sm:$0xff] }
 0x238   : > { %v4453_v39 = vpop.xlane.xlu0 %1314  ;;  %v1619_v62 = vadd.f32 1e-05, %v1568_v37  ;;  %v4493_v13 = vmul.f32 0.0051020407, %v4393_v11  ;;  %v4509_v42 = vmul.f32 %v3009_v43, %v1718_v44 }
 0x239   : > { %2138 = vperm.xlu0 %2938, %v4447_v2   ;;  %3016 = vrsqrt.f32 %v1593_v25  ;;  %v1791_v25 = vld [vmem:[%s4033_s25 + $0x68] sm:$0xff] }
 0x23a   : > { %v4459_v51 = vpop.xlane.xlu1 %1059  ;;  %2345 = vperm.xlu1 %2939, %v1891_v36   ;;  %v1390_v36 = vmul.f32 0.0051020407, %v4338_v56  ;;  %v4488_v56 = vmul.f32 %v3005_v57, %v1692_v27  ;;  %v1416_v57 = vmul.f32 0.0051020407, %v4354_v63  ;;  %3018 = vrsqrt.f32 %v1619_v62 }
 0x23b   : > { %v1468_v37 = vmul.f32 %v4493_v13, %v4493_v13  ;;  %v1868_v63 = vmul.f32 %v4379_v61, %v4228_v29  ;;  %v1871_v29 = vmul.f32 %v4509_v42, %v4350_v24 }
 0x23c   : > { %v4469_v60 = vpop.xlane.xlu0 %984  ;;  %v1492_v58 = vsub.f32 %v1390_v36, %v1441_v41  ;;  %v1845_v12 = vmul.f32 %v4488_v56, %v4333_v16  ;;  %v1893_v41 = vsub.f32 %v1791_v25, %v1842_v48  ;;  %v1820_v48 = vld [vmem:[%s4033_s25 + $0x150] sm:$0xff] }
 0x23d   : > { %2360 = vperm.xlu0 %2938, %v1894_v23   ;;  %v1391_v23 = vmul.f32 0.0051020407, %v4366_v18 }
 0x23e   : > { %v4471_v55 = vpop.xlane.xlu1 %1239  ;;  %2475 = vperm.xlu1 %2939, %v1917_v22   ;;  %v3011_v22 = vpop.eup %3010  ;;  %v1543_v53 = vmax.f32 %v1492_v58, 0.0 }
 0x23f   : > { %v1493_v32 = vsub.f32 %v1391_v23, %v1442_v31  ;;  %v4511_v11 = vmul.f32 %v3011_v22, %v1719_v47  ;;  %v1417_v31 = vmul.f32 0.0051020407, %v4387_v34  ;;  %v4528_v23 = vmul.f32 0.0051020407, %v4400_v59  ;;  %v3013_v47 = vpop.eup %3012 }
 0x240   : > { %v4498_v28 = vpop.xlane.xlu0 %1062  ;;  %v1594_v43 = vadd.f32 1e-05, %v1543_v53  ;;  %v4531_v22 = vmul.f32 0.0051020407, %v4442_v30  ;;  %v1922_v59 = vsub.f32 %v1820_v48, %v1871_v29  ;;  %v1694_v53 = vld [vmem:[%s4003_s20 + $0x90] sm:$0xff] }
 0x241   : > { %2490 = vperm.xlu0 %2938, %v1920_v40   ;;  %v1817_v40 = vld [vmem:[%s4033_s25 + $0x138] sm:$0xff]  ;;  %v1544_v16 = vmax.f32 %v1493_v32, 0.0  ;;  %v1519_v62 = vsub.f32 %v1417_v31, %v1468_v37  ;;  %v1720_v37 = vld [vmem:[%s4003_s20 + $0x160] sm:$0xff]  ;;  %v1443_v30 = vmul.f32 %v4528_v23, %v4528_v23 }
 0x242   : > { %v4485_v54 = vpop.xlane.xlu1 %1317  ;;  %2003 = vperm.xlu1 %2939, %v4426_v26   ;;  %v1467_v26 = vmul.f32 %v4479_v46, %v4479_v46  ;;  %v1919_v61 = vsub.f32 %v1817_v40, %v1868_v63  ;;  %3020 = vrsqrt.f32 %v1594_v43  ;;  %v1392_v63 = vmul.f32 0.0051020407, %v4409_v7  ;;  %v1793_v43 = vld [vmem:[%s4033_s25 + $0x78] sm:$0xff] }
 0x243   : > { %v1444_v40 = vmul.f32 %v4531_v22, %v4531_v22  ;;  %v4552_v7 = vmul.f32 0.0051020407, %v4459_v51 }
 0x244   : > { %v4517_v36 = vpop.xlane.xlu0 %1242  ;;  %v1518_v27 = vsub.f32 %v1416_v57, %v1467_v26  ;;  %v1595_v26 = vadd.f32 1e-05, %v1544_v16  ;;  %v3015_v57 = vpop.eup %3014  ;;  %v1844_v16 = vmul.f32 %v4428_v3, %v4273_v6  ;;  %v1494_v51 = vsub.f32 %v1392_v63, %v1443_v30  ;;  %v1796_v63 = vld [vmem:[%s4033_s25 + $0x90] sm:$0xff] }
 0x245   : > { %2018 = vperm.xlu0 %2938, %v4483_v0   ;;  %v4559_v29 = vmul.f32 %v3015_v57, %v1720_v37 }
 0x246   : > { %2133 = vperm.xlu1 %2939, %v1767_v38   ;;  %v4505_v18 = vpop.xlane.xlu1 %987  ;;  %v1794_v38 = vld [vmem:[%s4033_s25 + $0x80] sm:$0xff]  ;;  %v1569_v25 = vmax.f32 %v1518_v27, 0.0  ;;  %v3017_v24 = vpop.eup %3016  ;;  %3022 = vrsqrt.f32 %v1595_v26 }
 0x247   : > { %v1896_v58 = vsub.f32 %v1794_v38, %v1845_v12  ;;  %v1570_v12 = vmax.f32 %v1519_v62, 0.0  ;;  %v4541_v38 = vmul.f32 0.0051020407, %v4416_v4  ;;  %v1393_v62 = vmul.f32 0.0051020407, %v4437_v1  ;;  %v1721_v1 = vld [vmem:[%s4003_s20 + $0x168] sm:$0xff] }
 0x248   : > { %v1620_v31 = vadd.f32 1e-05, %v1569_v25  ;;  %v3019_v25 = vpop.eup %3018 }
 0x249   : > { %2148 = vperm.xlu0 %2938, %v4511_v11   ;;  %v1621_v3 = vadd.f32 1e-05, %v1570_v12  ;;  %v1495_v26 = vsub.f32 %v1393_v62, %v1444_v40  ;;  %v1470_v12 = vmul.f32 %v4552_v7, %v4552_v7  ;;  %v4590_v37 = vmul.f32 %v3019_v25, %v1721_v1  ;;  %v1819_v40 = vld [vmem:[%s4033_s25 + $0x148] sm:$0xff] }
 0x24a   : > { %2355 = vperm.xlu1 %2939, %v1893_v41   ;;  %v4523_v44 = vpop.permute.xlu1 %2063  ;;  %v1695_v41 = vld [vmem:[%s4003_s20 + $0x98] sm:$0xff]  ;;  %3024 = vrsqrt.f32 %v1620_v31  ;;  %v4606_v62 = vmul.f32 0.0051020407, %v4469_v60 }
 0x24b   : > { %v4561_v6 = vmul.f32 %v3017_v24, %v1695_v41  ;;  %v1870_v24 = vmul.f32 %v4447_v2, %v4294_v35  ;;  %3026 = vrsqrt.f32 %v1621_v3  ;;  %v2238_v35 = vmul.f32 %v4523_v44, %v3355_v10 }
 0x24c   : > { %v1934_v34 = vpop.permute.xlu0 %1933  ;;  %v2239_v2 = vmul.f32 %v4523_v44, %v3363_v14  ;;  %v1822_v14 = vld [vmem:[%s4033_s25 + $0x160] sm:$0xff] }
 0x24d   : > { %2370 = vperm.xlu0 %2938, %v1896_v58   ;;  %v4557_v58 = vmul.f32 %v3013_v47, %v1694_v53  ;;  %v2187_v48 = vmul.f32 %v1934_v34, %v3353_v9  ;;  %v1418_v47 = vmul.f32 0.0051020407, %v4423_v45  ;;  %v4588_v53 = vmul.f32 %v4559_v29, %v4404_v5 }
 0x24e   : > { %2485 = vperm.xlu1 %2939, %v1919_v61   ;;  %v1939_v32 = vpop.permute.xlu1 %1938  ;;  %v2186_v61 = vmul.f32 %v1934_v34, %v3351_v8  ;;  %v1895_v8 = vsub.f32 %v1793_v43, %v1844_v16  ;;  %v1419_v5 = vmul.f32 0.0051020407, %v4453_v39 }
 0x24f   : > { %v2188_v16 = vmul.f32 %v1939_v32, %v3365_v15  ;;  %v2189_v10 = vmul.f32 %v1939_v32, %v3373_v20  ;;  %v3021_v20 = vpop.eup %3020  ;;  %v1921_v32 = vsub.f32 %v1819_v40, %v1870_v24  ;;  %v1924_v60 = vsub.f32 %v1822_v14, %v4588_v53  ;;  %v1722_v14 = vld [vmem:[%s4003_s20 + $0x170] sm:$0xff] }
 0x250   : > { %v4545_v27 = vpop.permute.xlu0 %2068  ;;  %v1521_v44 = vsub.f32 %v1419_v5, %v1470_v12  ;;  %v1445_v12 = vmul.f32 %v4606_v62, %v4606_v62 }
 0x251   : > { %2500 = vperm.xlu0 %2938, %v1922_v59   ;;  %v1847_v59 = vmul.f32 %v4557_v58, %v4398_v50  ;;  %v1546_v50 = vmax.f32 %v1495_v26, 0.0  ;;  %v5173_v26 = vld [vmem:[#allocation3_spill] sm:$0xff] }
 0x252   : > { %2013 = vperm.xlu1 %2939, %v4488_v56   ;;  %v4555_v4 = vpop.permute.xlu1 %1943  ;;  %v1469_v56 = vmul.f32 %v4541_v38, %v4541_v38  ;;  %v1572_v24 = vmax.f32 %v1521_v44, 0.0 }
 0x254   : > { %v2291_v57 = vpop.permute.xlu0 %2290  ;;  %v1520_v41 = vsub.f32 %v1418_v47, %v1469_v56  ;;  %v1394_v56 = vmul.f32 0.0051020407, %v4471_v55  ;;  %v2240_v47 = vmul.f32 %v4545_v27, %v3371_v19  ;;  %v4625_v55 = vmul.f32 0.0051020407, %v4498_v28 }
 0x255   : > { %v2543_v9 = vadd.f32 %v2291_v57, %v2186_v61  ;;  %v2544_v34 = vadd.f32 %v2291_v57, %v2187_v48  ;;  %2028 = vperm.xlu0 %2938, %v4561_v6   ;;  %v1898_v61 = vsub.f32 %v1796_v63, %v1847_v59  ;;  %v2241_v57 = vmul.f32 %v4545_v27, %v5173_v26  ;;  %v5174_v59 = vld [vmem:[#allocation2_spill] sm:$0xff] }
 0x256   : > { %2143 = vperm.xlu1 %2939, %v4509_v42   ;;  %v4582_v45 = vpop.permute.xlu1 %2073  ;;  %v1545_v42 = vmax.f32 %v1494_v51, 0.0  ;;  %v1571_v25 = vmax.f32 %v1520_v41, 0.0  ;;  %v1597_v51 = vadd.f32 1e-05, %v1546_v50  ;;  %v4628_v19 = vmul.f32 0.0051020407, %v4505_v18 }
 0x257   : > { %2645 = vst [vmem:[%s4570_s28] sm:$0xff] %v2543_v9  ;;  %2646 = vst [vmem:[%s4570_s28 + $0x8] sm:$0xff] %v2544_v34  ;;  %v3023_v9 = vpop.eup %3022  ;;  %v1697_v34 = vld [vmem:[%s4003_s20 + $0xa8] sm:$0xff]  ;;  %v2190_v53 = vmul.f32 %v4555_v4, %v5174_v59  ;;  %v1623_v44 = vadd.f32 1e-05, %v1572_v24  ;;  %v1821_v24 = vld [vmem:[%s4033_s25 + $0x158] sm:$0xff] }
 0x258   : > { %v2421_v30 = vpop.permute.xlu0 %2420  ;;  %v1596_v48 = vadd.f32 1e-05, %v1545_v42  ;;  %v4636_v28 = vmul.f32 %v3023_v9, %v1697_v34  ;;  %v3025_v40 = vpop.eup %3024  ;;  %v1798_v34 = vld [vmem:[%s4033_s25 + $0xa0] sm:$0xff] }
 0x259   : > { %v2595_v31 = vadd.f32 %v2421_v30, %v2238_v35  ;;  %v2596_v43 = vadd.f32 %v2421_v30, %v2239_v2  ;;  %2158 = vperm.xlu0 %2938, %v4590_v37   ;;  %v5175_v35 = vld [vmem:[#allocation4_spill] sm:$0xff]  ;;  %v1622_v30 = vadd.f32 1e-05, %v1571_v25  ;;  %v1795_v25 = vld [vmem:[%s4033_s25 + $0x88] sm:$0xff] }
 0x25a   : > { %2365 = vperm.xlu1 %2939, %v1895_v8   ;;  %v2296_v3 = vpop.permute.xlu1 %2295  ;;  %v1696_v8 = vld [vmem:[%s4003_s20 + $0xa0] sm:$0xff]  ;;  %v2191_v2 = vmul.f32 %v4555_v4, %v5175_v35  ;;  %3028 = vrsqrt.f32 %v1596_v48  ;;  %v1496_v4 = vsub.f32 %v1394_v56, %v1445_v12  ;;  %v4659_v56 = vmul.f32 %v3025_v40, %v1722_v14  ;;  %v5181_v40 = vld [vmem:[#allocation8_spill] sm:$0xff] }
 0x25b   : > { %2697 = vst [vmem:[%s4570_s28 + $0x1a0] sm:$0xff] %v2595_v31  ;;  %2698 = vst [vmem:[%s4570_s28 + $0x1a8] sm:$0xff] %v2596_v43  ;;  %v2545_v39 = vadd.f32 %v2296_v3, %v2188_v16  ;;  %v2546_v15 = vadd.f32 %v2296_v3, %v2189_v10  ;;  %v4634_v5 = vmul.f32 %v3021_v20, %v1696_v8  ;;  %v1420_v10 = vmul.f32 0.0051020407, %v4485_v54  ;;  %v5176_v3 = vld [vmem:[#allocation5_spill] sm:$0xff]  ;;  %v3027_v20 = vpop.eup %3026 }
 0x25c   : > { %v4610_v1 = vpop.permute.xlu0 %2078  ;;  %v1471_v16 = vmul.f32 %v4625_v55, %v4625_v55  ;;  %v1446_v31 = vmul.f32 %v4628_v19, %v4628_v19  ;;  %3030 = vrsqrt.f32 %v1597_v51  ;;  %v1846_v54 = vmul.f32 %v4483_v0, %v4336_v21 }
 0x25d   : > { %2647 = vst [vmem:[%s4570_s28 + $0x10] sm:$0xff] %v2545_v39  ;;  %2648 = vst [vmem:[%s4570_s28 + $0x18] sm:$0xff] %v2546_v15  ;;  %2380 = vperm.xlu0 %2938, %v1898_v61   ;;  %v2242_v39 = vmul.f32 %v4582_v45, %v5176_v3  ;;  %v5177_v15 = vld [vmem:[#allocation7_spill] sm:$0xff]  ;;  %3032 = vrsqrt.f32 %v1622_v30  ;;  %v1872_v8 = vmul.f32 %v4511_v11, %v4360_v52  ;;  %v1824_v52 = vld [vmem:[%s4033_s25 + $0x170] sm:$0xff] }
 0x25e   : > { %2495 = vperm.xlu1 %2939, %v1921_v32   ;;  %v2426_v27 = vpop.permute.xlu1 %2425  ;;  %v2243_v61 = vmul.f32 %v4582_v45, %v5177_v15  ;;  %v1723_v32 = vld [vmem:[%s4003_s20 + $0x178] sm:$0xff]  ;;  %v1547_v45 = vmax.f32 %v1496_v4, 0.0  ;;  %3034 = vrsqrt.f32 %v1623_v44  ;;  %v5183_v15 = vld [vmem:[#allocation15_spill] sm:$0xff] }
 0x25f   : > { %v2597_v42 = vadd.f32 %v2426_v27, %v2240_v47  ;;  %v2598_v41 = vadd.f32 %v2426_v27, %v2241_v57  ;;  %v1522_v47 = vsub.f32 %v1420_v10, %v1471_v16  ;;  %v4662_v0 = vmul.f32 %v3027_v20, %v1723_v32  ;;  %v5182_v3 = vld [vmem:[#allocation13_spill] sm:$0xff] }
 0x260   : > { %v2301_v50 = vpop.permute.xlu0 %2300  ;;  %v1897_v57 = vsub.f32 %v1795_v25, %v1846_v54  ;;  %v1923_v11 = vsub.f32 %v1821_v24, %v1872_v8  ;;  %v1698_v54 = vld [vmem:[%s4003_s20 + $0xb0] sm:$0xff]  ;;  %v5184_v25 = vld [vmem:[#allocation9_spill] sm:$0xff] }
 0x261   : > { %2699 = vst [vmem:[%s4570_s28 + $0x1b0] sm:$0xff] %v2597_v42  ;;  %2700 = vst [vmem:[%s4570_s28 + $0x1b8] sm:$0xff] %v2598_v41  ;;  %v2547_v18 = vadd.f32 %v2301_v50, %v2190_v53  ;;  %v2548_v63 = vadd.f32 %v2301_v50, %v2191_v2  ;;  %2510 = vperm.xlu0 %2938, %v1924_v60   ;;  %v1573_v12 = vmax.f32 %v1522_v47, 0.0  ;;  %v5179_v2 = vld [vmem:[#allocation12_spill] sm:$0xff] }
 0x262   : > { %2023 = vperm.xlu1 %2939, %v4557_v58   ;;  %v1949_v43 = vpop.permute.xlu1 %1948  ;;  %v1395_v58 = vmul.f32 0.0051020407, %v4517_v36  ;;  %v1849_v36 = vmul.f32 %v4634_v5, %v4462_v17  ;;  %v1875_v53 = vmul.f32 %v4659_v56, %v4479_v46  ;;  %v5178_v17 = vld [vmem:[#allocation11_spill] sm:$0xff] }
 0x263   : > { %2649 = vst [vmem:[%s4570_s28 + $0x20] sm:$0xff] %v2547_v18  ;;  %2650 = vst [vmem:[%s4570_s28 + $0x28] sm:$0xff] %v2548_v63  ;;  %v5180_v18 = vld [vmem:[#allocation6_spill] sm:$0xff]  ;;  %v2193_v4 = vmul.f32 %v1949_v43, %v5181_v40  ;;  %v1624_v46 = vadd.f32 1e-05, %v1573_v12  ;;  %v5188_v40 = vld [vmem:[#allocation20_spill] sm:$0xff] }
 0x264   : > { %v2431_v48 = vpop.permute.xlu0 %2430  ;;  %v1497_v26 = vsub.f32 %v1395_v58, %v1446_v31  ;;  %v1900_v41 = vsub.f32 %v1798_v34, %v1849_v36  ;;  %v2192_v63 = vmul.f32 %v1949_v43, %v5180_v18  ;;  %v1926_v44 = vsub.f32 %v1824_v52, %v1875_v53  ;;  %v1699_v58 = vld [vmem:[%s4003_s20 + $0xb8] sm:$0xff]  ;;  %v5187_v18 = vld [vmem:[#allocation19_spill] sm:$0xff] }
 0x265   : > { %v2599_v60 = vadd.f32 %v2431_v48, %v2242_v39  ;;  %v2600_v51 = vadd.f32 %v2431_v48, %v2243_v61  ;;  %2038 = vperm.xlu0 %2938, %v4636_v28   ;;  %v1797_v53 = vld [vmem:[%s4033_s25 + $0x98] sm:$0xff] }
 0x266   : > { %2153 = vperm.xlu1 %2939, %v4559_v29   ;;  %v1954_v21 = vpop.permute.xlu1 %1953  ;;  %v1598_v29 = vadd.f32 1e-05, %v1547_v45  ;;  %v1548_v27 = vmax.f32 %v1497_v26, 0.0 }
 0x267   : > { %2701 = vst [vmem:[%s4570_s28 + $0x1c0] sm:$0xff] %v2599_v60  ;;  %2702 = vst [vmem:[%s4570_s28 + $0x1c8] sm:$0xff] %v2600_v51  ;;  %v2194_v35 = vmul.f32 %v1954_v21, %v5178_v17  ;;  %v2195_v42 = vmul.f32 %v1954_v21, %v5179_v2  ;;  %v3029_v30 = vpop.eup %3028  ;;  %v2244_v60 = vmul.f32 %v4610_v1, %v5184_v25  ;;  %v5185_v51 = vld [vmem:[#allocation10_spill] sm:$0xff] }
 0x268   : > { %v4670_v9 = vpop.permute.xlu0 %2088  ;;  %3036 = vrsqrt.f32 %v1598_v29  ;;  %v1599_v31 = vadd.f32 1e-05, %v1548_v27  ;;  %v2245_v45 = vmul.f32 %v4610_v1, %v5185_v51  ;;  %v1749_v36 = vmul.f32 %v3029_v30, %v1698_v54  ;;  %v5186_v29 = vld [vmem:[#allocation97_spill] sm:$0xff]  ;;  %v1725_v27 = vld [vmem:[%s4003_s20 + $0x188] sm:$0xff]  ;;  %v5191_v25 = vld [vmem:[#allocation14_spill] sm:$0xff] }
 0x269   : > { %2168 = vperm.xlu0 %2938, %v4662_v0   ;;  %v3031_v32 = vpop.eup %3030  ;;  %3038 = vrsqrt.f32 %v1624_v46  ;;  %v1848_v12 = vmul.f32 %v4561_v6, %v5186_v29  ;;  %v5192_v51 = vld [vmem:[#allocation16_spill] sm:$0xff] }
 0x26a   : > { %2375 = vperm.xlu1 %2939, %v1897_v57   ;;  %v2084_v59 = vpop.permute.xlu1 %2083  ;;  %v3033_v57 = vpop.eup %3032  ;;  %v4695_v8 = vmul.f32 %v3031_v32, %v1699_v58  ;;  %3040 = vrsqrt.f32 %v1599_v31  ;;  %v1851_v2 = vmul.f32 %v1749_v36, %v4528_v23  ;;  %v1701_v32 = vld [vmem:[%s4003_s20 + $0xc8] sm:$0xff] }
 0x26b   : > { %v2246_v39 = vmul.f32 %v2084_v59, %v5182_v3  ;;  %v2247_v61 = vmul.f32 %v2084_v59, %v5183_v15  ;;  %v3035_v24 = vpop.eup %3034  ;;  %v1724_v59 = vld [vmem:[%s4003_s20 + $0x180] sm:$0xff]  ;;  %v5189_v15 = vld [vmem:[#allocation21_spill] sm:$0xff] }
 0x26c   : > { %v2311_v50 = vpop.permute.xlu0 %2310  ;;  %v1775_v6 = vmul.f32 %v3033_v57, %v1724_v59  ;;  %v1802_v59 = vld [vmem:[%s4033_s25 + $0xc0] sm:$0xff] }
 0x26d   : > { %v2551_v16 = vadd.f32 %v2311_v50, %v2194_v35  ;;  %v2552_v10 = vadd.f32 %v2311_v50, %v2195_v42  ;;  %2390 = vperm.xlu0 %2938, %v1900_v41   ;;  %v4710_v35 = vmul.f32 %v3035_v24, %v1725_v27  ;;  %v1899_v42 = vsub.f32 %v1797_v53, %v1848_v12  ;;  %v1823_v50 = vld [vmem:[%s4033_s25 + $0x168] sm:$0xff] }
 0x26e   : > { %2505 = vperm.xlu1 %2939, %v1923_v11   ;;  %v2306_v14 = vpop.permute.xlu1 %2305  ;;  %v1874_v41 = vmul.f32 %v4590_v37, %v4431_v33  ;;  %v1800_v11 = vld [vmem:[%s4033_s25 + $0xb0] sm:$0xff]  ;;  %v1826_v37 = vld [vmem:[%s4033_s25 + $0x180] sm:$0xff]  ;;  %v1850_v12 = vmul.f32 %v4636_v28, %v4467_v49  ;;  %v1799_v53 = vld [vmem:[%s4033_s25 + $0xa8] sm:$0xff] }
 0x26f   : > { %2653 = vst [vmem:[%s4570_s28 + $0x40] sm:$0xff] %v2551_v16  ;;  %2654 = vst [vmem:[%s4570_s28 + $0x48] sm:$0xff] %v2552_v10  ;;  %v2549_v43 = vadd.f32 %v2306_v14, %v2192_v63  ;;  %v2550_v20 = vadd.f32 %v2306_v14, %v2193_v4  ;;  %v1902_v4 = vsub.f32 %v1800_v11, %v1851_v2  ;;  %v1700_v10 = vld [vmem:[%s4003_s20 + $0xc0] sm:$0xff] }
 0x270   : > { %v2441_v48 = vpop.permute.xlu0 %2440  ;;  %v1877_v16 = vmul.f32 %v1775_v6, %v4541_v38  ;;  %v1925_v46 = vsub.f32 %v1823_v50, %v1874_v41  ;;  %v5194_v2 = vld [vmem:[#allocation18_spill] sm:$0xff]  ;;  %v1901_v11 = vsub.f32 %v1799_v53, %v1850_v12  ;;  %v1876_v50 = vmul.f32 %v4662_v0, %v4493_v13  ;;  %v5196_v13 = vld [vmem:[#allocation28_spill] sm:$0xff] }
 0x271   : > { %2651 = vst [vmem:[%s4570_s28 + $0x30] sm:$0xff] %v2549_v43  ;;  %2652 = vst [vmem:[%s4570_s28 + $0x38] sm:$0xff] %v2550_v20  ;;  %v2603_v47 = vadd.f32 %v2441_v48, %v2246_v39  ;;  %v2604_v26 = vadd.f32 %v2441_v48, %v2247_v61  ;;  %2520 = vperm.xlu0 %2938, %v1926_v44   ;;  %v5190_v43 = vld [vmem:[#allocation23_spill] sm:$0xff]  ;;  %v1726_v48 = vld [vmem:[%s4003_s20 + $0x190] sm:$0xff]  ;;  %v1878_v12 = vmul.f32 %v4710_v35, %v4552_v7 }
 0x272   : > { %2033 = vperm.xlu1 %2939, %v4634_v5   ;;  %v2436_v21 = vpop.permute.xlu1 %2435  ;;  %v1928_v20 = vsub.f32 %v1826_v37, %v1877_v16  ;;  %v5197_v37 = vld [vmem:[#allocation29_spill] sm:$0xff] }
 0x273   : > { %2705 = vst [vmem:[%s4570_s28 + $0x1e0] sm:$0xff] %v2603_v47  ;;  %2706 = vst [vmem:[%s4570_s28 + $0x1e8] sm:$0xff] %v2604_v26  ;;  %v2601_v1 = vadd.f32 %v2436_v21, %v2244_v60  ;;  %v2602_v34 = vadd.f32 %v2436_v21, %v2245_v45 }
 0x274   : > { %v4702_v5 = vpop.permute.xlu0 %2098 }
 0x275   : > { %2703 = vst [vmem:[%s4570_s28 + $0x1d0] sm:$0xff] %v2601_v1  ;;  %2704 = vst [vmem:[%s4570_s28 + $0x1d8] sm:$0xff] %v2602_v34  ;;  %2048 = vperm.xlu0 %2938, %v4695_v8  }
 0x276   : > { %2163 = vperm.xlu1 %2939, %v4659_v56   ;;  %v1959_v17 = vpop.permute.xlu1 %1958  ;;  %v3037_v56 = vpop.eup %3036 }
 0x277   : > { %v1751_v3 = vmul.f32 %v3037_v56, %v1700_v10  ;;  %v3039_v39 = vpop.eup %3038  ;;  %v2196_v60 = vmul.f32 %v1959_v17, %v5191_v25  ;;  %v2197_v45 = vmul.f32 %v1959_v17, %v5192_v51  ;;  %v5193_v17 = vld [vmem:[#allocation17_spill] sm:$0xff]  ;;  %v1828_v56 = vld [vmem:[%s4033_s25 + $0x190] sm:$0xff] }
 0x278   : > { %v2321_v52 = vpop.permute.xlu0 %2320  ;;  %v3041_v54 = vpop.eup %3040  ;;  %v1777_v29 = vmul.f32 %v3039_v39, %v1726_v48  ;;  %v1852_v39 = vmul.f32 %v4695_v8, %v4531_v22 }
 0x279   : > { %2178 = vperm.xlu0 %2938, %v4710_v35   ;;  %v1853_v57 = vmul.f32 %v1751_v3, %v4606_v62  ;;  %v1752_v1 = vmul.f32 %v3041_v54, %v1701_v32  ;;  %v2249_v62 = vmul.f32 %v4670_v9, %v5194_v2 }
 0x27a   : > { %2385 = vperm.xlu1 %2939, %v1899_v42   ;;  %v1964_v30 = vpop.permute.xlu1 %1963 }
 0x27b   : > { %v2198_v63 = vmul.f32 %v1964_v30, %v5187_v18  ;;  %v2199_v23 = vmul.f32 %v1964_v30, %v5188_v40  ;;  %v1904_v41 = vsub.f32 %v1802_v59, %v1853_v57  ;;  %v1825_v18 = vld [vmem:[%s4033_s25 + $0x178] sm:$0xff]  ;;  %v1854_v8 = vmul.f32 %v1752_v1, %v4628_v19  ;;  %v1827_v59 = vld [vmem:[%s4033_s25 + $0x188] sm:$0xff] }
 0x27c   : > { %v2451_v33 = vpop.permute.xlu0 %2450 }
 0x27d   : > { %v2555_v31 = vadd.f32 %v2321_v52, %v2198_v63  ;;  %v2556_v14 = vadd.f32 %v2321_v52, %v2199_v23  ;;  %2400 = vperm.xlu0 %2938, %v1902_v4   ;;  %v1879_v52 = vmul.f32 %v1777_v29, %v4625_v55  ;;  %v1927_v63 = vsub.f32 %v1825_v18, %v1876_v50  ;;  %v5195_v23 = vld [vmem:[#allocation27_spill] sm:$0xff]  ;;  %v5208_v18 = vld [vmem:[#allocation32_spill] sm:$0xff] }
 0x27e   : > { %2515 = vperm.xlu1 %2939, %v1925_v46   ;;  %v2094_v44 = vpop.permute.xlu1 %2093 }
 0x27f   : > { %2657 = vst [vmem:[%s4570_s28 + $0x60] sm:$0xff] %v2555_v31  ;;  %2658 = vst [vmem:[%s4570_s28 + $0x68] sm:$0xff] %v2556_v14  ;;  %v2250_v61 = vmul.f32 %v2094_v44, %v5189_v15  ;;  %v2251_v38 = vmul.f32 %v2094_v44, %v5190_v43  ;;  %v5198_v14 = vld [vmem:[#allocation31_spill] sm:$0xff]  ;;  %v5199_v43 = vld [vmem:[#allocation22_spill] sm:$0xff] }
 0x280   : > { %v4728_v58 = vpop.permute.xlu0 %1978 }
 0x281   : > { %v2607_v47 = vadd.f32 %v2451_v33, %v2250_v61  ;;  %v2608_v26 = vadd.f32 %v2451_v33, %v2251_v38  ;;  %2530 = vperm.xlu0 %2938, %v1928_v20   ;;  %v1801_v61 = vld [vmem:[%s4033_s25 + $0xb8] sm:$0xff]  ;;  %v5200_v20 = vld [vmem:[#allocation24_spill] sm:$0xff] }
 0x282   : > { %2043 = vperm.xlu1 %2939, %v1749_v36   ;;  %v2316_v21 = vpop.permute.xlu1 %2315  ;;  %v2248_v36 = vmul.f32 %v4670_v9, %v5193_v17  ;;  %v1903_v22 = vsub.f32 %v1801_v61, %v1852_v39  ;;  %v5203_v17 = vld [vmem:[#allocation35_spill] sm:$0xff]  ;;  %v5212_v61 = vld [vmem:[#allocation44_spill] sm:$0xff] }
 0x283   : > { %2709 = vst [vmem:[%s4570_s28 + $0x200] sm:$0xff] %v2607_v47  ;;  %2710 = vst [vmem:[%s4570_s28 + $0x208] sm:$0xff] %v2608_v26  ;;  %v2553_v34 = vadd.f32 %v2316_v21, %v2196_v60  ;;  %v2554_v24 = vadd.f32 %v2316_v21, %v2197_v45  ;;  %v1803_v45 = vld [vmem:[%s4033_s25 + $0xc8] sm:$0xff]  ;;  %v5201_v47 = vld [vmem:[#allocation25_spill] sm:$0xff] }
 0x284   : > { %v4738_v27 = vpop.permute.xlu0 %2108  ;;  %v2252_v26 = vmul.f32 %v4702_v5, %v5201_v47  ;;  %v5202_v21 = vld [vmem:[#allocation26_spill] sm:$0xff]  ;;  %v1905_v19 = vsub.f32 %v1803_v45, %v1854_v8 }
 0x285   : > { %2655 = vst [vmem:[%s4570_s28 + $0x50] sm:$0xff] %v2553_v34  ;;  %2656 = vst [vmem:[%s4570_s28 + $0x58] sm:$0xff] %v2554_v24  ;;  %2058 = vperm.xlu0 %2938, %v1752_v1   ;;  %v2253_v57 = vmul.f32 %v4702_v5, %v5202_v21 }
 0x286   : > { %2173 = vperm.xlu1 %2939, %v1775_v6   ;;  %v2446_v42 = vpop.permute.xlu1 %2445  ;;  %v1930_v6 = vsub.f32 %v1828_v56, %v1879_v52  ;;  %v5206_v52 = vld [vmem:[#allocation39_spill] sm:$0xff] }
 0x287   : > { %v2605_v49 = vadd.f32 %v2446_v42, %v2248_v36  ;;  %v2606_v28 = vadd.f32 %v2446_v42, %v2249_v62  ;;  %v5204_v36 = vld [vmem:[#allocation36_spill] sm:$0xff]  ;;  %v1929_v62 = vsub.f32 %v1827_v59, %v1878_v12 }
 0x288   : > { %v2331_v30 = vpop.permute.xlu0 %2330 }
 0x289   : > { %2707 = vst [vmem:[%s4570_s28 + $0x1f0] sm:$0xff] %v2605_v49  ;;  %2708 = vst [vmem:[%s4570_s28 + $0x1f8] sm:$0xff] %v2606_v28  ;;  %2410 = vperm.xlu0 %2938, %v1904_v41   ;;  %v5205_v28 = vld [vmem:[#allocation37_spill] sm:$0xff] }
 0x28a   : > { %2395 = vperm.xlu1 %2939, %v1901_v11   ;;  %v1969_v9 = vpop.permute.xlu1 %1968 }
 0x28b   : > { %v2200_v38 = vmul.f32 %v1969_v9, %v5199_v43 }
 0x28c   : > { %v2461_v40 = vpop.permute.xlu0 %2460 }
 0x28d   : > { %2540 = vperm.xlu0 %2938, %v1930_v6  }
 0x28e   : > { %2525 = vperm.xlu1 %2939, %v1927_v63   ;;  %v1974_v55 = vpop.permute.xlu1 %1973 }
 0x28f   : > { %v2202_v4 = vmul.f32 %v1974_v55, %v5195_v23  ;;  %v2203_v0 = vmul.f32 %v1974_v55, %v5196_v13  ;;  %v5209_v13 = vld [vmem:[#allocation33_spill] sm:$0xff] }
 0x290   : > { %v4757_v16 = vpop.permute.xlu0 %1988 }
 0x291   : > { %v2559_v10 = vadd.f32 %v2331_v30, %v2202_v4  ;;  %v2560_v46 = vadd.f32 %v2331_v30, %v2203_v0  ;;  %v5207_v30 = vld [vmem:[#allocation30_spill] sm:$0xff]  ;;  %v2256_v0 = vmul.f32 %v4738_v27, %v5209_v13 }
 0x292   : > { %2053 = vperm.xlu1 %2939, %v1751_v3   ;;  %v2104_v33 = vpop.permute.xlu1 %2103  ;;  %v2201_v3 = vmul.f32 %v1969_v9, %v5200_v20  ;;  %v2204_v56 = vmul.f32 %v4728_v58, %v5207_v30  ;;  %v2205_v9 = vmul.f32 %v4728_v58, %v5208_v18  ;;  %v5223_v18 = vld [vmem:[#allocation46_spill] sm:$0xff] }
 0x293   : > { %2661 = vst [vmem:[%s4570_s28 + $0x80] sm:$0xff] %v2559_v10  ;;  %2662 = vst [vmem:[%s4570_s28 + $0x88] sm:$0xff] %v2560_v46  ;;  %v2254_v31 = vmul.f32 %v2104_v33, %v5197_v37  ;;  %v2255_v44 = vmul.f32 %v2104_v33, %v5198_v14  ;;  %v5210_v10 = vld [vmem:[#allocation34_spill] sm:$0xff] }
 0x294   : > { %v4765_v15 = vpop.permute.xlu0 %2118  ;;  %v2257_v46 = vmul.f32 %v4738_v27, %v5210_v10  ;;  %v5225_v10 = vld [vmem:[#allocation49_spill] sm:$0xff] }
 0x295   : > { %v2611_v54 = vadd.f32 %v2461_v40, %v2254_v31  ;;  %v2612_v32 = vadd.f32 %v2461_v40, %v2255_v44  ;;  %v5211_v44 = vld [vmem:[#allocation43_spill] sm:$0xff] }
 0x296   : > { %2183 = vperm.xlu1 %2939, %v1777_v29   ;;  %v2326_v48 = vpop.permute.xlu1 %2325 }
 0x297   : > { %2713 = vst [vmem:[%s4570_s28 + $0x220] sm:$0xff] %v2611_v54  ;;  %2714 = vst [vmem:[%s4570_s28 + $0x228] sm:$0xff] %v2612_v32  ;;  %v2557_v25 = vadd.f32 %v2326_v48, %v2200_v38  ;;  %v2558_v60 = vadd.f32 %v2326_v48, %v2201_v3  ;;  %v5213_v54 = vld [vmem:[#allocation45_spill] sm:$0xff]  ;;  %v5214_v48 = vld [vmem:[#allocation47_spill] sm:$0xff] }
 0x298   : > { %v2341_v51 = vpop.permute.xlu0 %2340 }
 0x299   : > { %2659 = vst [vmem:[%s4570_s28 + $0x70] sm:$0xff] %v2557_v25  ;;  %2660 = vst [vmem:[%s4570_s28 + $0x78] sm:$0xff] %v2558_v60 }
 0x29a   : > { %2405 = vperm.xlu1 %2939, %v1903_v22   ;;  %v2456_v34 = vpop.permute.xlu1 %2455  ;;  %v5215_v22 = vld [vmem:[#allocation38_spill] sm:$0xff] }
 0x29b   : > { %v2609_v24 = vadd.f32 %v2456_v34, %v2252_v26  ;;  %v2610_v29 = vadd.f32 %v2456_v34, %v2253_v57  ;;  %v2208_v8 = vmul.f32 %v4757_v16, %v5215_v22 }
 0x29c   : > { %v2471_v1 = vpop.permute.xlu0 %2470 }
 0x29d   : > { %2711 = vst [vmem:[%s4570_s28 + $0x210] sm:$0xff] %v2609_v24  ;;  %2712 = vst [vmem:[%s4570_s28 + $0x218] sm:$0xff] %v2610_v29  ;;  %v5217_v29 = vld [vmem:[#allocation41_spill] sm:$0xff] }
 0x29e   : > { %2415 = vperm.xlu1 %2939, %v1905_v19   ;;  %v1984_v53 = vpop.permute.xlu1 %1983  ;;  %v2260_v12 = vmul.f32 %v4765_v15, %v5217_v29  ;;  %v5218_v19 = vld [vmem:[#allocation42_spill] sm:$0xff] }
 0x29f   : > { %v2206_v5 = vmul.f32 %v1984_v53, %v5203_v17  ;;  %v2207_v2 = vmul.f32 %v1984_v53, %v5204_v36  ;;  %v5219_v36 = vld [vmem:[#allocation51_spill] sm:$0xff] }
 0x2a0   : > { %v4787_v42 = vpop.permute.xlu0 %1998 }
 0x2a1   : > { %v2563_v49 = vadd.f32 %v2341_v51, %v2206_v5  ;;  %v2564_v7 = vadd.f32 %v2341_v51, %v2207_v2  ;;  %v5216_v51 = vld [vmem:[#allocation40_spill] sm:$0xff] }
 0x2a2   : > { %2535 = vperm.xlu1 %2939, %v1929_v62   ;;  %v2114_v35 = vpop.permute.xlu1 %2113  ;;  %v2209_v45 = vmul.f32 %v4757_v16, %v5216_v51  ;;  %v5220_v62 = vld [vmem:[#allocation52_spill] sm:$0xff]  ;;  %v5231_v51 = vld [vmem:[#allocation54_spill] sm:$0xff] }
 0x2a3   : > { %2665 = vst [vmem:[%s4570_s28 + $0xa0] sm:$0xff] %v2563_v49  ;;  %2666 = vst [vmem:[%s4570_s28 + $0xa8] sm:$0xff] %v2564_v7  ;;  %v2258_v41 = vmul.f32 %v2114_v35, %v5205_v28  ;;  %v2259_v11 = vmul.f32 %v2114_v35, %v5206_v52 }
 0x2a4   : > { %v4793_v50 = vpop.permute.xlu0 %2128 }
 0x2a5   : > { %v2615_v6 = vadd.f32 %v2471_v1, %v2258_v41  ;;  %v2616_v63 = vadd.f32 %v2471_v1, %v2259_v11  ;;  %v2261_v1 = vmul.f32 %v4765_v15, %v5218_v19  ;;  %v5221_v41 = vld [vmem:[#allocation53_spill] sm:$0xff]  ;;  %v5222_v11 = vld [vmem:[#allocation55_spill] sm:$0xff] }
 0x2a6   : > { %v2336_v40 = vpop.permute.xlu1 %2335  ;;  %v5233_v19 = vld [vmem:[#allocation57_spill] sm:$0xff] }
 0x2a7   : > { %2717 = vst [vmem:[%s4570_s28 + $0x240] sm:$0xff] %v2615_v6  ;;  %2718 = vst [vmem:[%s4570_s28 + $0x248] sm:$0xff] %v2616_v63  ;;  %v2561_v55 = vadd.f32 %v2336_v40, %v2204_v56  ;;  %v2562_v23 = vadd.f32 %v2336_v40, %v2205_v9  ;;  %v2212_v9 = vmul.f32 %v4787_v42, %v5223_v18  ;;  %v5224_v6 = vld [vmem:[#allocation48_spill] sm:$0xff] }
 0x2a8   : > { %v2351_v4 = vpop.permute.xlu0 %2350  ;;  %v2213_v63 = vmul.f32 %v4787_v42, %v5224_v6  ;;  %v5239_v6 = vld [vmem:[#allocation62_spill] sm:$0xff] }
 0x2a9   : > { %2663 = vst [vmem:[%s4570_s28 + $0x90] sm:$0xff] %v2561_v55  ;;  %2664 = vst [vmem:[%s4570_s28 + $0x98] sm:$0xff] %v2562_v23 }
 0x2aa   : > { %v2466_v58 = vpop.permute.xlu1 %2465 }
 0x2ab   : > { %v2613_v33 = vadd.f32 %v2466_v58, %v2256_v0  ;;  %v2614_v37 = vadd.f32 %v2466_v58, %v2257_v46  ;;  %v2264_v46 = vmul.f32 %v4793_v50, %v5225_v10  ;;  %v5226_v58 = vld [vmem:[#allocation50_spill] sm:$0xff] }
 0x2ac   : > { %v2481_v31 = vpop.permute.xlu0 %2480 }
 0x2ad   : > { %2715 = vst [vmem:[%s4570_s28 + $0x230] sm:$0xff] %v2613_v33  ;;  %2716 = vst [vmem:[%s4570_s28 + $0x238] sm:$0xff] %v2614_v37  ;;  %v2265_v33 = vmul.f32 %v4793_v50, %v5226_v58  ;;  %v5241_v58 = vld [vmem:[#allocation65_spill] sm:$0xff] }
 0x2ae   : > { %v1994_v14 = vpop.permute.xlu1 %1993 }
 0x2af   : > { %v2210_v39 = vmul.f32 %v1994_v14, %v5211_v44  ;;  %v2211_v43 = vmul.f32 %v1994_v14, %v5212_v61 }
 0x2b0   : > { %v4811_v38 = vpop.permute.xlu0 %2008 }
 0x2b1   : > { %v2567_v27 = vadd.f32 %v2351_v4, %v2210_v39  ;;  %v2568_v20 = vadd.f32 %v2351_v4, %v2211_v43  ;;  %v5227_v39 = vld [vmem:[#allocation59_spill] sm:$0xff]  ;;  %v5228_v43 = vld [vmem:[#allocation60_spill] sm:$0xff] }
 0x2b2   : > { %v2124_v3 = vpop.permute.xlu1 %2123 }
 0x2b3   : > { %2669 = vst [vmem:[%s4570_s28 + $0xc0] sm:$0xff] %v2567_v27  ;;  %2670 = vst [vmem:[%s4570_s28 + $0xc8] sm:$0xff] %v2568_v20  ;;  %v2262_v32 = vmul.f32 %v2124_v3, %v5213_v54  ;;  %v2263_v25 = vmul.f32 %v2124_v3, %v5214_v48 }
 0x2b4   : > { %v4817_v60 = vpop.permute.xlu0 %2138 }
 0x2b5   : > { %v2619_v47 = vadd.f32 %v2481_v31, %v2262_v32  ;;  %v2620_v26 = vadd.f32 %v2481_v31, %v2263_v25  ;;  %v5229_v32 = vld [vmem:[#allocation61_spill] sm:$0xff]  ;;  %v5230_v25 = vld [vmem:[#allocation63_spill] sm:$0xff] }
 0x2b6   : > { %v2346_v21 = vpop.permute.xlu1 %2345 }
 0x2b7   : > { %2721 = vst [vmem:[%s4570_s28 + $0x260] sm:$0xff] %v2619_v47  ;;  %2722 = vst [vmem:[%s4570_s28 + $0x268] sm:$0xff] %v2620_v26  ;;  %v2565_v57 = vadd.f32 %v2346_v21, %v2208_v8  ;;  %v2566_v34 = vadd.f32 %v2346_v21, %v2209_v45  ;;  %v2216_v45 = vmul.f32 %v4811_v38, %v5231_v51  ;;  %v5232_v47 = vld [vmem:[#allocation56_spill] sm:$0xff] }
 0x2b8   : > { %v2361_v24 = vpop.permute.xlu0 %2360  ;;  %v2217_v26 = vmul.f32 %v4811_v38, %v5232_v47 }
 0x2b9   : > { %2667 = vst [vmem:[%s4570_s28 + $0xb0] sm:$0xff] %v2565_v57  ;;  %2668 = vst [vmem:[%s4570_s28 + $0xb8] sm:$0xff] %v2566_v34 }
 0x2ba   : > { %v2476_v16 = vpop.permute.xlu1 %2475 }
 0x2bb   : > { %v2617_v59 = vadd.f32 %v2476_v16, %v2260_v12  ;;  %v2618_v53 = vadd.f32 %v2476_v16, %v2261_v1  ;;  %v2268_v1 = vmul.f32 %v4817_v60, %v5233_v19  ;;  %v5234_v16 = vld [vmem:[#allocation58_spill] sm:$0xff] }
 0x2bc   : > { %v2491_v17 = vpop.permute.xlu0 %2490 }
 0x2bd   : > { %2719 = vst [vmem:[%s4570_s28 + $0x250] sm:$0xff] %v2617_v59  ;;  %2720 = vst [vmem:[%s4570_s28 + $0x258] sm:$0xff] %v2618_v53  ;;  %v2269_v59 = vmul.f32 %v4817_v60, %v5234_v16 }
 0x2be   : > { %v2004_v5 = vpop.permute.xlu1 %2003 }
 0x2bf   : > { %v2214_v2 = vmul.f32 %v2004_v5, %v5219_v36  ;;  %v2215_v49 = vmul.f32 %v2004_v5, %v5220_v62 }
 0x2c0   : > { %v4835_v7 = vpop.permute.xlu0 %2018 }
 0x2c1   : > { %v2571_v15 = vadd.f32 %v2361_v24, %v2214_v2  ;;  %v2572_v35 = vadd.f32 %v2361_v24, %v2215_v49  ;;  %v5235_v2 = vld [vmem:[#allocation67_spill] sm:$0xff]  ;;  %v5236_v49 = vld [vmem:[#allocation68_spill] sm:$0xff] }
 0x2c2   : > { %v2134_v28 = vpop.permute.xlu1 %2133 }
 0x2c3   : > { %2673 = vst [vmem:[%s4570_s28 + $0xe0] sm:$0xff] %v2571_v15  ;;  %2674 = vst [vmem:[%s4570_s28 + $0xe8] sm:$0xff] %v2572_v35  ;;  %v2266_v52 = vmul.f32 %v2134_v28, %v5221_v41  ;;  %v2267_v30 = vmul.f32 %v2134_v28, %v5222_v11 }
 0x2c4   : > { %v4841_v56 = vpop.permute.xlu0 %2148 }
 0x2c5   : > { %v2623_v40 = vadd.f32 %v2491_v17, %v2266_v52  ;;  %v2624_v55 = vadd.f32 %v2491_v17, %v2267_v30  ;;  %v5237_v52 = vld [vmem:[#allocation69_spill] sm:$0xff]  ;;  %v5238_v30 = vld [vmem:[#allocation71_spill] sm:$0xff] }
 0x2c6   : > { %v2356_v23 = vpop.permute.xlu1 %2355 }
 0x2c7   : > { %2725 = vst [vmem:[%s4570_s28 + $0x280] sm:$0xff] %v2623_v40  ;;  %2726 = vst [vmem:[%s4570_s28 + $0x288] sm:$0xff] %v2624_v55  ;;  %v2569_v4 = vadd.f32 %v2356_v23, %v2212_v9  ;;  %v2570_v13 = vadd.f32 %v2356_v23, %v2213_v63  ;;  %v2220_v63 = vmul.f32 %v4835_v7, %v5239_v6  ;;  %v5240_v40 = vld [vmem:[#allocation64_spill] sm:$0xff]  ;;  %v5255_v6 = vld [vmem:[#allocation78_spill] sm:$0xff] }
 0x2c8   : > { %v2371_v0 = vpop.permute.xlu0 %2370  ;;  %v2221_v55 = vmul.f32 %v4835_v7, %v5240_v40  ;;  %v5256_v40 = vld [vmem:[#allocation80_spill] sm:$0xff] }
 0x2c9   : > { %2671 = vst [vmem:[%s4570_s28 + $0xd0] sm:$0xff] %v2569_v4  ;;  %2672 = vst [vmem:[%s4570_s28 + $0xd8] sm:$0xff] %v2570_v13 }
 0x2ca   : > { %v2486_v42 = vpop.permute.xlu1 %2485 }
 0x2cb   : > { %v2621_v37 = vadd.f32 %v2486_v42, %v2264_v46  ;;  %v2622_v31 = vadd.f32 %v2486_v42, %v2265_v33  ;;  %v2272_v33 = vmul.f32 %v4841_v56, %v5241_v58  ;;  %v5242_v42 = vld [vmem:[#allocation66_spill] sm:$0xff]  ;;  %v5257_v58 = vld [vmem:[#allocation81_spill] sm:$0xff] }
 0x2cc   : > { %v2501_v14 = vpop.permute.xlu0 %2500 }
 0x2cd   : > { %2723 = vst [vmem:[%s4570_s28 + $0x270] sm:$0xff] %v2621_v37  ;;  %2724 = vst [vmem:[%s4570_s28 + $0x278] sm:$0xff] %v2622_v31  ;;  %v2273_v37 = vmul.f32 %v4841_v56, %v5242_v42  ;;  %v5258_v42 = vld [vmem:[#allocation82_spill] sm:$0xff] }
 0x2ce   : > { %v2014_v44 = vpop.permute.xlu1 %2013 }
 0x2cf   : > { %v2218_v61 = vmul.f32 %v2014_v44, %v5227_v39  ;;  %v2219_v27 = vmul.f32 %v2014_v44, %v5228_v43 }
 0x2d0   : > { %v4859_v20 = vpop.permute.xlu0 %2028 }
 0x2d1   : > { %v2575_v50 = vadd.f32 %v2371_v0, %v2218_v61  ;;  %v2576_v3 = vadd.f32 %v2371_v0, %v2219_v27  ;;  %v5243_v61 = vld [vmem:[#allocation75_spill] sm:$0xff]  ;;  %v5244_v27 = vld [vmem:[#allocation76_spill] sm:$0xff] }
 0x2d2   : > { %v2144_v54 = vpop.permute.xlu1 %2143 }
 0x2d3   : > { %2677 = vst [vmem:[%s4570_s28 + $0x100] sm:$0xff] %v2575_v50  ;;  %2678 = vst [vmem:[%s4570_s28 + $0x108] sm:$0xff] %v2576_v3  ;;  %v2270_v48 = vmul.f32 %v2144_v54, %v5229_v32  ;;  %v2271_v22 = vmul.f32 %v2144_v54, %v5230_v25 }
 0x2d4   : > { %v4865_v8 = vpop.permute.xlu0 %2158 }
 0x2d5   : > { %v2627_v21 = vadd.f32 %v2501_v14, %v2270_v48  ;;  %v2628_v57 = vadd.f32 %v2501_v14, %v2271_v22  ;;  %v5245_v48 = vld [vmem:[#allocation77_spill] sm:$0xff]  ;;  %v5246_v22 = vld [vmem:[#allocation79_spill] sm:$0xff] }
 0x2d6   : > { %v2366_v34 = vpop.permute.xlu1 %2365 }
 0x2d7   : > { %2729 = vst [vmem:[%s4570_s28 + $0x2a0] sm:$0xff] %v2627_v21  ;;  %2730 = vst [vmem:[%s4570_s28 + $0x2a8] sm:$0xff] %v2628_v57  ;;  %v2573_v24 = vadd.f32 %v2366_v34, %v2216_v45  ;;  %v2574_v29 = vadd.f32 %v2366_v34, %v2217_v26  ;;  %v5247_v45 = vld [vmem:[#allocation70_spill] sm:$0xff]  ;;  %v5248_v26 = vld [vmem:[#allocation72_spill] sm:$0xff] }
 0x2d8   : > { %v2381_v12 = vpop.permute.xlu0 %2380  ;;  %v2224_v47 = vmul.f32 %v4859_v20, %v5247_v45  ;;  %v2225_v21 = vmul.f32 %v4859_v20, %v5248_v26 }
 0x2d9   : > { %2675 = vst [vmem:[%s4570_s28 + $0xf0] sm:$0xff] %v2573_v24  ;;  %2676 = vst [vmem:[%s4570_s28 + $0xf8] sm:$0xff] %v2574_v29 }
 0x2da   : > { %v2496_v38 = vpop.permute.xlu1 %2495 }
 0x2db   : > { %v2625_v53 = vadd.f32 %v2496_v38, %v2268_v1  ;;  %v2626_v17 = vadd.f32 %v2496_v38, %v2269_v59  ;;  %v5249_v1 = vld [vmem:[#allocation73_spill] sm:$0xff]  ;;  %v5250_v59 = vld [vmem:[#allocation74_spill] sm:$0xff] }
 0x2dc   : > { %v2511_v5 = vpop.permute.xlu0 %2510  ;;  %v2276_v16 = vmul.f32 %v4865_v8, %v5249_v1  ;;  %v2277_v38 = vmul.f32 %v4865_v8, %v5250_v59 }
 0x2dd   : > { %2727 = vst [vmem:[%s4570_s28 + $0x290] sm:$0xff] %v2625_v53  ;;  %2728 = vst [vmem:[%s4570_s28 + $0x298] sm:$0xff] %v2626_v17 }
 0x2de   : > { %v2024_v36 = vpop.permute.xlu1 %2023 }
 0x2df   : > { %v2222_v62 = vmul.f32 %v2024_v36, %v5235_v2  ;;  %v2223_v15 = vmul.f32 %v2024_v36, %v5236_v49  ;;  %v5251_v2 = vld [vmem:[#allocation83_spill] sm:$0xff]  ;;  %v5252_v49 = vld [vmem:[#allocation84_spill] sm:$0xff] }
 0x2e0   : > { %v4883_v35 = vpop.permute.xlu0 %2038 }
 0x2e1   : > { %v2579_v60 = vadd.f32 %v2381_v12, %v2222_v62  ;;  %v2580_v28 = vadd.f32 %v2381_v12, %v2223_v15 }
 0x2e2   : > { %v2154_v41 = vpop.permute.xlu1 %2153 }
 0x2e3   : > { %2681 = vst [vmem:[%s4570_s28 + $0x120] sm:$0xff] %v2579_v60  ;;  %2682 = vst [vmem:[%s4570_s28 + $0x128] sm:$0xff] %v2580_v28  ;;  %v2274_v11 = vmul.f32 %v2154_v41, %v5237_v52  ;;  %v2275_v18 = vmul.f32 %v2154_v41, %v5238_v30  ;;  %v5253_v52 = vld [vmem:[#allocation85_spill] sm:$0xff]  ;;  %v5254_v30 = vld [vmem:[#allocation87_spill] sm:$0xff] }
 0x2e4   : > { %v4889_v9 = vpop.permute.xlu0 %2168 }
 0x2e5   : > { %v2631_v23 = vadd.f32 %v2511_v5, %v2274_v11  ;;  %v2632_v4 = vadd.f32 %v2511_v5, %v2275_v18 }
 0x2e6   : > { %v2376_v13 = vpop.permute.xlu1 %2375 }
 0x2e7   : > { %2733 = vst [vmem:[%s4570_s28 + $0x2c0] sm:$0xff] %v2631_v23  ;;  %2734 = vst [vmem:[%s4570_s28 + $0x2c8] sm:$0xff] %v2632_v4  ;;  %v2577_v0 = vadd.f32 %v2376_v13, %v2220_v63  ;;  %v2578_v10 = vadd.f32 %v2376_v13, %v2221_v55  ;;  %v2228_v63 = vmul.f32 %v4883_v35, %v5255_v6 }
 0x2e8   : > { %v2391_v46 = vpop.permute.xlu0 %2390  ;;  %v2229_v55 = vmul.f32 %v4883_v35, %v5256_v40 }
 0x2e9   : > { %2679 = vst [vmem:[%s4570_s28 + $0x110] sm:$0xff] %v2577_v0  ;;  %2680 = vst [vmem:[%s4570_s28 + $0x118] sm:$0xff] %v2578_v10 }
 0x2ea   : > { %v2506_v7 = vpop.permute.xlu1 %2505 }
 0x2eb   : > { %v2629_v31 = vadd.f32 %v2506_v7, %v2272_v33  ;;  %v2630_v14 = vadd.f32 %v2506_v7, %v2273_v37  ;;  %v2280_v33 = vmul.f32 %v4889_v9, %v5257_v58  ;;  %v2281_v37 = vmul.f32 %v4889_v9, %v5258_v42  ;;  %v5261_v9 = vld [vmem:[#allocation93_spill] sm:$0xff] }
 0x2ec   : > { %v2521_v44 = vpop.permute.xlu0 %2520 }
 0x2ed   : > { %2731 = vst [vmem:[%s4570_s28 + $0x2b0] sm:$0xff] %v2629_v31  ;;  %2732 = vst [vmem:[%s4570_s28 + $0x2b8] sm:$0xff] %v2630_v14 }
 0x2ee   : > { %v2034_v39 = vpop.permute.xlu1 %2033 }
 0x2ef   : > { %v2226_v43 = vmul.f32 %v2034_v39, %v5243_v61  ;;  %v2227_v50 = vmul.f32 %v2034_v39, %v5244_v27  ;;  %v5259_v39 = vld [vmem:[#allocation91_spill] sm:$0xff] }
 0x2f0   : > { %v4907_v3 = vpop.permute.xlu0 %2048 }
 0x2f1   : > { %v2583_v56 = vadd.f32 %v2391_v46, %v2226_v43  ;;  %v2584_v54 = vadd.f32 %v2391_v46, %v2227_v50  ;;  %v5260_v43 = vld [vmem:[#allocation92_spill] sm:$0xff] }
 0x2f2   : > { %v2164_v32 = vpop.permute.xlu1 %2163 }
 0x2f3   : > { %2685 = vst [vmem:[%s4570_s28 + $0x140] sm:$0xff] %v2583_v56  ;;  %2686 = vst [vmem:[%s4570_s28 + $0x148] sm:$0xff] %v2584_v54  ;;  %v2278_v25 = vmul.f32 %v2164_v32, %v5245_v48  ;;  %v2279_v51 = vmul.f32 %v2164_v32, %v5246_v22  ;;  %v5262_v48 = vld [vmem:[#allocation95_spill] sm:$0xff] }
 0x2f4   : > { %v4917_v24 = vpop.permute.xlu0 %2178 }
 0x2f5   : > { %v2635_v57 = vadd.f32 %v2521_v44, %v2278_v25  ;;  %v2636_v34 = vadd.f32 %v2521_v44, %v2279_v51  ;;  %v5263_v51 = vld [vmem:[#allocation86_spill] sm:$0xff] }
 0x2f6   : > { %v2386_v29 = vpop.permute.xlu1 %2385  ;;  %v2232_v45 = vmul.f32 %v4907_v3, %v5263_v51 }
 0x2f7   : > { %2737 = vst [vmem:[%s4570_s28 + $0x2e0] sm:$0xff] %v2635_v57  ;;  %2738 = vst [vmem:[%s4570_s28 + $0x2e8] sm:$0xff] %v2636_v34  ;;  %v2581_v12 = vadd.f32 %v2386_v29, %v2224_v47  ;;  %v2582_v19 = vadd.f32 %v2386_v29, %v2225_v21  ;;  %v5264_v47 = vld [vmem:[#allocation88_spill] sm:$0xff] }
 0x2f8   : > { %v2401_v5 = vpop.permute.xlu0 %2400  ;;  %v2233_v26 = vmul.f32 %v4907_v3, %v5264_v47 }
 0x2f9   : > { %2683 = vst [vmem:[%s4570_s28 + $0x130] sm:$0xff] %v2581_v12  ;;  %2684 = vst [vmem:[%s4570_s28 + $0x138] sm:$0xff] %v2582_v19  ;;  %v5265_v19 = vld [vmem:[#allocation94_spill] sm:$0xff] }
 0x2fa   : > { %v2516_v20 = vpop.permute.xlu1 %2515 }
 0x2fb   : > { %v2633_v53 = vadd.f32 %v2516_v20, %v2276_v16  ;;  %v2634_v17 = vadd.f32 %v2516_v20, %v2277_v38  ;;  %v5266_v16 = vld [vmem:[#allocation96_spill] sm:$0xff] }
 0x2fc   : > { %v2531_v8 = vpop.permute.xlu0 %2530 }
 0x2fd   : > { %2735 = vst [vmem:[%s4570_s28 + $0x2d0] sm:$0xff] %v2633_v53  ;;  %2736 = vst [vmem:[%s4570_s28 + $0x2d8] sm:$0xff] %v2634_v17  ;;  %v5267_v53 = vld [vmem:[#allocation89_spill] sm:$0xff] }
 0x2fe   : > { %v2044_v36 = vpop.permute.xlu1 %2043  ;;  %v2284_v17 = vmul.f32 %v4917_v24, %v5267_v53 }
 0x2ff   : > { %v2230_v62 = vmul.f32 %v2044_v36, %v5251_v2  ;;  %v2231_v15 = vmul.f32 %v2044_v36, %v5252_v49 }
 0x300   : > { %v2059_v46 = vpop.permute.xlu0 %2058 }
 0x301   : > { %v2587_v60 = vadd.f32 %v2401_v5, %v2230_v62  ;;  %v2588_v28 = vadd.f32 %v2401_v5, %v2231_v15  ;;  %v2236_v1 = vmul.f32 %v2059_v46, %v5265_v19  ;;  %v2237_v59 = vmul.f32 %v2059_v46, %v5266_v16  ;;  %v5268_v5 = vld [vmem:[#allocation90_spill] sm:$0xff] }
 0x302   : > { %v2174_v41 = vpop.permute.xlu1 %2173  ;;  %v2285_v36 = vmul.f32 %v4917_v24, %v5268_v5 }
 0x303   : > { %2689 = vst [vmem:[%s4570_s28 + $0x160] sm:$0xff] %v2587_v60  ;;  %2690 = vst [vmem:[%s4570_s28 + $0x168] sm:$0xff] %v2588_v28  ;;  %v2282_v11 = vmul.f32 %v2174_v41, %v5253_v52  ;;  %v2283_v18 = vmul.f32 %v2174_v41, %v5254_v30 }
 0x304   : > { %v2411_v14 = vpop.permute.xlu0 %2410 }
 0x305   : > { %v2639_v23 = vadd.f32 %v2531_v8, %v2282_v11  ;;  %v2640_v4 = vadd.f32 %v2531_v8, %v2283_v18 }
 0x306   : > { %v2396_v13 = vpop.permute.xlu1 %2395 }
 0x307   : > { %2741 = vst [vmem:[%s4570_s28 + $0x300] sm:$0xff] %v2639_v23  ;;  %2742 = vst [vmem:[%s4570_s28 + $0x308] sm:$0xff] %v2640_v4  ;;  %v2585_v0 = vadd.f32 %v2396_v13, %v2228_v63  ;;  %v2586_v10 = vadd.f32 %v2396_v13, %v2229_v55 }
 0x308   : > { %v2541_v22 = vpop.permute.xlu0 %2540 }
 0x309   : > { %2687 = vst [vmem:[%s4570_s28 + $0x150] sm:$0xff] %v2585_v0  ;;  %2688 = vst [vmem:[%s4570_s28 + $0x158] sm:$0xff] %v2586_v10 }
 0x30a   : > { %v2526_v35 = vpop.permute.xlu1 %2525 }
 0x30b   : > { %v2637_v7 = vadd.f32 %v2526_v35, %v2280_v33  ;;  %v2638_v31 = vadd.f32 %v2526_v35, %v2281_v37 }
 0x30d   : > { %2739 = vst [vmem:[%s4570_s28 + $0x2f0] sm:$0xff] %v2637_v7  ;;  %2740 = vst [vmem:[%s4570_s28 + $0x2f8] sm:$0xff] %v2638_v31 }
 0x30e   : > { %v2054_v44 = vpop.permute.xlu1 %2053 }
 0x30f   : > { %v2234_v61 = vmul.f32 %v2054_v44, %v5259_v39  ;;  %v2235_v27 = vmul.f32 %v2054_v44, %v5260_v43 }
 0x311   : > { %v2591_v50 = vadd.f32 %v2411_v14, %v2234_v61  ;;  %v2592_v56 = vadd.f32 %v2411_v14, %v2235_v27 }
 0x312   : > { %v2184_v54 = vpop.permute.xlu1 %2183 }
 0x313   : > { %2693 = vst [vmem:[%s4570_s28 + $0x180] sm:$0xff] %v2591_v50  ;;  %2694 = vst [vmem:[%s4570_s28 + $0x188] sm:$0xff] %v2592_v56  ;;  %v2286_v32 = vmul.f32 %v2184_v54, %v5261_v9  ;;  %v2287_v25 = vmul.f32 %v2184_v54, %v5262_v48 }
 0x315   : > { %v2643_v21 = vadd.f32 %v2541_v22, %v2286_v32  ;;  %v2644_v57 = vadd.f32 %v2541_v22, %v2287_v25 }
 0x316   : > { %v2406_v34 = vpop.permute.xlu1 %2405 }
 0x317   : > { %2745 = vst [vmem:[%s4570_s28 + $0x320] sm:$0xff] %v2643_v21  ;;  %2746 = vst [vmem:[%s4570_s28 + $0x328] sm:$0xff] %v2644_v57  ;;  %v2589_v29 = vadd.f32 %v2406_v34, %v2232_v45  ;;  %v2590_v12 = vadd.f32 %v2406_v34, %v2233_v26 }
 0x319   : > { %2691 = vst [vmem:[%s4570_s28 + $0x170] sm:$0xff] %v2589_v29  ;;  %2692 = vst [vmem:[%s4570_s28 + $0x178] sm:$0xff] %v2590_v12 }
 0x31a   : > { %v2416_v38 = vpop.permute.xlu1 %2415 }
 0x31b   : > { %v2593_v20 = vadd.f32 %v2416_v38, %v2236_v1  ;;  %v2594_v3 = vadd.f32 %v2416_v38, %v2237_v59 }
 0x31d   : > { %2695 = vst [vmem:[%s4570_s28 + $0x190] sm:$0xff] %v2593_v20  ;;  %2696 = vst [vmem:[%s4570_s28 + $0x198] sm:$0xff] %v2594_v3 }
 0x31e   : > { %v2536_v2 = vpop.permute.xlu1 %2535 }
 0x31f   : > { %v2641_v62 = vadd.f32 %v2536_v2, %v2284_v17  ;;  %v2642_v49 = vadd.f32 %v2536_v2, %v2285_v36 }
 0x321   : > { %2743 = vst [vmem:[%s4570_s28 + $0x310] sm:$0xff] %v2641_v62  ;;  %2744 = vst [vmem:[%s4570_s28 + $0x318] sm:$0xff] %v2642_v49 }
 0x322 PF: > { %s14_s15 = sadd.s32 1, %s3048_s15  }
 0x323   : > { %p11_p4 = scmp.ge.s32.totalorder %s14_s15, 4  }
 0x325   :  { %13 = sbr.rel (!%p11_p4) target bundleno = 1 (0x1), region = 72 }

</bundles_post_ra>
